<compile_context>
chip_gen: v7x
topology: tpu7x:2x2x1
jax: 0.10.0
libtpu: 0.0.40
codegen_flags: <defaults>
</compile_context>

<pallas_src>
import functools

import jax
import jax.numpy as jnp
from jax.experimental import pallas as pl
from jax.experimental.pallas import tpu as pltpu


def _residual_block_kernel(x_ref, w1_ref, b1_ref, w2_ref, b2_ref, *rest,
                           H, use_proj):
    # x_ref : (1, H+4, W+4+extra, Cin_p)  bf16 (2-pixel halo, lane-padded chans)
    # out   : (1, TH, W, Cout_p)          f32
    if use_proj:
        wsc_ref, bsc_ref, out_ref = rest
    else:
        (out_ref,) = rest

    _, TH, W, cout = out_ref.shape
    ww1 = x_ref.shape[2] - 2          # conv1 extended width (sublane-aligned)
    row0 = pl.multiple_of(pl.program_id(1) * TH, TH)

    # Rows of the 2-padded input needed for this row tile.
    x_tile = x_ref[:, pl.ds(row0, TH + 4), :, :]       # (1, TH+4, ww1+2, Cin_p)

    def conv3x3(src, w, hh, ww):
        # src: (1, hh+2, >=ww+2, C) bf16 ; w: (9*C, cout) bf16 -> (1,hh,ww,cout) f32
        c = src.shape[-1]
        taps = [src[:, di:di + hh, dj:dj + ww, :]
                for di in range(3) for dj in range(3)]
        patches = jnp.concatenate(taps, axis=-1).reshape(hh * ww, 9 * c)
        acc = jnp.dot(patches, w, preferred_element_type=jnp.float32)
        return acc.reshape(1, hh, ww, cout)

    # conv1 (BN scale folded into w1) + bias + ReLU on an extended
    # (TH+2, ww1) window.  With its border masked to zero this IS the
    # 1-padded intermediate that conv2 consumes.
    z = conv3x3(x_tile, w1_ref[...], TH + 2, ww1) + b1_ref[...]
    rr = row0 + jax.lax.broadcasted_iota(jnp.int32, (1, TH + 2, ww1, 1), 1)
    cc = jax.lax.broadcasted_iota(jnp.int32, (1, TH + 2, ww1, 1), 2)
    interior = (rr >= 1) & (rr <= H) & (cc >= 1) & (cc <= W)
    y1pad = jnp.where(interior, jnp.maximum(z, 0.0), 0.0).astype(jnp.bfloat16)

    # conv2 (BN scale folded into w2) + bias
    y2 = conv3x3(y1pad, w2_ref[...], TH, W) + b2_ref[...]

    # shortcut (identity case skips the 1x1 matmul entirely)
    x_c = x_tile[:, 2:2 + TH, 2:2 + W, :]              # (1, TH, W, Cin_p) bf16
    if use_proj:
        cin = x_c.shape[-1]
        sc = jnp.dot(x_c.reshape(TH * W, cin), wsc_ref[...],
                     preferred_element_type=jnp.float32)
        sc = sc.reshape(1, TH, W, cout) + bsc_ref[...]
    else:
        sc = x_c.astype(jnp.float32)

    out_ref[...] = jnp.maximum(y2 + sc, 0.0)


def _round_up(x, m):
    return (x + m - 1) // m * m


def _pick_row_tile(h):
    # Largest divisor of H (capped) -> minimal halo recompute / step overhead.
    for th in range(min(h, 32), 0, -1):
        if h % th == 0:
            return th
    return h


def residual_block(x_nchw, params):
    """ResidualBlock forward. x_nchw: (N, Cin, H, W) f32 -> (N, Cout, H, W) f32."""
    N, Cin, H, W = x_nchw.shape
    Cout = params["w1"].shape[-1]
    use_proj = "wsc" in params
    LANE = 128
    Cin_p, Cout_p = _round_up(Cin, LANE), _round_up(Cout, LANE)
    TH = _pick_row_tile(H)
    NH = H // TH
    # extra right columns so conv1's im2col width (W+2) is sublane-aligned
    extra = _round_up(W + 2, 8) - (W + 2)

    # NHWC, lane-pad channels, 2-pixel spatial halo, bf16 activations.
    x = jnp.transpose(x_nchw, (0, 2, 3, 1))
    x = jnp.pad(x, ((0, 0), (2, 2), (2, 2 + extra), (0, Cin_p - Cin)))
    x = x.astype(jnp.bfloat16)

    def fold_w3(w, s, ci, cip):
        # Fold BN scale into the 3x3 conv weight, pad, im2col-stack, cast bf16.
        w = w * s.reshape(1, 1, 1, -1)
        w = jnp.pad(w, ((0, 0), (0, 0), (0, cip - ci), (0, Cout_p - Cout)))
        return w.reshape(9 * cip, Cout_p).astype(jnp.bfloat16)

    pad_v = lambda v: jnp.pad(v, ((0, 0), (0, 0), (0, 0), (0, Cout_p - Cout)))

    w1 = fold_w3(params["w1"], params["s1"], Cin, Cin_p)
    w2 = fold_w3(params["w2"], params["s2"], Cout, Cout_p)
    b1, b2 = pad_v(params["b1"]), pad_v(params["b2"])

    const = lambda shape: pl.BlockSpec(shape, lambda n, h: (0,) * len(shape))
    in_specs = [
        pl.BlockSpec((1, H + 4, W + 4 + extra, Cin_p), lambda n, h: (n, 0, 0, 0)),
        const((9 * Cin_p, Cout_p)),                    # w1 (scale-folded)
        const((1, 1, 1, Cout_p)),                      # b1
        const((9 * Cout_p, Cout_p)),                   # w2 (scale-folded)
        const((1, 1, 1, Cout_p)),                      # b2
    ]
    args = [x, w1, b1, w2, b2]
    if use_proj:
        wsc = params["wsc"] * params["ssc"].reshape(1, -1)
        wsc = jnp.pad(wsc, ((0, Cin_p - Cin),
                            (0, Cout_p - Cout))).astype(jnp.bfloat16)
        in_specs += [const((Cin_p, Cout_p)), const((1, 1, 1, Cout_p))]
        args += [wsc, pad_v(params["bsc"])]

    out = pl.pallas_call(
        functools.partial(_residual_block_kernel, H=H, use_proj=use_proj),
        out_shape=jax.ShapeDtypeStruct((N, H, W, Cout_p), jnp.float32),
        grid=(N, NH),
        in_specs=in_specs,
        out_specs=pl.BlockSpec((1, TH, W, Cout_p), lambda n, h: (n, h, 0, 0)),
        compiler_params=pltpu.CompilerParams(
            dimension_semantics=("parallel", "parallel"),
            vmem_limit_bytes=64 * 1024 * 1024),
    )(*args)

    return jnp.transpose(out[..., :Cout], (0, 3, 1, 2))


def _fold_bn(key, c, eps=1e-5):
    """Deterministic inference-mode BatchNorm folded to (scale, bias)."""
    k1, k2, k3, k4 = jax.random.split(key, 4)
    gamma = jax.random.uniform(k1, (c,), jnp.float32, 0.5, 1.5)
    beta = 0.1 * jax.random.normal(k2, (c,), jnp.float32)
    mean = 0.1 * jax.random.normal(k3, (c,), jnp.float32)
    var = jax.random.uniform(k4, (c,), jnp.float32, 0.5, 1.5)
    scale = gamma / jnp.sqrt(var + eps)
    bias = beta - mean * scale
    return scale.reshape(1, 1, 1, c), bias.reshape(1, 1, 1, c)


def make_params(key, cin, cout, stride=1):
    assert stride == 1  # TODO(synk): stride>1 not supported in this kernel
    k1, k2, k3, k4, k5, k6 = jax.random.split(key, 6)
    w1 = 0.1 * jax.random.normal(k1, (3, 3, cin, cout), jnp.float32)
    w2 = 0.1 * jax.random.normal(k2, (3, 3, cout, cout), jnp.float32)
    s1, b1 = _fold_bn(k3, cout)
    s2, b2 = _fold_bn(k4, cout)
    p = dict(w1=w1, s1=s1, b1=b1, w2=w2, s2=s2, b2=b2)
    if cin != cout:  # projection shortcut (1x1 conv + BN); identity otherwise
        p["wsc"] = 0.1 * jax.random.normal(k5, (cin, cout), jnp.float32)
        p["ssc"], p["bsc"] = _fold_bn(k6, cout)
    return p


def reference_forward(x_nchw, p):
    x = jnp.transpose(x_nchw, (0, 2, 3, 1))
    conv = functools.partial(
        jax.lax.conv_general_dilated, window_strides=(1, 1), padding="SAME",
        dimension_numbers=("NHWC", "HWIO", "NHWC"),
        precision=jax.lax.Precision.HIGHEST)
    y = jnp.maximum(conv(x, p["w1"]) * p["s1"] + p["b1"], 0.0)
    y = conv(y, p["w2"]) * p["s2"] + p["b2"]
    if "wsc" in p:
        sc = jnp.einsum("nhwc,cd->nhwd", x, p["wsc"],
                        precision=jax.lax.Precision.HIGHEST)
        sc = sc * p["ssc"] + p["bsc"]
    else:
        sc = x
    return jnp.transpose(jnp.maximum(y + sc, 0.0), (0, 3, 1, 2))


if __name__ == "__main__":
    key = jax.random.PRNGKey(0)
    kx1, kp1, kx2, kp2 = jax.random.split(key, 4)

    # Kernel uses bf16 MXU inputs (f32 accumulate) with BN scale folded into
    # the weights; reference is f32 HIGHEST, so tolerance is loosened.
    ATOL = RTOL = 3e-2

    # Projection-shortcut case (Cin != Cout).
    N, Cin, Cout, H, W = 2, 4, 8, 16, 16
    x = jax.random.normal(kx1, (N, Cin, H, W), jnp.float32)
    params = make_params(kp1, Cin, Cout, stride=1)
    out = jax.block_until_ready(residual_block(x, params))
    ref = reference_forward(x, params)
    assert out.shape == (N, Cout, H, W), out.shape
    assert jnp.allclose(out, ref, atol=ATOL, rtol=RTOL), (
        float(jnp.max(jnp.abs(out - ref))))

    # Identity-shortcut case (Cin == Cout) — skips the 1x1 matmul.
    x2 = jax.random.normal(kx2, (N, Cout, H, W), jnp.float32)
    params2 = make_params(kp2, Cout, Cout, stride=1)
    out2 = jax.block_until_ready(residual_block(x2, params2))
    ref2 = reference_forward(x2, params2)
    assert out2.shape == (N, Cout, H, W), out2.shape
    assert jnp.allclose(out2, ref2, atol=ATOL, rtol=RTOL), (
        float(jnp.max(jnp.abs(out2 - ref2))))

    print("KERNEL_OK")
</pallas_src>

<mosaic_0001>
module attributes {stable_mosaic.version = 11 : i64} {
  func.func @_residual_block_kernel(%arg0: i32, %arg1: i32, %arg2: memref<1x20x26x128xbf16, #tpu.memory_space<vmem>>, %arg3: memref<1152x128xbf16, #tpu.memory_space<vmem>>, %arg4: memref<1x1x1x128xf32, #tpu.memory_space<vmem>>, %arg5: memref<1152x128xbf16, #tpu.memory_space<vmem>>, %arg6: memref<1x1x1x128xf32, #tpu.memory_space<vmem>>, %arg7: memref<128x128xbf16, #tpu.memory_space<vmem>>, %arg8: memref<1x1x1x128xf32, #tpu.memory_space<vmem>>, %arg9: memref<1x16x16x128xf32, #tpu.memory_space<vmem>>) attributes {dimension_semantics = [#tpu.dimension_semantics<parallel>, #tpu.dimension_semantics<parallel>], iteration_bounds = array<i64: 2, 1>, scalar_prefetch = 0 : i64, scratch_operands = 0 : i64, tpu.core_type = #tpu.core_type<tc>, window_params = [{transform_indices = @transform_0, window_bounds = array<i64: 1, 20, 26, 128>}, {pipeline_mode = #tpu.pipeline_mode<synchronous>, transform_indices = @transform_1, window_bounds = array<i64: 1152, 128>}, {pipeline_mode = #tpu.pipeline_mode<synchronous>, transform_indices = @transform_2, window_bounds = array<i64: 1, 1, 1, 128>}, {pipeline_mode = #tpu.pipeline_mode<synchronous>, transform_indices = @transform_3, window_bounds = array<i64: 1152, 128>}, {pipeline_mode = #tpu.pipeline_mode<synchronous>, transform_indices = @transform_4, window_bounds = array<i64: 1, 1, 1, 128>}, {pipeline_mode = #tpu.pipeline_mode<synchronous>, transform_indices = @transform_5, window_bounds = array<i64: 128, 128>}, {pipeline_mode = #tpu.pipeline_mode<synchronous>, transform_indices = @transform_6, window_bounds = array<i64: 1, 1, 1, 128>}, {transform_indices = @transform_7, window_bounds = array<i64: 1, 16, 16, 128>}]} {
    %c16_i32 = arith.constant 16 : i32
    %0 = arith.muli %arg1, %c16_i32 : i32
    %1 = tpu.assume_multiple %0, 16 : i32
    %c0 = arith.constant 0 : index
    %2 = arith.index_cast %1 : i32 to index
    %c0_0 = arith.constant 0 : index
    %c0_1 = arith.constant 0 : index
    %3 = vector.load %arg2[%c0, %2, %c0_0, %c0_1] : memref<1x20x26x128xbf16, #tpu.memory_space<vmem>>, vector<1x20x26x128xbf16>
    %c0_2 = arith.constant 0 : index
    %c0_3 = arith.constant 0 : index
    %4 = vector.load %arg3[%c0_2, %c0_3] : memref<1152x128xbf16, #tpu.memory_space<vmem>>, vector<1152x128xbf16>
    %5 = vector.extract_strided_slice %3 {offsets = [0, 0, 0, 0], sizes = [1, 18, 24, 128], strides = [1, 1, 1, 1]} : vector<1x20x26x128xbf16> to vector<1x18x24x128xbf16>
    %6 = vector.extract_strided_slice %3 {offsets = [0, 0, 1, 0], sizes = [1, 18, 24, 128], strides = [1, 1, 1, 1]} : vector<1x20x26x128xbf16> to vector<1x18x24x128xbf16>
    %7 = vector.extract_strided_slice %3 {offsets = [0, 0, 2, 0], sizes = [1, 18, 24, 128], strides = [1, 1, 1, 1]} : vector<1x20x26x128xbf16> to vector<1x18x24x128xbf16>
    %8 = vector.extract_strided_slice %3 {offsets = [0, 1, 0, 0], sizes = [1, 18, 24, 128], strides = [1, 1, 1, 1]} : vector<1x20x26x128xbf16> to vector<1x18x24x128xbf16>
    %9 = vector.extract_strided_slice %3 {offsets = [0, 1, 1, 0], sizes = [1, 18, 24, 128], strides = [1, 1, 1, 1]} : vector<1x20x26x128xbf16> to vector<1x18x24x128xbf16>
    %10 = vector.extract_strided_slice %3 {offsets = [0, 1, 2, 0], sizes = [1, 18, 24, 128], strides = [1, 1, 1, 1]} : vector<1x20x26x128xbf16> to vector<1x18x24x128xbf16>
    %11 = vector.extract_strided_slice %3 {offsets = [0, 2, 0, 0], sizes = [1, 18, 24, 128], strides = [1, 1, 1, 1]} : vector<1x20x26x128xbf16> to vector<1x18x24x128xbf16>
    %12 = vector.extract_strided_slice %3 {offsets = [0, 2, 1, 0], sizes = [1, 18, 24, 128], strides = [1, 1, 1, 1]} : vector<1x20x26x128xbf16> to vector<1x18x24x128xbf16>
    %13 = vector.extract_strided_slice %3 {offsets = [0, 2, 2, 0], sizes = [1, 18, 24, 128], strides = [1, 1, 1, 1]} : vector<1x20x26x128xbf16> to vector<1x18x24x128xbf16>
    %14 = tpu.concatenate %5, %6, %7, %8, %9, %10, %11, %12, %13 in 3 : vector<1x18x24x128xbf16>, vector<1x18x24x128xbf16>, vector<1x18x24x128xbf16>, vector<1x18x24x128xbf16>, vector<1x18x24x128xbf16>, vector<1x18x24x128xbf16>, vector<1x18x24x128xbf16>, vector<1x18x24x128xbf16>, vector<1x18x24x128xbf16> -> vector<1x18x24x1152xbf16>
    %15 = vector.shape_cast %14 : vector<1x18x24x1152xbf16> to vector<432x1152xbf16>
    %cst = arith.constant dense<0.000000e+00> : vector<432x128xf32>
    %16 = tpu.matmul %15, %4, %cst {dimension_numbers = #tpu.dot_dimension_numbers<[1], [0], [0], [1], [0, 0, 1, 1], [], []>} : vector<432x1152xbf16>, vector<1152x128xbf16>, vector<432x128xf32> -> vector<432x128xf32>
    %17 = vector.shape_cast %16 : vector<432x128xf32> to vector<1x18x24x128xf32>
    %c0_4 = arith.constant 0 : index
    %c0_5 = arith.constant 0 : index
    %c0_6 = arith.constant 0 : index
    %c0_7 = arith.constant 0 : index
    %18 = vector.load %arg4[%c0_4, %c0_5, %c0_6, %c0_7] : memref<1x1x1x128xf32, #tpu.memory_space<vmem>>, vector<1x1x1x128xf32>
    %19 = vector.broadcast %18 : vector<1x1x1x128xf32> to vector<1x18x24x128xf32>
    %20 = arith.addf %17, %19 : vector<1x18x24x128xf32>
    %21 = tpu.iota {dimensions = array<i32: 1>} : vector<1x18x24x1xi32>
    %22 = vector.broadcast %1 : i32 to vector<1x18x24x1xi32>
    %23 = arith.addi %22, %21 : vector<1x18x24x1xi32>
    %24 = tpu.iota {dimensions = array<i32: 2>} : vector<1x18x24x1xi32>
    %c1_i32 = arith.constant 1 : i32
    %25 = vector.broadcast %c1_i32 : i32 to vector<1x18x24x1xi32>
    %26 = arith.cmpi sge, %23, %25 : vector<1x18x24x1xi32>
    %c16_i32_8 = arith.constant 16 : i32
    %27 = vector.broadcast %c16_i32_8 : i32 to vector<1x18x24x1xi32>
    %28 = arith.cmpi sle, %23, %27 : vector<1x18x24x1xi32>
    %29 = arith.andi %26, %28 : vector<1x18x24x1xi1>
    %c1_i32_9 = arith.constant 1 : i32
    %30 = vector.broadcast %c1_i32_9 : i32 to vector<1x18x24x1xi32>
    %31 = arith.cmpi sge, %24, %30 : vector<1x18x24x1xi32>
    %32 = arith.andi %29, %31 : vector<1x18x24x1xi1>
    %c16_i32_10 = arith.constant 16 : i32
    %33 = vector.broadcast %c16_i32_10 : i32 to vector<1x18x24x1xi32>
    %34 = arith.cmpi sle, %24, %33 : vector<1x18x24x1xi32>
    %35 = arith.andi %32, %34 : vector<1x18x24x1xi1>
    %cst_11 = arith.constant 0.000000e+00 : f32
    %36 = vector.broadcast %cst_11 : f32 to vector<1x18x24x128xf32>
    %37 = arith.maximumf %20, %36 : vector<1x18x24x128xf32>
    %cst_12 = arith.constant 0.000000e+00 : f32
    %38 = vector.shape_cast %35 : vector<1x18x24x1xi1> to vector<1x18x24x1xi1>
    %39 = vector.broadcast %38 : vector<1x18x24x1xi1> to vector<1x18x24x128xi1>
    %40 = vector.broadcast %cst_12 : f32 to vector<1x18x24x128xf32>
    %41 = arith.select %39, %37, %40 : vector<1x18x24x128xi1>, vector<1x18x24x128xf32>
    %42 = arith.truncf %41 : vector<1x18x24x128xf32> to vector<1x18x24x128xbf16>
    %c0_13 = arith.constant 0 : index
    %c0_14 = arith.constant 0 : index
    %43 = vector.load %arg5[%c0_13, %c0_14] : memref<1152x128xbf16, #tpu.memory_space<vmem>>, vector<1152x128xbf16>
    %44 = vector.extract_strided_slice %42 {offsets = [0, 0, 0, 0], sizes = [1, 16, 16, 128], strides = [1, 1, 1, 1]} : vector<1x18x24x128xbf16> to vector<1x16x16x128xbf16>
    %45 = vector.extract_strided_slice %42 {offsets = [0, 0, 1, 0], sizes = [1, 16, 16, 128], strides = [1, 1, 1, 1]} : vector<1x18x24x128xbf16> to vector<1x16x16x128xbf16>
    %46 = vector.extract_strided_slice %42 {offsets = [0, 0, 2, 0], sizes = [1, 16, 16, 128], strides = [1, 1, 1, 1]} : vector<1x18x24x128xbf16> to vector<1x16x16x128xbf16>
    %47 = vector.extract_strided_slice %42 {offsets = [0, 1, 0, 0], sizes = [1, 16, 16, 128], strides = [1, 1, 1, 1]} : vector<1x18x24x128xbf16> to vector<1x16x16x128xbf16>
    %48 = vector.extract_strided_slice %42 {offsets = [0, 1, 1, 0], sizes = [1, 16, 16, 128], strides = [1, 1, 1, 1]} : vector<1x18x24x128xbf16> to vector<1x16x16x128xbf16>
    %49 = vector.extract_strided_slice %42 {offsets = [0, 1, 2, 0], sizes = [1, 16, 16, 128], strides = [1, 1, 1, 1]} : vector<1x18x24x128xbf16> to vector<1x16x16x128xbf16>
    %50 = vector.extract_strided_slice %42 {offsets = [0, 2, 0, 0], sizes = [1, 16, 16, 128], strides = [1, 1, 1, 1]} : vector<1x18x24x128xbf16> to vector<1x16x16x128xbf16>
    %51 = vector.extract_strided_slice %42 {offsets = [0, 2, 1, 0], sizes = [1, 16, 16, 128], strides = [1, 1, 1, 1]} : vector<1x18x24x128xbf16> to vector<1x16x16x128xbf16>
    %52 = vector.extract_strided_slice %42 {offsets = [0, 2, 2, 0], sizes = [1, 16, 16, 128], strides = [1, 1, 1, 1]} : vector<1x18x24x128xbf16> to vector<1x16x16x128xbf16>
    %53 = tpu.concatenate %44, %45, %46, %47, %48, %49, %50, %51, %52 in 3 : vector<1x16x16x128xbf16>, vector<1x16x16x128xbf16>, vector<1x16x16x128xbf16>, vector<1x16x16x128xbf16>, vector<1x16x16x128xbf16>, vector<1x16x16x128xbf16>, vector<1x16x16x128xbf16>, vector<1x16x16x128xbf16>, vector<1x16x16x128xbf16> -> vector<1x16x16x1152xbf16>
    %54 = vector.shape_cast %53 : vector<1x16x16x1152xbf16> to vector<256x1152xbf16>
    %cst_15 = arith.constant dense<0.000000e+00> : vector<256x128xf32>
    %55 = tpu.matmul %54, %43, %cst_15 {dimension_numbers = #tpu.dot_dimension_numbers<[1], [0], [0], [1], [0, 0, 1, 1], [], []>} : vector<256x1152xbf16>, vector<1152x128xbf16>, vector<256x128xf32> -> vector<256x128xf32>
    %56 = vector.shape_cast %55 : vector<256x128xf32> to vector<1x16x16x128xf32>
    %c0_16 = arith.constant 0 : index
    %c0_17 = arith.constant 0 : index
    %c0_18 = arith.constant 0 : index
    %c0_19 = arith.constant 0 : index
    %57 = vector.load %arg6[%c0_16, %c0_17, %c0_18, %c0_19] : memref<1x1x1x128xf32, #tpu.memory_space<vmem>>, vector<1x1x1x128xf32>
    %58 = vector.broadcast %57 : vector<1x1x1x128xf32> to vector<1x16x16x128xf32>
    %59 = arith.addf %56, %58 : vector<1x16x16x128xf32>
    %60 = vector.extract_strided_slice %3 {offsets = [0, 2, 2, 0], sizes = [1, 16, 16, 128], strides = [1, 1, 1, 1]} : vector<1x20x26x128xbf16> to vector<1x16x16x128xbf16>
    %61 = vector.shape_cast %60 : vector<1x16x16x128xbf16> to vector<256x128xbf16>
    %c0_20 = arith.constant 0 : index
    %c0_21 = arith.constant 0 : index
    %62 = vector.load %arg7[%c0_20, %c0_21] : memref<128x128xbf16, #tpu.memory_space<vmem>>, vector<128x128xbf16>
    %cst_22 = arith.constant dense<0.000000e+00> : vector<256x128xf32>
    %63 = tpu.matmul %61, %62, %cst_22 {dimension_numbers = #tpu.dot_dimension_numbers<[1], [0], [0], [1], [0, 0, 1, 1], [], []>} : vector<256x128xbf16>, vector<128x128xbf16>, vector<256x128xf32> -> vector<256x128xf32>
    %64 = vector.shape_cast %63 : vector<256x128xf32> to vector<1x16x16x128xf32>
    %c0_23 = arith.constant 0 : index
    %c0_24 = arith.constant 0 : index
    %c0_25 = arith.constant 0 : index
    %c0_26 = arith.constant 0 : index
    %65 = vector.load %arg8[%c0_23, %c0_24, %c0_25, %c0_26] : memref<1x1x1x128xf32, #tpu.memory_space<vmem>>, vector<1x1x1x128xf32>
    %66 = vector.broadcast %65 : vector<1x1x1x128xf32> to vector<1x16x16x128xf32>
    %67 = arith.addf %64, %66 : vector<1x16x16x128xf32>
    %68 = arith.addf %59, %67 : vector<1x16x16x128xf32>
    %cst_27 = arith.constant 0.000000e+00 : f32
    %69 = vector.broadcast %cst_27 : f32 to vector<1x16x16x128xf32>
    %70 = arith.maximumf %68, %69 : vector<1x16x16x128xf32>
    %c0_28 = arith.constant 0 : index
    %c0_29 = arith.constant 0 : index
    %c0_30 = arith.constant 0 : index
    %c0_31 = arith.constant 0 : index
    %71 = vector.load %arg9[%c0_28, %c0_29, %c0_30, %c0_31] : memref<1x16x16x128xf32, #tpu.memory_space<vmem>>, vector<1x16x16x128xf32>
    tpu.vector_store %arg9[%c0_28, %c0_29, %c0_30, %c0_31], %70 {strides = array<i32>} : memref<1x16x16x128xf32, #tpu.memory_space<vmem>>, vector<1x16x16x128xf32>,
    return
  }
  func.func @transform_0(%arg0: i32, %arg1: i32) -> (i32, i32, i32, i32) {
    %c0_i32 = arith.constant 0 : i32
    %c0_i32_0 = arith.constant 0 : i32
    %c0_i32_1 = arith.constant 0 : i32
    %c0_i32_2 = arith.constant 0 : i32
    return %arg0, %c0_i32, %c0_i32_0, %c0_i32_1 : i32, i32, i32, i32
  }
  func.func @transform_1(%arg0: i32, %arg1: i32) -> (i32, i32) {
    %c0_i32 = arith.constant 0 : i32
    %c0_i32_0 = arith.constant 0 : i32
    %c0_i32_1 = arith.constant 0 : i32
    return %c0_i32, %c0_i32_0 : i32, i32
  }
  func.func @transform_2(%arg0: i32, %arg1: i32) -> (i32, i32, i32, i32) {
    %c0_i32 = arith.constant 0 : i32
    %c0_i32_0 = arith.constant 0 : i32
    %c0_i32_1 = arith.constant 0 : i32
    %c0_i32_2 = arith.constant 0 : i32
    %c0_i32_3 = arith.constant 0 : i32
    return %c0_i32, %c0_i32_0, %c0_i32_1, %c0_i32_2 : i32, i32, i32, i32
  }
  func.func @transform_3(%arg0: i32, %arg1: i32) -> (i32, i32) {
    %c0_i32 = arith.constant 0 : i32
    %c0_i32_0 = arith.constant 0 : i32
    %c0_i32_1 = arith.constant 0 : i32
    return %c0_i32, %c0_i32_0 : i32, i32
  }
  func.func @transform_4(%arg0: i32, %arg1: i32) -> (i32, i32, i32, i32) {
    %c0_i32 = arith.constant 0 : i32
    %c0_i32_0 = arith.constant 0 : i32
    %c0_i32_1 = arith.constant 0 : i32
    %c0_i32_2 = arith.constant 0 : i32
    %c0_i32_3 = arith.constant 0 : i32
    return %c0_i32, %c0_i32_0, %c0_i32_1, %c0_i32_2 : i32, i32, i32, i32
  }
  func.func @transform_5(%arg0: i32, %arg1: i32) -> (i32, i32) {
    %c0_i32 = arith.constant 0 : i32
    %c0_i32_0 = arith.constant 0 : i32
    %c0_i32_1 = arith.constant 0 : i32
    return %c0_i32, %c0_i32_0 : i32, i32
  }
  func.func @transform_6(%arg0: i32, %arg1: i32) -> (i32, i32, i32, i32) {
    %c0_i32 = arith.constant 0 : i32
    %c0_i32_0 = arith.constant 0 : i32
    %c0_i32_1 = arith.constant 0 : i32
    %c0_i32_2 = arith.constant 0 : i32
    %c0_i32_3 = arith.constant 0 : i32
    return %c0_i32, %c0_i32_0, %c0_i32_1, %c0_i32_2 : i32, i32, i32, i32
  }
  func.func @transform_7(%arg0: i32, %arg1: i32) -> (i32, i32, i32, i32) {
    %c0_i32 = arith.constant 0 : i32
    %c0_i32_0 = arith.constant 0 : i32
    %c0_i32_1 = arith.constant 0 : i32
    return %arg0, %arg1, %c0_i32, %c0_i32_0 : i32, i32, i32, i32
  }
}

</mosaic_0001>

<bundles_post_ra>
// kernel: tpu_custom_call.1
= control target key start
LH: loop header
LB: loop body
LE: loop exit
PB: predicated region body
PF: predicated region fallthrough
CT: control target
= control target key end

     0   :  { %s11482_s0 = inlined_call_operand.hbm [shape: bf16[2,20,26,128], index: 0, kind: input, shape index: {}]   ;;  %s11483_s1 = inlined_call_operand.hbm [shape: bf16[1152,128], index: 1, kind: input, shape index: {}]   ;;  %s11484_s2 = inlined_call_operand.hbm [shape: f32[1,1,1,128], index: 2, kind: input, shape index: {}]   ;;  %s11485_s3 = inlined_call_operand.hbm [shape: bf16[1152,128], index: 3, kind: input, shape index: {}]   ;;  %s11486_s4 = inlined_call_operand.hbm [shape: f32[1,1,1,128], index: 4, kind: input, shape index: {}]   ;;  %s11487_s5 = inlined_call_operand.hbm [shape: bf16[128,128], index: 5, kind: input, shape index: {}]   ;;  %s11488_s6 = inlined_call_operand.hbm [shape: f32[1,1,1,128], index: 6, kind: input, shape index: {}]   ;;  %s11489_s7 = inlined_call_operand.hbm [shape: f32[2,16,16,128], index: 7, kind: output, shape index: {}]  }
   0x1   :  { %11628 = sst [smem:[#allocation119_spill]] %s11483_s1 }
   0x2   :  { %11629 = sst [smem:[#allocation120_spill]] %s11484_s2 }
   0x3   :  { %11630 = sst [smem:[#allocation121_spill]] %s11489_s7 }
   0x4   :  { %12 = vsyncpa [#allocation3], 0 }
   0x5   :  { %14 = vsyncpa [#allocation3 + $0x1], 0 }
   0x6   :  { %15 = vsyncpa [#allocation6], 0 }
   0x7   :  { %16 = vsyncpa [#allocation9], 0 }
   0x8   :  { %17 = vsyncpa [#allocation12], 0 }
   0x9   :  { %18 = vsyncpa [#allocation4], 0 }
   0xa   :  { %20 = vsyncpa [#allocation4 + $0x1], 0  ;;  %s8377_s24 = smov 0   ;;  %s8379_s25 = smov 0  }
   0xb   :  { %s8381_s26 = smov 0   ;;  %s8383_s27 = smov 0  }
   0xc   :  { %s8385_s28 = smov 0   ;;  %s8387_s29 = smov 0  }
   0xd LB: > { %s11490_s30 = sadd.s32 4294967295, %s8318_s29   ;;  %p6270_p0 = scmp.ge.s32.totalorder %s8318_s29, 1  ;;  %s8318_s29 = sphi %s8387_s29, %s26_s29   ;;  %s8314_s28 = sphi %s8385_s28, %s12046_s28   ;;  %s8310_s27 = sphi %s8383_s27, %s12045_s27   ;;  %s8306_s26 = sphi %s8381_s26, %s12044_s26   ;;  %s8302_s25 = sphi %s8379_s25, %s12043_s25   ;;  %s8298_s24 = sphi %s8377_s24, %s12042_s24  }
   0xe   : > { %p8411_p1 = scmp.eq.s32.totalorder %s11490_s30, 0  ;;  %p223_p2 = scmp.lt.s32.totalorder %s8318_s29, 3 }
   0xf   : > { %s8320_s10 = smov [#allocation5]   ;;  %s8321_s13 = smov [#allocation8]  }
  0x10   : > { %s11631_s8 = scalar_select %p8411_p1, 1, 0 }
  0x11   : > { %p8416_p3 = pnand %p6270_p0, %p223_p2  ;;  %s235_s11 = sshll.u32 %s8320_s10, 4  ;;  %s8420_s11 = int_to_ptr.vmem [resolvable:$true] %s235_s11 }
  0x12   : > { %s259_s14 = sshll.u32 %s8321_s13, 4  ;;  %s8322_s15 = smov [#allocation11]   ;;  %s8431_s14 = int_to_ptr.vmem [resolvable:$true] %s259_s14 }
  0x13   : > { %s11632_s9 = scalar_select %p8416_p3, 1, 0 }
  0x14   : > { %p7660_p4 = pneg %p8416_p3  ;;  %s8433_s16 = sshll.u32 %s8322_s15, 4  ;;  %s284_s16 = int_to_ptr.vmem [resolvable:$true] %s8433_s16 }
  0x15   : > { %s11634_s1 = sld [smem:[#allocation119_spill]] }
  0x16   : > { %p8427_p6 = pnand %p7660_p4, %p8411_p1 }
  0x18   : > { %p8443_p8 = pneg %p8427_p6 }
  0x1b   : > { %s8026_s19 = scalar_lea.hbm %s11634_s1, 9216 }
  0x1c   : > { %p8027_p7 = scmp.ne.s32.totalorder %s11634_s1, %s8026_s19  ;;  %p8033_p11 = scmp.lt.u32.totalorder %s8026_s19, %s11634_s1 }
  0x1e   : > { %p8029_p9 = pnand %p8443_p8, %p8027_p7 }
  0x20   : > { %p8030_p10 = pneg %p8029_p9 }
  0x22   : > { %p8035_p12 = pnand %p8033_p11, %p8030_p10 }
  0x24   : > { %8038 = shalt.err (!%p8035_p12)
}
  0x25   : > { %s8039_s13 = scalar_lea.vmem %s8420_s11, 9216  ;;  %p8047_p4 = scmp.lt.s32.totalorder %s8420_s11, %s8420_s11 }
  0x26   : > { %p8040_p13 = scmp.ne.s32.totalorder %s8420_s11, %s8039_s13  ;;  %p8048_p5 = scmp.lt.s32.totalorder %s8039_s13, %s8039_s13 }
  0x28   : > { %p8042_p0 = pnand %p8040_p13, %p8443_p8  ;;  %p8049_p7 = por %p8048_p5, %p8047_p4 }
  0x2a   : > { %p8043_p2 = pneg %p8042_p0 }
  0x2c   : > { %p8050_p9 = pnand %p8049_p7, %p8043_p2 }
  0x2e   : > { %8053 = shalt.err (!%p8050_p9)
}
  0x2f   : > { %s11495_s15 = smov 64   ;;  %s11496_s17 = smov 4  }
  0x30   : > { %7663 = dma.hbm_to_vmem [thread:$0]  (!%p8427_p6), %s11634_s1, 9216, %s8420_s11, [#allocation6], %s11495_s15, %s11495_s15, %s11496_s17  }
  0x31   : > { %s8054_s23 = scalar_lea.hbm %s11485_s3, 9216 }
  0x32   : > { %p8055_p5 = scmp.ne.s32.totalorder %s11485_s3, %s8054_s23  ;;  %p8061_p12 = scmp.lt.u32.totalorder %s8054_s23, %s11485_s3 }
  0x34   : > { %p8057_p10 = pnand %p8055_p5, %p8443_p8 }
  0x36   : > { %p8058_p11 = pneg %p8057_p10 }
  0x38   : > { %p8063_p13 = pnand %p8061_p12, %p8058_p11 }
  0x3a   : > { %8066 = shalt.err (!%p8063_p13)
}
  0x3b   : > { %s8067_s11 = scalar_lea.vmem %s8431_s14, 9216  ;;  %p8075_p7 = scmp.lt.s32.totalorder %s8431_s14, %s8431_s14 }
  0x3c   : > { %p8068_p0 = scmp.ne.s32.totalorder %s8431_s14, %s8067_s11  ;;  %p8076_p9 = scmp.lt.s32.totalorder %s8067_s11, %s8067_s11 }
  0x3e   : > { %p8070_p2 = pnand %p8068_p0, %p8443_p8  ;;  %p8077_p5 = por %p8076_p9, %p8075_p7 }
  0x40   : > { %p8071_p4 = pneg %p8070_p2 }
  0x42   : > { %p8078_p10 = pnand %p8077_p5, %p8071_p4 }
  0x44   : > { %8081 = shalt.err (!%p8078_p10)
}
  0x45   : > { %7669 = dma.hbm_to_vmem [thread:$0]  (!%p8427_p6), %s11485_s3, 9216, %s8431_s14, [#allocation9], %s11495_s15, %s11495_s15, %s11496_s17  }
  0x46   : > { %s8082_s20 = scalar_lea.hbm %s11487_s5, 1024 }
  0x47   : > { %p8083_p11 = scmp.ne.s32.totalorder %s11487_s5, %s8082_s20  ;;  %p8089_p0 = scmp.lt.u32.totalorder %s8082_s20, %s11487_s5 }
  0x49   : > { %p8085_p12 = pnand %p8083_p11, %p8443_p8 }
  0x4b   : > { %p8086_p13 = pneg %p8085_p12 }
  0x4d   : > { %p8091_p2 = pnand %p8089_p0, %p8086_p13 }
  0x4f   : > { %8094 = shalt.err (!%p8091_p2)
}
  0x50   : > { %s8095_s11 = scalar_lea.vmem %s284_s16, 1024  ;;  %p8103_p5 = scmp.lt.s32.totalorder %s284_s16, %s284_s16 }
  0x51   : > { %p8096_p4 = scmp.ne.s32.totalorder %s284_s16, %s8095_s11  ;;  %p8104_p10 = scmp.lt.s32.totalorder %s8095_s11, %s8095_s11 }
  0x53   : > { %p8098_p7 = pnand %p8096_p4, %p8443_p8  ;;  %p8105_p3 = por %p8104_p10, %p8103_p5 }
  0x55   : > { %p8099_p9 = pneg %p8098_p7 }
  0x57   : > { %p8106_p1 = pnand %p8105_p3, %p8099_p9 }
  0x59   : > { %8109 = shalt.err (!%p8106_p1)
}
  0x5a   : > { %7675 = dma.hbm_to_vmem [thread:$0]  (!%p8427_p6), %s11487_s5, 1024, %s284_s16, [#allocation12], %s11495_s15, %s11495_s15, %s11496_s17  }
  0x5b   : > { %s8325_s30 = smov [#allocation7]   ;;  %s8326_s19 = smov [#allocation10]  }
  0x5c   : > { %s249_s18 = sshll.u32 %s8325_s30, 4  ;;  %s273_s20 = sshll.u32 %s8326_s19, 4  ;;  %s250_s18 = int_to_ptr.vmem [resolvable:$true] %s249_s18  ;;  %s274_s20 = int_to_ptr.vmem [resolvable:$true] %s273_s20 }
  0x5d   : > { %s11636_s2 = sld [smem:[#allocation120_spill]] }
  0x63   : > { %s8110_s10 = scalar_lea.hbm %s11636_s2, 16 }
  0x64   : > { %p8111_p1 = scmp.ne.s32.totalorder %s11636_s2, %s8110_s10  ;;  %p8117_p12 = scmp.lt.u32.totalorder %s8110_s10, %s11636_s2 }
  0x66   : > { %p8113_p3 = pnand %p8111_p1, %p8443_p8 }
  0x68   : > { %p8114_p11 = pneg %p8113_p3 }
  0x6a   : > { %p8119_p13 = pnand %p8117_p12, %p8114_p11 }
  0x6c   : > { %8122 = shalt.err (!%p8119_p13)
}
  0x6d   : > { %s8123_s16 = scalar_lea.vmem %s250_s18, 16  ;;  %s8130_s7 = scalar_lea.vmem %s250_s18, 32 }
  0x6e   : > { %p8124_p0 = scmp.ne.s32.totalorder %s250_s18, %s8123_s16  ;;  %p8131_p7 = scmp.lt.s32.totalorder %s250_s18, %s250_s18 }
  0x6f   : > { %p8132_p9 = scmp.lt.s32.totalorder %s8130_s7, %s8123_s16 }
  0x70   : > { %p8126_p2 = pnand %p8124_p0, %p8443_p8 }
  0x71   : > { %p8133_p5 = por %p8132_p9, %p8131_p7 }
  0x72   : > { %p8127_p4 = pneg %p8126_p2 }
  0x74   : > { %p8134_p10 = pnand %p8133_p5, %p8127_p4 }
  0x76   : > { %8137 = shalt.err (!%p8134_p10)
}
  0x77   : > { %7666 = dma.hbm_to_vmem [thread:$0]  (!%p8427_p6), %s11636_s2, 16, %s250_s18, [#allocation6]  }
  0x78   : > { %s8138_s23 = scalar_lea.hbm %s11486_s4, 16 }
  0x79   : > { %p8139_p1 = scmp.ne.s32.totalorder %s11486_s4, %s8138_s23  ;;  %p8145_p12 = scmp.lt.u32.totalorder %s8138_s23, %s11486_s4 }
  0x7b   : > { %p8141_p3 = pnand %p8139_p1, %p8443_p8 }
  0x7d   : > { %p8142_p11 = pneg %p8141_p3 }
  0x7f   : > { %p8147_p13 = pnand %p8145_p12, %p8142_p11 }
  0x81   : > { %8150 = shalt.err (!%p8147_p13)
}
  0x82   : > { %s8151_s16 = scalar_lea.vmem %s274_s20, 16  ;;  %s8158_s18 = scalar_lea.vmem %s274_s20, 32 }
  0x83   : > { %p8152_p0 = scmp.ne.s32.totalorder %s274_s20, %s8151_s16  ;;  %p8159_p7 = scmp.lt.s32.totalorder %s274_s20, %s274_s20 }
  0x84   : > { %p8160_p9 = scmp.lt.s32.totalorder %s8158_s18, %s8151_s16 }
  0x85   : > { %p8154_p2 = pnand %p8152_p0, %p8443_p8 }
  0x86   : > { %p8161_p5 = por %p8160_p9, %p8159_p7 }
  0x87   : > { %p8155_p4 = pneg %p8154_p2 }
  0x89   : > { %p8162_p10 = pnand %p8161_p5, %p8155_p4 }
  0x8b   : > { %8165 = shalt.err (!%p8162_p10)
}
  0x8c   : > { %7672 = dma.hbm_to_vmem [thread:$0]  (!%p8427_p6), %s11486_s4, 16, %s274_s20, [#allocation9]  }
  0x8d   : > { %s8327_s19 = smov [#allocation13]   ;;  %s8166_s10 = scalar_lea.hbm %s11488_s6, 16 }
  0x8e   : > { %s297_s1 = sshll.u32 %s8327_s19, 4  ;;  %p8167_p1 = scmp.ne.s32.totalorder %s11488_s6, %s8166_s10  ;;  %s298_s1 = int_to_ptr.vmem [resolvable:$true] %s297_s1 }
  0x8f   : > { %p8173_p12 = scmp.lt.u32.totalorder %s8166_s10, %s11488_s6 }
  0x90   : > { %p8169_p3 = pnand %p8167_p1, %p8443_p8 }
  0x92   : > { %p8170_p11 = pneg %p8169_p3 }
  0x94   : > { %p8175_p13 = pnand %p8173_p12, %p8170_p11 }
  0x96   : > { %8178 = shalt.err (!%p8175_p13)
}
  0x97   : > { %s8179_s20 = scalar_lea.vmem %s298_s1, 16  ;;  %s8186_s18 = scalar_lea.vmem %s298_s1, 32 }
  0x98   : > { %p8180_p0 = scmp.ne.s32.totalorder %s298_s1, %s8179_s20  ;;  %p8187_p7 = scmp.lt.s32.totalorder %s298_s1, %s298_s1 }
  0x99   : > { %p8188_p9 = scmp.lt.s32.totalorder %s8186_s18, %s8179_s20 }
  0x9a   : > { %p8182_p2 = pnand %p8180_p0, %p8443_p8 }
  0x9b   : > { %p8189_p5 = por %p8188_p9, %p8187_p7 }
  0x9c   : > { %p8183_p4 = pneg %p8182_p2 }
  0x9e   : > { %p8190_p10 = pnand %p8189_p5, %p8183_p4 }
  0xa0   : > { %8193 = shalt.err (!%p8190_p10)
}
  0xa1   : > { %7678 = dma.hbm_to_vmem [thread:$0]  (!%p8427_p6), %s11488_s6, 16, %s298_s1, [#allocation12]  }
  0xa2   : > { %s6269_s22 = sadd.s32 4294967294, %s8318_s29   ;;  %s38_s19 = sadd.s32 1, %s8314_s28 }
  0xa3   : > { %p40_p8 = scmp.ge.s32.totalorder %s38_s19, 2  ;;  %s45_s12 = sadd.s32 1, %s8306_s26 }
  0xa4   : > { %p52_p1 = scmp.ne.s32.totalorder %s8306_s26, %s8302_s25  ;;  %p53_p3 = scmp.eq.s32.totalorder %s8318_s29, 0 }
  0xa5   : > { %s12048_s19 = smov (%p40_p8, %s38_s19), 0  ;;  %p58_p12 = scmp.ne.s32.totalorder %s8302_s25, %s8298_s24 }
  0xa6   : > { %p8577_p11 = por %p53_p3, %p52_p1  ;;  %s42_s1 = ssub.s32 %s8314_s28, %s12048_s19 }
  0xa7   : > { %s11638_s23 = sadd.s32 4294967295, %s8318_s29   ;;  %p43_p13 = scmp.eq.s32.totalorder %s42_s1, 0 }
  0xa8   : > { %p210_p6 = scmp.eq.s32.totalorder %s11638_s23, 1  ;;  %p11639_p0 = scmp.ne.s32.totalorder %s11631_s8, 0 }
  0xa9   : > { %p216_p7 = scmp.eq.s32.totalorder %s6269_s22, 1  ;;  %p7693_p5 = scmp.lt.s32.totalorder %s8318_s29, 2 }
  0xaa   : > { %p8589_p2 = por %p11639_p0, %p58_p12  ;;  %p8593_p4 = por %p210_p6, %p52_p1 }
  0xab   : > { %s8598_s11 = scalar_select %p43_p13, %s8306_s26, %s45_s12  }
  0xac   : > { %s11641_s13 = scalar_select %p8593_p4, 1, 0 }
  0xad   : > { %p8600_p9 = por %p216_p7, %p58_p12  ;;  %s308_s16 = sand.u32 1, %s8306_s26  }
  0xae   : > { %s7630_s20 = smul.u32 5120, %s8314_s28  ;;  %p8609_p10 = pnand %p7693_p5, %p8577_p11 }
  0xaf   : > { %s11642_s14 = scalar_select %p8600_p9, 1, 0 }
  0xb0   : > { %s7629_s18 = smul.u32 320, %s308_s16  ;;  %s8616_s22 = scalar_lea.hbm %s11482_s0, %s7630_s20 }
  0xb1   : > { %s8620_s21 = scalar_lea.sflag [#allocation3], %s308_s16  ;;  %s8194_s15 = scalar_lea.hbm %s8616_s22, 5120 }
  0xb2   : > { %s312_s12 = scalar_lea.vmem [#allocation2], %s7629_s18  ;;  %p8195_p8 = scmp.ne.s32.totalorder %s8616_s22, %s8194_s15 }
  0xb3   : > { %s319_s23 = sshll.u32 %s312_s12, 4  ;;  %p8196_p1 = pneg %p8609_p10  ;;  %s8618_s23 = int_to_ptr.vmem [resolvable:$true] %s319_s23 }
  0xb4   : > { %s8199_s1 = scalar_lea.hbm %s11482_s0, 10240  ;;  %p8200_p12 = scmp.lt.u32.totalorder %s8616_s22, %s11482_s0 }
  0xb5   : > { %p8197_p3 = pnand %p8196_p1, %p8195_p8  ;;  %p8201_p6 = scmp.lt.u32.totalorder %s8199_s1, %s8194_s15 }
  0xb6   : > { %p8203_p0 = scmp.lt.u32.totalorder %s8194_s15, %s8616_s22 }
  0xb7   : > { %p8198_p11 = pneg %p8197_p3  ;;  %p8202_p13 = por %p8201_p6, %p8200_p12 }
  0xb9   : > { %p8204_p7 = por %p8203_p0, %p8202_p13 }
  0xbb   : > { %p8205_p5 = pnand %p8204_p7, %p8198_p11 }
  0xbd   : > { %8208 = shalt.err (!%p8205_p5)
}
  0xbe   : > { %s8209_s16 = scalar_lea.vmem %s8618_s23, 5120  ;;  %s8328_s18 = smov [#allocation2]  }
  0xbf   : > { %p8210_p8 = scmp.ne.s32.totalorder %s8618_s23, %s8209_s16  ;;  %s8214_s12 = sshll.u32 %s8328_s18, 4  ;;  %s8215_s12 = int_to_ptr.vmem [resolvable:$false] %s8214_s12 }
  0xc0   : > { %s8216_s2 = scalar_lea.vmem %s8215_s12, 10240  ;;  %p8217_p4 = scmp.lt.s32.totalorder %s8618_s23, %s8215_s12 }
  0xc1   : > { %p8212_p3 = pnand %p8210_p8, %p8196_p1  ;;  %p8218_p12 = scmp.lt.s32.totalorder %s8216_s2, %s8209_s16 }
  0xc3   : > { %p8213_p9 = pneg %p8212_p3  ;;  %p8219_p6 = por %p8218_p12, %p8217_p4 }
  0xc5   : > { %p8220_p13 = pnand %p8219_p6, %p8213_p9 }
  0xc7   : > { %8223 = shalt.err (!%p8220_p13)
}
  0xc8   : > { %s11644_s15 = smov 4   ;;  %s11645_s17 = smov 64  }
  0xc9   : > { %7682 = dma.hbm_to_vmem [thread:$0]  (!%p8609_p10), %s8616_s22, 5120, %s8618_s23, %s8620_s21, %s11645_s17, %s11645_s17, %s11644_s15  }
  0xca   : > { %p11646_p1 = scmp.ne.s32.totalorder %s11632_s9, 0 }
  0xcc   : > { %331 = sbr.rel (%p11646_p1) target bundleno = 1624 (0x658), region = 48 }
  0xd3   : > { %s8654_s20 = sand.u32 1, %s8302_s25  }
  0xd4   : > { %s7631_s30 = smul.u32 320, %s8654_s20  ;;  %s334_s1 = scalar_lea.sflag [#allocation3], %s8654_s20 }
  0xd6   : > { %s8658_s16 = scalar_lea.vmem [#allocation2], %s7631_s30 }
  0xd7   : > { %8277 = dma.done.wait (%p8589_p2), %s334_s1, 5120  }
  0xd8   : > { %8279 = vsyncadd (%p8589_p2), %s334_s1, 4294962176  ;;  %p11647_p4 = scmp.ne.s32.totalorder %s11631_s8, 0 }
  0xda   : > { %8281 = dma.done.wait (%p11647_p4), [#allocation6], 9232  }
  0xdb   : > { %8283 = vsyncadd (%p11647_p4), [#allocation6], 4294958064 }
  0xdc   : > { %8285 = dma.done.wait (%p11647_p4), [#allocation9], 9232  }
  0xdd   : > { %8287 = vsyncadd (%p11647_p4), [#allocation9], 4294958064 }
  0xde   : > { %8289 = dma.done.wait (%p11647_p4), [#allocation12], 1040  }
  0xdf   : > { %8291 = vsyncadd (%p11647_p4), [#allocation12], 4294966256  ;;  %v11498_v0 = vmov 0   ;;  %v7764_v1 = vld [vmem:[#allocation5] sm:$0xff]   ;;  %v7766_v3 = vld [vmem:[#allocation5 + $0x8] sm:$0xff]   ;;  %vm5569_vm1 = vcmask 1042432  }
  0xe0   : > { %2059 = vmatprep.subr.bf16.mxu0 %v11498_v0  ;;  %2308 = vmatprep.subr.bf16.mxu1 %v11498_v0  ;;  %v7765_v2 = vld [vmem:[#allocation5 + $0x80] sm:$0xff]   ;;  %v7767_v4 = vld [vmem:[#allocation5 + $0x88] sm:$0xff]   ;;  %v7768_v5 = vld [vmem:[#allocation5 + $0x10] sm:$0xff]   ;;  %vm802_vm0 = vsmask.f32 7424  ;;  %vm5570_vm2 = vcmask 1046532  }
  0xe1   : > { %2060 = vmatpush1.bf16.msra.mxu0 %v7764_v1  ;;  %2309 = vmatpush1.bf16.msra.mxu1 %v7765_v2  ;;  %v7769_v6 = vld [vmem:[#allocation5 + $0x90] sm:$0xff]   ;;  %v7770_v7 = vld [vmem:[#allocation5 + $0x18] sm:$0xff]   ;;  %v7772_v9 = vld [vmem:[#allocation5 + $0x20] sm:$0xff]   ;;  %v11648_v39 = vmov 0  ;;  %vm1073_vm4 = vcmask 1046528   ;;  %vm8331_vm5 = vmmov 0  }
  0xe2   : > { %2061 = vmatprep.subr.bf16.mxu0 %v11498_v0  ;;  %2310 = vmatprep.subr.bf16.mxu1 %v11498_v0  ;;  %v7771_v8 = vld [vmem:[#allocation5 + $0x98] sm:$0xff]   ;;  %v7773_v10 = vld [vmem:[#allocation5 + $0xa0] sm:$0xff]   ;;  %v7774_v11 = vld [vmem:[#allocation5 + $0x28] sm:$0xff]   ;;  %vm8333_vm8 = vmmov 1   ;;  %s6286_s8 = sshll.u32 %s8654_s20, 8  ;;  %s6733_s10 = sshll.u32 %s8310_s27, 12 }
  0xe3   : > { %v7775_v12 = vld [vmem:[#allocation5 + $0xa8] sm:$0xff]   ;;  %v7776_v13 = vld [vmem:[#allocation5 + $0x30] sm:$0xff]   ;;  %v7778_v15 = vld [vmem:[#allocation5 + $0x38] sm:$0xff]   ;;  %s11273_s9 = scalar_lea.vmem [#allocation14], %s6286_s8  ;;  %s12038_s21 = sld [smem:[#allocation121_spill]] }
  0xe4   : > { %v7777_v14 = vld [vmem:[#allocation5 + $0xb0] sm:$0xff]   ;;  %v7779_v16 = vld [vmem:[#allocation5 + $0xb8] sm:$0xff]   ;;  %v7780_v17 = vld [vmem:[#allocation5 + $0x40] sm:$0xff]   ;;  %s6125_s7 = sshll.u32 %s11273_s9, 4  ;;  %s6109_s12 = scalar_lea.sflag [#allocation4], %s8654_s20  ;;  %s11431_s7 = int_to_ptr.vmem [resolvable:$true] %s6125_s7 }
  0xe5   : > { %2062 = vmatpush1.bf16.msra.mxu0 %v7766_v3  ;;  %2311 = vmatpush1.bf16.msra.mxu1 %v7767_v4  ;;  %v7781_v18 = vld [vmem:[#allocation5 + $0xc0] sm:$0xff]   ;;  %v7782_v19 = vld [vmem:[#allocation5 + $0x48] sm:$0xff]   ;;  %v8702_v23 = vld [vmem:[%s8658_s16 + $0x10] sm:$0xf]  ;;  %s8224_s2 = scalar_lea.vmem %s11431_s7, 4096  ;;  %p12039_p9 = scmp.ne.s32.totalorder %s11641_s13, 0 }
  0xe6   : > { %2063 = vmatprep.subr.bf16.mxu0 %v11498_v0  ;;  %2312 = vmatprep.subr.bf16.mxu1 %v11498_v0  ;;  %v8695_v20 = vld [vmem:[%s8658_s16 + $0x8] sm:$0xf]  ;;  %v401_v21 = vld [vmem:[%s8658_s16 + $0xc] sm:$0x1]  ;;  %v8699_v22 = vld [vmem:[%s8658_s16] sm:$0xff]   ;;  %p8225_p2 = scmp.ne.s32.totalorder %s11431_s7, %s8224_s2  ;;  %s8334_s27 = smov [#allocation14]  }
  0xe7   : > { %v8705_v24 = vcombine.low %v8695_v20, %v401_v21  ;;  %v8708_v25 = vld [vmem:[%s8658_s16 + $0x14] sm:$0xf]  ;;  %v7783_v26 = vld [vmem:[#allocation5 + $0xc8] sm:$0xff]   ;;  %v804_v27 = vshrl.u32 %v8699_v22, 16  ;;  %v806_v28 = vshll.u32 %v8699_v22, 16  ;;  %v7786_v37 = vld [vmem:[#allocation5 + $0x58] sm:$0xff]  }
  0xe8   : > { %v8715_v29 = vcombine.low %v8702_v23, %v8708_v25  ;;  %v7784_v32 = vld [vmem:[#allocation5 + $0x50] sm:$0xff]   ;;  %v7787_v38 = vld [vmem:[#allocation5 + $0xd8] sm:$0xff]   ;;  %vm8727_vm3 = vmor %vm5569_vm1, %vm5570_vm2  ;;  %v1074_v63 = vrot.slane %v8699_v22, 1  ;;  %p8226_p10 = pnand %p8225_p2, %p12039_p9  ;;  %s8228_s15 = sshll.u32 %s8334_s27, 4  ;;  %s8229_s15 = int_to_ptr.vmem [resolvable:$false] %s8228_s15 }
  0xe9   : > { %2064 = vmatpush1.bf16.msra.mxu0 %v7768_v5  ;;  %2313 = vmatpush1.bf16.msra.mxu1 %v7769_v6  ;;  %v811_v30 = vshll.u32 %v8705_v24, 16  ;;  %v808_v31 = vrot.slane %v806_v28, 1  ;;  %v7785_v34 = vld [vmem:[#allocation5 + $0xd0] sm:$0xff]   ;;  %v11649_v39 = vsel %vm8727_vm3, 4294967295, %v11648_v39  ;;  %v8733_v40 = vld [vmem:[%s8658_s16 + $0x18] sm:$0xf]  ;;  %s11429_s18 = scalar_lea.hbm %s12038_s21, %s6733_s10  ;;  %p8231_p0 = scmp.lt.s32.totalorder %s11431_s7, %s8229_s15 }
  0xea   : > { %2065 = vmatprep.subr.bf16.mxu0 %v11498_v0  ;;  %2314 = vmatprep.subr.bf16.mxu1 %v11498_v0  ;;  %11650 = vst [vmem:[#allocation20_spill] sm:$0xff] %v11649_v39  ;;  %v405_v41 = vld [vmem:[%s8658_s16 + $0x1c] sm:$0x1]  ;;  %v8737_v42 = vld [vmem:[%s8658_s16 + $0x30] sm:$0xf]  ;;  %v7788_v45 = vld [vmem:[#allocation5 + $0x60] sm:$0xff]   ;;  %p8227_p11 = pneg %p8226_p10 }
  0xeb   : > { %2340 = vmatprep.mubr.bf16.mxu1 %v8715_v29  ;;  %v8720_v33 = vrot.slane %v811_v30, 1  ;;  %v809_v35 = vor.u32 %v808_v31, %v804_v27  ;;  %v8740_v43 = vld [vmem:[%s8658_s16 + $0x34] sm:$0xf]  ;;  %v8743_v44 = vld [vmem:[%s8658_s16 + $0x38] sm:$0xf]  ;;  %v6688_v46 = vrot.slane %v8737_v42, 9  ;;  %v6290_v50 = vcombine.low %v8733_v40, %v405_v41 }
  0xec   : > { %v5581_v47 = vrot.slane %v8740_v43, 5  ;;  %v5584_v48 = vrot.slane %v8743_v44, 5  ;;  %v7789_v49 = vld [vmem:[#allocation5 + $0xe0] sm:$0xff]   ;;  %v821_v51 = vshll.u32 %v8715_v29, 16  ;;  %v7790_v54 = vld [vmem:[#allocation5 + $0x68] sm:$0xff]   ;;  %v819_v58 = vshrl.u32 %v8715_v29, 16 }
  0xed   : > { %2066 = vmatpush1.bf16.msra.mxu0 %v7770_v7  ;;  %2315 = vmatpush1.bf16.msra.mxu1 %v7771_v8  ;;  %v814_v36 = vsel %vm802_vm0, %v809_v35, %v8720_v33  ;;  %v7791_v56 = vld [vmem:[#allocation5 + $0xe8] sm:$0xff]   ;;  %v826_v60 = vshll.u32 %v6290_v50, 16  ;;  %v7792_v61 = vld [vmem:[#allocation5 + $0x70] sm:$0xff]   ;;  %v815_v1 = vshrl.u32 %v8705_v24, 16  ;;  %v1075_v2 = vrot.slane %v8705_v24, 1  ;;  %v7794_v8 = vld [vmem:[#allocation5 + $0x78] sm:$0xff]  }
  0xee   : > { %2067 = vmatprep.subr.bf16.mxu0 %v11498_v0  ;;  %2316 = vmatprep.subr.bf16.mxu1 %v11498_v0  ;;  %v8754_v52 = vsel %vm8727_vm3, %v6688_v46, %v5581_v47  ;;  %v5583_v53 = vrot.slane %v5581_v47, 4  ;;  %v823_v59 = vrot.slane %v821_v51, 1  ;;  %v7793_v62 = vld [vmem:[#allocation5 + $0xf0] sm:$0xff]   ;;  %v8777_v7 = vld [vmem:[%s8658_s16 + $0x58] sm:$0xf]  ;;  %v1077_v24 = vrot.slane %v8715_v29, 1 }
  0xef   : > { %2091 = vmatprep.mubr.bf16.mxu0 %v814_v36  ;;  %11651 = vst [vmem:[#allocation21_spill] sm:$0xff] %v8754_v52  ;;  %v828_v4 = vrot.slane %v826_v60, 1  ;;  %v8771_v5 = vld [vmem:[%s8658_s16 + $0x50] sm:$0xf]  ;;  %v8774_v6 = vld [vmem:[%s8658_s16 + $0x54] sm:$0xf]  ;;  %v1076_v21 = vsel %vm1073_vm4, %v1074_v63, %v1075_v2 }
  0xf0   : > { %v8758_v55 = vsel %vm8727_vm3, %v5583_v53, %v5584_v48  ;;  %v824_v3 = vor.u32 %v823_v59, %v819_v58  ;;  %v7799_v27 = vld [vmem:[#allocation5 + $0x100] sm:$0xff]   ;;  %v8799_v28 = vrot.slane %v6290_v50, 1  ;;  %v8816_v35 = vld [vmem:[%s8658_s16 + $0x28] sm:$0xf]  ;;  %v413_v47 = vld [vmem:[%s8658_s16 + $0x3c] sm:$0x1]  ;;  %v6327_v48 = vcombine.low %v8695_v20, %v8702_v23 }
  0xf1   : > { %2068 = vmatpush1.bf16.msra.mxu0 %v7772_v9  ;;  %2317 = vmatpush1.bf16.msra.mxu1 %v7773_v10  ;;  %11652 = vst [vmem:[#allocation22_spill] sm:$0xff] %v8758_v55  ;;  %v830_v9 = vshrl.u32 %v6290_v50, 16  ;;  %v6690_v10 = vrot.slane %v8771_v5, 9  ;;  %v8842_v53 = vld [vmem:[%s8658_s16 + $0x70] sm:$0xf]  ;;  %v7895_v39 = vld [vmem:[#allocation5 + $0x1e8] sm:$0xff]  }
  0xf2   : > { %2069 = vmatprep.subr.bf16.mxu0 %v11498_v0  ;;  %2318 = vmatprep.subr.bf16.mxu1 %v11498_v0  ;;  %v8848_v59 = vld [vmem:[%s8658_s16 + $0x78] sm:$0xf]  ;;  %v6692_v60 = vrot.slane %v8842_v53, 9  ;;  %v7809_v23 = vld [vmem:[#allocation5 + $0x110] sm:$0xff]   ;;  %v9078_v52 = vld [vmem:[%s8658_s16 + $0x68] sm:$0xf] }
  0xf3   : > { %v8801_v30 = vor.u32 %v830_v9, %v828_v4  ;;  %s8230_s17 = scalar_lea.vmem %s8229_s15, 8192 }
  0xf4   : > { %p8232_p7 = scmp.lt.s32.totalorder %s8230_s17, %s8224_s2 }
  0xf5   : > { %2070 = vmatpush1.bf16.msra.mxu0 %v7774_v11  ;;  %2319 = vmatpush1.bf16.msra.mxu1 %v7775_v12  ;;  %v5595_v11 = vrot.slane %v8774_v6, 5  ;;  %v5598_v12 = vrot.slane %v8777_v7, 5  ;;  %11655 = vst [vmem:[#allocation25_spill] sm:$0xff] %v8801_v30  ;;  %v1198_v41 = vunpack.c.l.b16 %v8801_v30 }
  0xf6   : > { %2071 = vmatprep.subr.bf16.mxu0 %v11498_v0  ;;  %2320 = vmatprep.subr.bf16.mxu1 %v11498_v0  ;;  %p8233_p5 = por %p8232_p7, %p8231_p0 }
  0xf8   : > { %p8234_p8 = pnand %p8233_p5, %p8227_p11 }
  0xf9   : > { %2072 = vmatpush1.bf16.msra.mxu0 %v7776_v13  ;;  %2321 = vmatpush1.bf16.msra.mxu1 %v7777_v14  ;;  %v7795_v13 = vld [vmem:[#allocation5 + $0xf8] sm:$0xff]   ;;  %v817_v14 = vor.u32 %v815_v1, %v8720_v33  ;;  %v5612_v1 = vrot.slane %v8848_v59, 5 }
  0xfa   : > { %2073 = vmatprep.subr.bf16.mxu0 %v11498_v0  ;;  %2322 = vmatprep.subr.bf16.mxu1 %v11498_v0 }
  0xfd   : > { %2074 = vmatpush1.bf16.msra.mxu0 %v7778_v15  ;;  %2323 = vmatpush1.bf16.msra.mxu1 %v7779_v16  ;;  %v8785_v15 = vld [vmem:[%s8658_s16 + $0x24] sm:$0xf]  ;;  %v8789_v16 = vsel %vm802_vm0, %v824_v3, %v828_v4  ;;  %v1199_v4 = vunpack.c.l.b16 %v8799_v28 }
  0xfe   : > { %2075 = vmatprep.subr.bf16.mxu0 %v11498_v0  ;;  %2324 = vmatprep.subr.bf16.mxu1 %v11498_v0  ;;  %11653 = vst [vmem:[#allocation23_spill] sm:$0xff] %v8789_v16  ;;  %v6328_v33 = vcombine.low %v817_v14, %v8789_v16  ;;  %v6337_v20 = vcombine.low %v8785_v15, %v8816_v35 }
 0x101   : > { %2076 = vmatpush1.bf16.msra.mxu0 %v7780_v17  ;;  %2325 = vmatpush1.bf16.msra.mxu1 %v7781_v18  ;;  %v406_v17 = vld [vmem:[%s8658_s16 + $0x20] sm:$0xf]  ;;  %v8794_v18 = vsel %vm8727_vm3, %v6690_v10, %v5595_v11 }
 0x102   : > { %2077 = vmatprep.subr.bf16.mxu0 %v11498_v0  ;;  %2326 = vmatprep.subr.bf16.mxu1 %v11498_v0  ;;  %11654 = vst [vmem:[#allocation24_spill] sm:$0xff] %v8794_v18  ;;  %v8804_v31 = vcombine.low %v406_v17, %v8785_v15  ;;  %v6330_v29 = vcombine.low %v8733_v40, %v406_v17  ;;  %v7817_v15 = vld [vmem:[#allocation5 + $0x118] sm:$0xff]  }
 0x104   : > { %11656 = vst [vmem:[#allocation26_spill] sm:$0xff] %v8804_v31  ;;  %v836_v46 = vshll.u32 %v8804_v31, 16  ;;  %v834_v50 = vshrl.u32 %v8804_v31, 16 }
 0x105   : > { %2078 = vmatpush1.bf16.msra.mxu0 %v7782_v19  ;;  %2327 = vmatpush1.bf16.msra.mxu1 %v7783_v26  ;;  %v5597_v19 = vrot.slane %v5595_v11, 4  ;;  %v409_v26 = vld [vmem:[%s8658_s16 + $0x2c] sm:$0x1] }
 0x106   : > { %2079 = vmatprep.subr.bf16.mxu0 %v11498_v0  ;;  %2328 = vmatprep.subr.bf16.mxu1 %v11498_v0  ;;  %v8821_v36 = vcombine.low %v8816_v35, %v409_v26  ;;  %v838_v58 = vrot.slane %v836_v46, 1 }
 0x108   : > { %v841_v51 = vshll.u32 %v8821_v36, 16  ;;  %v839_v9 = vor.u32 %v838_v58, %v834_v50  ;;  %v845_v26 = vshrl.u32 %v8821_v36, 16  ;;  %v8898_v50 = vld [vmem:[%s8658_s16 + $0x98] sm:$0xf] }
 0x109   : > { %2080 = vmatpush1.bf16.msra.mxu0 %v7784_v32  ;;  %2329 = vmatpush1.bf16.msra.mxu1 %v7785_v34  ;;  %v8808_v32 = vsel %vm8727_vm3, %v5597_v19, %v5598_v12  ;;  %v6336_v19 = vcombine.low %v8708_v25, %v8733_v40  ;;  %v417_v25 = vld [vmem:[%s8658_s16 + $0x4c] sm:$0x1]  ;;  %v8886_v40 = vld [vmem:[%s8658_s16 + $0x90] sm:$0xf] }
 0x10a   : > { %2081 = vmatprep.subr.bf16.mxu0 %v11498_v0  ;;  %2330 = vmatprep.subr.bf16.mxu1 %v11498_v0  ;;  %11657 = vst [vmem:[#allocation27_spill] sm:$0xff] %v8808_v32  ;;  %v843_v10 = vrot.slane %v841_v51, 1  ;;  %v6694_v51 = vrot.slane %v8886_v40, 9 }
 0x10c   : > { %v8889_v46 = vor.u32 %v845_v26, %v843_v10 }
 0x10d   : > { %2082 = vmatpush1.bf16.msra.mxu0 %v7786_v37  ;;  %2331 = vmatpush1.bf16.msra.mxu1 %v7787_v38  ;;  %v8825_v37 = vsel %vm1073_vm4, %v1077_v24, %v8799_v28  ;;  %v1192_v38 = vunpack.c.h.b16 %v8789_v16 }
 0x10e   : > { %2083 = vmatprep.subr.bf16.mxu0 %v11498_v0  ;;  %2332 = vmatprep.subr.bf16.mxu1 %v11498_v0  ;;  %11660 = vst [vmem:[#allocation30_spill] sm:$0xff] %v8889_v46 }
 0x111   : > { %2084 = vmatpush1.bf16.msra.mxu0 %v7788_v45  ;;  %2333 = vmatpush1.bf16.msra.mxu1 %v7789_v49  ;;  %v7806_v45 = vld [vmem:[#allocation5 + $0x108] sm:$0xff]   ;;  %v6329_v49 = vcombine.low %v1075_v2, %v8825_v37 }
 0x112   : > { %2085 = vmatprep.subr.bf16.mxu0 %v11498_v0  ;;  %2334 = vmatprep.subr.bf16.mxu1 %v11498_v0 }
 0x115   : > { %2086 = vmatpush1.bf16.msra.mxu0 %v7790_v54  ;;  %2335 = vmatpush1.bf16.msra.mxu1 %v7791_v56  ;;  %v8845_v54 = vld [vmem:[%s8658_s16 + $0x74] sm:$0xf]  ;;  %v1320_v56 = vpack.c.b16 %v1198_v41, %v1192_v38  ;;  %v414_v38 = vld [vmem:[%s8658_s16 + $0x40] sm:$0xf] }
 0x116   : > { %2087 = vmatprep.subr.bf16.mxu0 %v11498_v0  ;;  %2336 = vmatprep.subr.bf16.mxu1 %v11498_v0  ;;  %v7821_v41 = vld [vmem:[#allocation5 + $0x120] sm:$0xff]  }
 0x119   : > { %2088 = vmatpush1.bf16.msra.mxu0 %v7792_v61  ;;  %2337 = vmatpush1.bf16.msra.mxu1 %v7793_v62  ;;  %v5609_v61 = vrot.slane %v8845_v54, 5  ;;  %v6294_v62 = vcombine.low %v8743_v44, %v413_v47 }
 0x11a   : > { %2089 = vmatprep.subr.bf16.mxu0 %v11498_v0  ;;  %2338 = vmatprep.subr.bf16.mxu1 %v11498_v0 }
 0x11b   : > { %v8860_v2 = vsel %vm8727_vm3, %v6692_v60, %v5609_v61  ;;  %v5611_v3 = vrot.slane %v5609_v61, 4  ;;  %v856_v14 = vshll.u32 %v6294_v62, 16  ;;  %v860_v47 = vshrl.u32 %v6294_v62, 16  ;;  %v7827_v60 = vld [vmem:[#allocation5 + $0x128] sm:$0xff]  }
 0x11c   : > { %11658 = vst [vmem:[#allocation28_spill] sm:$0xff] %v8860_v2 }
 0x11d   : > { %2090 = vmatpush1.bf16.msra.mxu0 %v7794_v8  ;;  %2339 = vmatpush1.bf16.msra.mxu1 %v7795_v13  ;;  %v1193_v8 = vunpack.c.h.b16 %v8825_v37  ;;  %v8866_v11 = vsel %vm8727_vm3, %v5611_v3, %v5612_v1  ;;  %v8915_v1 = vrot.slane %v6294_v62, 1 }
 0x11e   : > { %2557 = vmatprep.subr.bf16.mxu0 %v11498_v0  ;;  %2806 = vmatprep.subr.bf16.mxu1 %v11498_v0  ;;  %11659 = vst [vmem:[#allocation29_spill] sm:$0xff] %v8866_v11  ;;  %v7873_v11 = vld [vmem:[#allocation5 + $0x1a8] sm:$0xff]  }
 0x11f   : > { %v1321_v24 = vpack.c.b16 %v1199_v4, %v1193_v8  ;;  %11664 = vst [vmem:[#allocation34_spill] sm:$0xff] %v8915_v1 }
 0x120   : > { %2092 = vmatmul.mubr.bf16.vlgmr.msra.gmra.mrb[0].mxu0 %v8699_v22  ;;  %2341 = vmatmul.mubr.bf16.vlgmr.msra.gmra.mrb[0].mxu1 %v1076_v21  ;;  %v8832_v22 = vcombine.low %v8737_v42, %v8740_v43  ;;  %v8875_v21 = vld [vmem:[%s8658_s16 + $0x44] sm:$0xf] }
 0x121   : > { %2558 = vmatpush1.bf16.msra.mxu0 %v7799_v27  ;;  %2099 = vmatprep.mubr.bf16.mxu0 %v6328_v33  ;;  %v8879_v27 = vsel %vm802_vm0, %v839_v9, %v843_v10  ;;  %v7832_v10 = vld [vmem:[#allocation5 + $0x130] sm:$0xff]  }
 0x122   : > { %2348 = vmatprep.mubr.bf16.mxu1 %v6330_v29  ;;  %2559 = vmatprep.subr.bf16.mxu0 %v11498_v0  ;;  %v851_v63 = vshll.u32 %v8832_v22, 16  ;;  %v849_v12 = vshrl.u32 %v8832_v22, 16  ;;  %v858_v29 = vrot.slane %v856_v14, 1 }
 0x124   : > { %v853_v13 = vrot.slane %v851_v63, 1  ;;  %v8912_v63 = vld [vmem:[%s8658_s16 + $0x48] sm:$0xf]  ;;  %v8925_v8 = vor.u32 %v860_v47, %v858_v29 }
 0x125   : > { %2560 = vmatpush1.bf16.msra.mxu0 %v7806_v45  ;;  %v1080_v45 = vrot.slane %v8804_v31, 1  ;;  %v8928_v9 = vcombine.low %v8912_v63, %v417_v25  ;;  %v8957_v25 = vcombine.low %v8771_v5, %v8774_v6  ;;  %v7863_v47 = vld [vmem:[#allocation5 + $0x188] sm:$0xff]  }
 0x126   : > { %2561 = vmatprep.subr.bf16.mxu0 %v11498_v0  ;;  %v854_v33 = vor.u32 %v853_v13, %v849_v12  ;;  %11667 = vst [vmem:[#allocation37_spill] sm:$0xff] %v8925_v8  ;;  %v6339_v12 = vcombine.low %v8743_v44, %v414_v38 }
 0x127   : > { %v879_v34 = vshrl.u32 %v8957_v25, 16 }
 0x128   : > { %2100 = vmatmul.mubr.bf16.gmra.mrb[4].mxu0 %v6327_v48  ;;  %2349 = vmatmul.mubr.bf16.gmra.mrb[4].mxu1 %v6329_v49  ;;  %v8892_v48 = vcombine.low %v414_v38, %v8875_v21  ;;  %v8895_v49 = vld [vmem:[%s8658_s16 + $0x94] sm:$0xf]  ;;  %v8906_v58 = vsel %vm802_vm0, %v854_v33, %v858_v29  ;;  %v871_v33 = vshll.u32 %v8928_v9, 16  ;;  %v421_v29 = vld [vmem:[%s8658_s16 + $0x5c] sm:$0x1] }
 0x129   : > { %2107 = vmatprep.mubr.bf16.mxu0 %v1320_v56  ;;  %2356 = vmatprep.mubr.bf16.mxu1 %v6337_v20  ;;  %v8903_v56 = vrot.slane %v8821_v36, 1  ;;  %11663 = vst [vmem:[#allocation33_spill] sm:$0xff] %v8906_v58  ;;  %v5623_v61 = vrot.slane %v8895_v49, 5  ;;  %v5626_v20 = vrot.slane %v8898_v50, 5  ;;  %v8923_v4 = vcombine.low %v8889_v46, %v8906_v58  ;;  %v7838_v38 = vld [vmem:[#allocation5 + $0x138] sm:$0xff]  }
 0x12a   : > { %2562 = vmatpush1.bf16.msra.mxu0 %v7809_v23  ;;  %11661 = vst [vmem:[#allocation31_spill] sm:$0xff] %v8892_v48  ;;  %v1083_v23 = vrot.slane %v8832_v22, 1  ;;  %v864_v26 = vshrl.u32 %v8892_v48, 16  ;;  %v873_v17 = vrot.slane %v871_v33, 1  ;;  %v9011_v33 = vcombine.low %v8740_v43, %v8743_v44  ;;  %v422_v44 = vld [vmem:[%s8658_s16 + $0x60] sm:$0xf] }
 0x12b   : > { %2563 = vmatprep.subr.bf16.mxu0 %v11498_v0  ;;  %11662 = vst [vmem:[#allocation32_spill] sm:$0xff] %v8903_v56  ;;  %v8919_v36 = vsel %vm8727_vm3, %v6694_v51, %v5623_v61  ;;  %v5625_v3 = vrot.slane %v5623_v61, 4  ;;  %11666 = vst [vmem:[#allocation36_spill] sm:$0xff] %v8923_v4  ;;  %v8933_v62 = vsel %vm1073_vm4, %v1080_v45, %v8903_v56  ;;  %v8961_v51 = vld [vmem:[%s8658_s16 + $0xb0] sm:$0xf]  ;;  %v7842_v61 = vld [vmem:[#allocation5 + $0x140] sm:$0xff]  }
 0x12c   : > { %11665 = vst [vmem:[#allocation35_spill] sm:$0xff] %v8919_v36  ;;  %11668 = vst [vmem:[#allocation38_spill] sm:$0xff] %v8933_v62  ;;  %v11676_v36 = vmov 0  }
 0x12d   : > { %v8938_v13 = vsel %vm8727_vm3, %v5625_v3, %v5626_v20  ;;  %v8968_v20 = vld [vmem:[%s8658_s16 + $0xb4] sm:$0xf]  ;;  %11677 = vst [vmem:[#allocation46_spill] sm:$0xff] %v9011_v33 }
 0x12e   : > { %2564 = vmatpush1.bf16.msra.mxu0 %v7817_v15  ;;  %11669 = vst [vmem:[#allocation39_spill] sm:$0xff] %v8938_v13  ;;  %v7862_v15 = vld [vmem:[#allocation5 + $0x180] sm:$0xff]   ;;  %v7856_v13 = vld [vmem:[#allocation5 + $0x150] sm:$0xff]  }
 0x12f   : > { %2565 = vmatprep.subr.bf16.mxu0 %v11498_v0  ;;  %2807 = vmatpush1.bf16.msra.mxu1 %v7862_v15  ;;  %v5637_v15 = vrot.slane %v8968_v20, 5 }
 0x130   : > { %2108 = vmatmul.mubr.bf16.gmra.mrb[8].mxu0 %v6336_v19  ;;  %2357 = vmatmul.mubr.bf16.gmra.mrb[8].mxu1 %v1321_v24  ;;  %v1204_v19 = vunpack.c.h.b16 %v8906_v58  ;;  %v1206_v24 = vunpack.c.l.b16 %v8925_v8  ;;  %v9120_v8 = vld [vmem:[%s8658_s16 + $0xf0] sm:$0xf] }
 0x131   : > { %2115 = vmatprep.mubr.bf16.mxu0 %v8879_v27  ;;  %2364 = vmatprep.mubr.bf16.mxu1 %v8832_v22  ;;  %v866_v22 = vshll.u32 %v8892_v48, 16 }
 0x132   : > { %2566 = vmatpush1.bf16.msra.mxu0 %v7821_v41  ;;  %v8953_v41 = vsel %vm1073_vm4, %v1083_v23, %v8915_v1  ;;  %2808 = vmatprep.subr.bf16.mxu1 %v11498_v0  ;;  %v8975_v3 = vpack.c.b16 %v1206_v24, %v1204_v19  ;;  %v5639_v19 = vrot.slane %v5637_v15, 4  ;;  %v7868_v24 = vld [vmem:[#allocation5 + $0x190] sm:$0xff]  }
 0x133   : > { %2567 = vmatprep.subr.bf16.mxu0 %v11498_v0  ;;  %11670 = vst [vmem:[#allocation40_spill] sm:$0xff] %v8953_v41  ;;  %v868_v45 = vrot.slane %v866_v22, 1  ;;  %v8973_v23 = vcombine.low %v8903_v56, %v8953_v41  ;;  %v6345_v22 = vcombine.low %v8875_v21, %v8912_v63  ;;  %2809 = vmatpush1.bf16.msra.mxu1 %v7863_v47 }
 0x134   : > { %11673 = vst [vmem:[#allocation43_spill] sm:$0xff] %v8975_v3  ;;  %2810 = vmatprep.subr.bf16.mxu1 %v11498_v0 }
 0x135   : > { %11672 = vst [vmem:[#allocation42_spill] sm:$0xff] %v8973_v23  ;;  %v869_v47 = vor.u32 %v868_v45, %v864_v26  ;;  %v7870_v26 = vld [vmem:[#allocation5 + $0x198] sm:$0xff]   ;;  %v9014_v45 = vld [vmem:[%s8658_s16 + $0x64] sm:$0xf] }
 0x136   : > { %2568 = vmatpush1.bf16.msra.mxu0 %v7827_v60  ;;  %v8965_v60 = vcombine.low %v8816_v35, %v8737_v42  ;;  %v881_v42 = vshll.u32 %v8957_v25, 16  ;;  %v6696_v35 = vrot.slane %v8961_v51, 9 }
 0x137   : > { %2569 = vmatprep.subr.bf16.mxu0 %v11498_v0  ;;  %2811 = vmatpush1.bf16.msra.mxu1 %v7868_v24 }
 0x138   : > { %2116 = vmatmul.mubr.bf16.gmra.mrb[12].mxu0 %v8804_v31  ;;  %2365 = vmatmul.mubr.bf16.gmra.mrb[12].mxu1 %v8933_v62  ;;  %11671 = vst [vmem:[#allocation41_spill] sm:$0xff] %v8965_v60  ;;  %v8993_v21 = vsel %vm8727_vm3, %v6696_v35, %v5637_v15  ;;  %v883_v35 = vrot.slane %v881_v42, 1  ;;  %v9022_v42 = vsel %vm802_vm0, %v869_v47, %v873_v17  ;;  %v9043_v47 = vld [vmem:[%s8658_s16 + $0xd4] sm:$0xf] }
 0x139   : > { %2123 = vmatprep.mubr.bf16.mxu0 %v8923_v4  ;;  %2372 = vmatprep.mubr.bf16.mxu1 %v6339_v12  ;;  %v8983_v12 = vld [vmem:[%s8658_s16 + $0xb8] sm:$0xf]  ;;  %11674 = vst [vmem:[#allocation44_spill] sm:$0xff] %v8993_v21  ;;  %11679 = vst [vmem:[#allocation48_spill] sm:$0xff] %v9022_v42  ;;  %v425_v21 = vld [vmem:[%s8658_s16 + $0x6c] sm:$0x1] }
 0x13a   : > { %2570 = vmatpush1.bf16.msra.mxu0 %v7832_v10  ;;  %v8980_v10 = vcombine.low %v8777_v7, %v421_v29  ;;  %v5640_v14 = vrot.slane %v8983_v12, 5  ;;  %v1205_v29 = vunpack.c.h.b16 %v8953_v41  ;;  %2812 = vmatprep.subr.bf16.mxu1 %v11676_v36  ;;  %v884_v24 = vor.u32 %v883_v35, %v879_v34  ;;  %v9046_v35 = vld [vmem:[%s8658_s16 + $0xd8] sm:$0xf]  ;;  %v9194_v41 = vld [vmem:[%s8658_s16 + $0xa4] sm:$0xf] }
 0x13b   : > { %2571 = vmatprep.subr.bf16.mxu0 %v11498_v0  ;;  %2813 = vmatpush1.bf16.msra.mxu1 %v7870_v26  ;;  %v7889_v4 = vld [vmem:[#allocation5 + $0x1d8] sm:$0xff]  }
 0x13c   : > { %v886_v15 = vshll.u32 %v8980_v10, 16  ;;  %v9004_v57 = vsel %vm8727_vm3, %v5639_v19, %v5640_v14  ;;  %v1086_v14 = vrot.slane %v8892_v48, 1  ;;  %v9025_v19 = vrot.slane %v8928_v9, 1  ;;  %2814 = vmatprep.subr.bf16.mxu1 %v11676_v36 }
 0x13d   : > { %11675 = vst [vmem:[#allocation45_spill] sm:$0xff] %v9004_v57  ;;  %v7858_v57 = vld [vmem:[#allocation5 + $0x158] sm:$0xff]   ;;  %v9073_v55 = vrot.slane %v8980_v10, 1 }
 0x13e   : > { %2572 = vmatpush1.bf16.msra.mxu0 %v7838_v38  ;;  %v1207_v38 = vunpack.c.l.b16 %v8915_v1  ;;  %11680 = vst [vmem:[#allocation49_spill] sm:$0xff] %v9025_v19  ;;  %v888_v43 = vrot.slane %v886_v15, 1  ;;  %v9059_v2 = vsel %vm1073_vm4, %v1086_v14, %v9025_v19 }
 0x13f   : > { %2573 = vmatprep.subr.bf16.mxu0 %v11498_v0  ;;  %v7848_v0 = vld [vmem:[#allocation5 + $0x148] sm:$0xff]   ;;  %11683 = vst [vmem:[#allocation52_spill] sm:$0xff] %v9059_v2  ;;  %11686 = vst [vmem:[#allocation55_spill] sm:$0xff] %v9073_v55 }
 0x140   : > { %2124 = vmatmul.mubr.bf16.gmra.mrb[16].mxu0 %v8965_v60  ;;  %2373 = vmatmul.mubr.bf16.gmra.mrb[16].mxu1 %v8973_v23  ;;  %v9050_v15 = vsel %vm802_vm0, %v884_v24, %v888_v43  ;;  %v6347_v24 = vcombine.low %v8777_v7, %v422_v44  ;;  %v9280_v60 = vcombine.low %v8961_v51, %v8968_v20 }
 0x141   : > { %2131 = vmatprep.mubr.bf16.mxu0 %v8975_v3  ;;  %2380 = vmatprep.mubr.bf16.mxu1 %v6345_v22  ;;  %v875_v22 = vshrl.u32 %v8928_v9, 16  ;;  %v7872_v9 = vld [vmem:[#allocation5 + $0x1a0] sm:$0xff]   ;;  %11682 = vst [vmem:[#allocation51_spill] sm:$0xff] %v9050_v15 }
 0x142   : > { %2574 = vmatpush1.bf16.msra.mxu0 %v7842_v61  ;;  %v9017_v61 = vpack.c.b16 %v1207_v38, %v1205_v29  ;;  %v890_v29 = vshrl.u32 %v8980_v10, 16  ;;  %v9040_v38 = vld [vmem:[%s8658_s16 + $0xd0] sm:$0xf]  ;;  %2815 = vmatpush1.bf16.msra.mxu1 %v7872_v9  ;;  %v1089_v9 = vrot.slane %v8957_v25, 1  ;;  %v7869_v10 = vld [vmem:[#allocation5 + $0x160] sm:$0xff]  }
 0x143   : > { %2575 = vmatprep.subr.bf16.mxu0 %v11676_v36  ;;  %v9034_v34 = vor.u32 %v875_v22, %v873_v17  ;;  %v6698_v26 = vrot.slane %v9040_v38, 9  ;;  %v5651_v17 = vrot.slane %v9043_v47, 5  ;;  %v5654_v22 = vrot.slane %v9046_v35, 5  ;;  %2816 = vmatprep.subr.bf16.mxu1 %v11676_v36 }
 0x144   : > { %11678 = vst [vmem:[#allocation47_spill] sm:$0xff] %v9017_v61  ;;  %v9075_v14 = vor.u32 %v890_v29, %v888_v43  ;;  %v429_v29 = vld [vmem:[%s8658_s16 + $0x7c] sm:$0x1]  ;;  %v433_v43 = vld [vmem:[%s8658_s16 + $0x8c] sm:$0x1] }
 0x145   : > { %11681 = vst [vmem:[#allocation50_spill] sm:$0xff] %v9034_v34  ;;  %v5653_v32 = vrot.slane %v5651_v17, 4  ;;  %v9069_v18 = vcombine.low %v9034_v34, %v9050_v15  ;;  %v9114_v34 = vld [vmem:[%s8658_s16 + $0x80] sm:$0xf] }
 0x146   : > { %2576 = vmatpush1.bf16.msra.mxu0 %v7848_v0  ;;  %v9037_v0 = vcombine.low %v422_v44, %v9014_v45  ;;  %11687 = vst [vmem:[#allocation56_spill] sm:$0xff] %v9075_v14  ;;  %v9081_v44 = vcombine.low %v9078_v52, %v425_v21  ;;  %2817 = vmatpush1.bf16.msra.mxu1 %v7873_v11  ;;  %v7878_v21 = vld [vmem:[#allocation5 + $0x1b0] sm:$0xff]   ;;  %v1218_v11 = vunpack.c.l.b16 %v9075_v14  ;;  %v9117_v14 = vld [vmem:[%s8658_s16 + $0x88] sm:$0xf] }
 0x147   : > { %2577 = vmatprep.subr.bf16.mxu0 %v11676_v36  ;;  %11685 = vst [vmem:[#allocation54_spill] sm:$0xff] %v9069_v18  ;;  %2818 = vmatprep.subr.bf16.mxu1 %v11676_v36  ;;  %v9152_v58 = vcombine.low %v9117_v14, %v433_v43 }
 0x148   : > { %2132 = vmatmul.mubr.bf16.gmra.mrb[20].mxu0 %v9011_v33  ;;  %2381 = vmatmul.mubr.bf16.gmra.mrb[20].mxu1 %v9017_v61  ;;  %v901_v61 = vshll.u32 %v9081_v44, 16 }
 0x149   : > { %2139 = vmatprep.mubr.bf16.mxu0 %v9022_v42  ;;  %2388 = vmatprep.mubr.bf16.mxu1 %v8957_v25  ;;  %v9090_v25 = vsel %vm8727_vm3, %v5653_v32, %v5654_v22  ;;  %v1216_v32 = vunpack.c.h.b16 %v9050_v15  ;;  %v9107_v22 = vld [vmem:[%s8658_s16 + $0x84] sm:$0xf]  ;;  %v7879_v15 = vld [vmem:[#allocation5 + $0x1b8] sm:$0xff]   ;;  %v9222_v33 = vrot.slane %v9152_v58, 1 }
 0x14a   : > { %2578 = vmatpush1.bf16.msra.mxu0 %v7856_v13  ;;  %v9064_v13 = vsel %vm8727_vm3, %v6698_v26, %v5651_v17  ;;  %v896_v26 = vshll.u32 %v9037_v0, 16  ;;  %v9086_v17 = vcombine.low %v8842_v53, %v8845_v54  ;;  %11688 = vst [vmem:[#allocation57_spill] sm:$0xff] %v9090_v25  ;;  %v894_v25 = vshrl.u32 %v9037_v0, 16  ;;  %2819 = vmatpush1.bf16.msra.mxu1 %v7878_v21 }
 0x14b   : > { %2579 = vmatprep.subr.bf16.mxu0 %v11676_v36  ;;  %11684 = vst [vmem:[#allocation53_spill] sm:$0xff] %v9064_v13  ;;  %2820 = vmatprep.subr.bf16.mxu1 %v11676_v36  ;;  %v1219_v21 = vunpack.c.l.b16 %v9073_v55 }
 0x14c   : > { %v898_v13 = vrot.slane %v896_v26, 1  ;;  %v911_v23 = vshll.u32 %v9086_v17, 16  ;;  %v6353_v26 = vcombine.low %v9014_v45, %v9078_v52  ;;  %v9148_v45 = vld [vmem:[%s8658_s16 + $0xf8] sm:$0xf]  ;;  %v909_v1 = vshrl.u32 %v9086_v17, 16 }
 0x14e   : > { %2580 = vmatpush1.bf16.msra.mxu0 %v7858_v57  ;;  %v9101_v57 = vsel %vm1073_vm4, %v1089_v9, %v9073_v55  ;;  %v7877_v9 = vld [vmem:[#allocation5 + $0x168] sm:$0xff]   ;;  %v903_v55 = vrot.slane %v901_v61, 1  ;;  %2821 = vmatpush1.bf16.msra.mxu1 %v7879_v15  ;;  %v7884_v61 = vld [vmem:[#allocation5 + $0x1c0] sm:$0xff]   ;;  %v9170_v15 = vcombine.low %v8774_v6, %v8777_v7 }
 0x14f   : > { %2581 = vmatprep.subr.bf16.mxu0 %v11676_v36  ;;  %11689 = vst [vmem:[#allocation58_spill] sm:$0xff] %v9101_v57  ;;  %2822 = vmatprep.subr.bf16.mxu1 %v11676_v36 }
 0x150   : > { %2140 = vmatmul.mubr.bf16.gmra.mrb[24].mxu0 %v8892_v48  ;;  %2389 = vmatmul.mubr.bf16.gmra.mrb[24].mxu1 %v9059_v2  ;;  %v9137_v48 = vpack.c.b16 %v1218_v11, %v1216_v32  ;;  %v899_v11 = vor.u32 %v898_v13, %v894_v25  ;;  %v5668_v2 = vrot.slane %v9148_v45, 5  ;;  %11694 = vst [vmem:[#allocation63_spill] sm:$0xff] %v9170_v15  ;;  %v437_v25 = vld [vmem:[%s8658_s16 + $0x9c] sm:$0x1] }
 0x151   : > { %2147 = vmatprep.mubr.bf16.mxu0 %v9069_v18  ;;  %2396 = vmatprep.mubr.bf16.mxu1 %v6347_v24  ;;  %v9125_v24 = vcombine.low %v8912_v63, %v8771_v5  ;;  %v9130_v18 = vcombine.low %v8848_v59, %v429_v29  ;;  %v9142_v5 = vcombine.low %v9114_v34, %v9107_v22  ;;  %v9145_v63 = vld [vmem:[%s8658_s16 + $0xf4] sm:$0xf]  ;;  %v1217_v29 = vunpack.c.h.b16 %v9101_v57 }
 0x152   : > { %2582 = vmatpush1.bf16.msra.mxu0 %v7869_v10  ;;  %v9135_v10 = vcombine.low %v9025_v19, %v9101_v57  ;;  %11692 = vst [vmem:[#allocation61_spill] sm:$0xff] %v9137_v48  ;;  %v6700_v19 = vrot.slane %v9120_v8, 9  ;;  %v5665_v32 = vrot.slane %v9145_v63, 5  ;;  %v913_v57 = vrot.slane %v911_v23, 1  ;;  %2823 = vmatpush1.bf16.msra.mxu1 %v7884_v61 }
 0x153   : > { %2583 = vmatprep.subr.bf16.mxu0 %v11676_v36  ;;  %11690 = vst [vmem:[#allocation59_spill] sm:$0xff] %v9125_v24  ;;  %v916_v43 = vshll.u32 %v9130_v18, 16  ;;  %v1092_v23 = vrot.slane %v9037_v0, 1  ;;  %v926_v13 = vshll.u32 %v9142_v5, 16  ;;  %v9187_v7 = vpack.c.b16 %v1219_v21, %v1217_v29  ;;  %2824 = vmatprep.subr.bf16.mxu1 %v11676_v36 }
 0x154   : > { %11691 = vst [vmem:[#allocation60_spill] sm:$0xff] %v9135_v10  ;;  %v9163_v42 = vsel %vm8727_vm3, %v6700_v19, %v5665_v32  ;;  %v7886_v19 = vld [vmem:[#allocation5 + $0x170] sm:$0xff]   ;;  %v914_v3 = vor.u32 %v913_v57, %v909_v1  ;;  %v9200_v29 = vcombine.low %v8898_v50, %v437_v25  ;;  %v9213_v57 = vld [vmem:[%s8658_s16 + $0xa0] sm:$0xf] }
 0x155   : > { %11693 = vst [vmem:[#allocation62_spill] sm:$0xff] %v9163_v42  ;;  %11696 = vst [vmem:[#allocation65_spill] sm:$0xff] %v9187_v7  ;;  %v9210_v1 = vrot.slane %v926_v13, 1  ;;  %v9228_v13 = vld [vmem:[%s8658_s16 + $0x110] sm:$0xf]  ;;  %v9237_v61 = vcombine.low %v9213_v57, %v9194_v41 }
 0x156   : > { %2584 = vmatpush1.bf16.msra.mxu0 %v7877_v9  ;;  %v5667_v9 = vrot.slane %v5665_v32, 4  ;;  %v9176_v32 = vrot.slane %v9081_v44, 1  ;;  %v9254_v42 = vld [vmem:[%s8658_s16 + $0x118] sm:$0xf] }
 0x157   : > { %2585 = vmatprep.subr.bf16.mxu0 %v11676_v36  ;;  %v5682_v30 = vrot.slane %v9254_v42, 5 }
 0x158   : > { %2148 = vmatmul.mubr.bf16.gmra.mrb[28].mxu0 %v9125_v24  ;;  %2397 = vmatmul.mubr.bf16.gmra.mrb[28].mxu1 %v9135_v10  ;;  %v931_v24 = vshll.u32 %v9152_v58, 16  ;;  %v9181_v10 = vcombine.low %v8886_v40, %v8895_v49  ;;  %v9185_v6 = vsel %vm8727_vm3, %v5667_v9, %v5668_v2  ;;  %v7885_v49 = vld [vmem:[#allocation5 + $0x1c8] sm:$0xff]   ;;  %v918_v2 = vrot.slane %v916_v43, 1 }
 0x159   : > { %2155 = vmatprep.mubr.bf16.mxu0 %v9137_v48  ;;  %2404 = vmatprep.mubr.bf16.mxu1 %v6353_v26  ;;  %11695 = vst [vmem:[#allocation64_spill] sm:$0xff] %v9185_v6  ;;  %v9190_v48 = vsel %vm802_vm0, %v899_v11, %v903_v55  ;;  %v905_v26 = vshrl.u32 %v9081_v44, 16  ;;  %v441_v11 = vld [vmem:[%s8658_s16 + $0xac] sm:$0x1]  ;;  %v9206_v44 = vrot.slane %v9130_v18, 1  ;;  %v920_v9 = vshrl.u32 %v9130_v18, 16 }
 0x15a   : > { %11697 = vst [vmem:[#allocation66_spill] sm:$0xff] %v9190_v48  ;;  %2586 = vmatpush1.bf16.msra.mxu0 %v7886_v19  ;;  %v9216_v43 = vld [vmem:[%s8658_s16 + $0xa8] sm:$0xf]  ;;  %v9218_v25 = vrot.slane %v931_v24, 1  ;;  %v941_v21 = vshll.u32 %v9181_v10, 16  ;;  %2825 = vmatpush1.bf16.msra.mxu1 %v7885_v49  ;;  %v9232_v24 = vsel %vm802_vm0, %v914_v3, %v918_v2  ;;  %v946_v19 = vshll.u32 %v9200_v29, 16 }
 0x15b   : > { %2587 = vmatprep.subr.bf16.mxu0 %v11676_v36  ;;  %v9225_v18 = vor.u32 %v905_v26, %v903_v55  ;;  %11699 = vst [vmem:[#allocation68_spill] sm:$0xff] %v9232_v24  ;;  %v9240_v6 = vcombine.low %v9216_v43, %v441_v11  ;;  %2826 = vmatprep.subr.bf16.mxu1 %v11676_v36  ;;  %v7888_v55 = vld [vmem:[#allocation5 + $0x1d0] sm:$0xff]   ;;  %v445_v26 = vld [vmem:[%s8658_s16 + $0xbc] sm:$0x1] }
 0x15c   : > { %v9247_v3 = vsel %vm1073_vm4, %v1092_v23, %v9176_v32  ;;  %v9251_v49 = vld [vmem:[%s8658_s16 + $0x114] sm:$0xf]  ;;  %v6355_v11 = vcombine.low %v8848_v59, %v9114_v34  ;;  %v9270_v56 = vrot.slane %v941_v21, 1  ;;  %v9272_v34 = vrot.slane %v946_v19, 1 }
 0x15d   : > { %11698 = vst [vmem:[#allocation67_spill] sm:$0xff] %v9225_v18  ;;  %11700 = vst [vmem:[#allocation69_spill] sm:$0xff] %v9247_v3  ;;  %v9265_v23 = vcombine.low %v9225_v18, %v9232_v24  ;;  %v5679_v46 = vrot.slane %v9251_v49, 5  ;;  %v9287_v19 = vrot.slane %v9200_v29, 1  ;;  %v9292_v16 = vcombine.low %v8983_v12, %v445_v26  ;;  %v7893_v18 = vld [vmem:[#allocation5 + $0x1e0] sm:$0xff]  }
 0x15e   : > { %2827 = vmatpush1.bf16.msra.mxu1 %v7888_v55  ;;  %v11704_v26 = vrot.slane %v9086_v17, 1 }
 0x15f   : > { %2828 = vmatprep.subr.bf16.mxu1 %v11676_v36  ;;  %v5681_v21 = vrot.slane %v5679_v46, 4 }
 0x160   : > { %2156 = vmatmul.mubr.bf16.gmra.mrb[32].mxu0 %v9170_v15  ;;  %2405 = vmatmul.mubr.bf16.gmra.mrb[32].mxu1 %v9187_v7  ;;  %v9259_v15 = vor.u32 %v920_v9, %v918_v2  ;;  %v956_v2 = vshll.u32 %v9237_v61, 16  ;;  %v961_v9 = vshll.u32 %v9240_v6, 16  ;;  %v1228_v7 = vunpack.c.h.b16 %v9232_v24 }
 0x161   : > { %2163 = vmatprep.mubr.bf16.mxu0 %v9190_v48  ;;  %2412 = vmatprep.mubr.bf16.mxu1 %v9086_v17  ;;  %v6702_v48 = vrot.slane %v9228_v13, 9  ;;  %v9298_v20 = vsel %vm8727_vm3, %v5681_v21, %v5682_v30  ;;  %v9312_v30 = vrot.slane %v9240_v6, 1  ;;  %v7894_v21 = vld [vmem:[#allocation5 + $0x178] sm:$0xff]   ;;  %v9321_v31 = vsel %vm1073_vm4, %v11704_v26, %v9206_v44 }
 0x162   : > { %11701 = vst [vmem:[#allocation70_spill] sm:$0xff] %v9259_v15  ;;  %v1230_v51 = vunpack.c.l.b16 %v9259_v15  ;;  %11703 = vst [vmem:[#allocation72_spill] sm:$0xff] %v9298_v20  ;;  %2829 = vmatpush1.bf16.msra.mxu1 %v7889_v4  ;;  %v976_v20 = vshll.u32 %v9292_v16, 16  ;;  %v9328_v15 = vld [vmem:[%s8658_s16 + $0x124] sm:$0xf]  ;;  %2588 = vmatpush1.bf16.msra.mxu0 %v7894_v21  ;;  %v9341_v17 = vcombine.low %v9176_v32, %v9321_v31 }
 0x163   : > { %v9284_v55 = vsel %vm8727_vm3, %v6702_v48, %v5679_v46  ;;  %v9301_v46 = vrot.slane %v956_v2, 1  ;;  %v9303_v48 = vrot.slane %v961_v9, 1  ;;  %2830 = vmatprep.subr.bf16.mxu1 %v11676_v36  ;;  %v971_v9 = vshll.u32 %v9280_v60, 16  ;;  %v7900_v2 = vld [vmem:[#allocation5 + $0x1f0] sm:$0xff]  }
 0x164   : > { %11702 = vst [vmem:[#allocation71_spill] sm:$0xff] %v9284_v55  ;;  %v9325_v55 = vld [vmem:[%s8658_s16 + $0x120] sm:$0xf]  ;;  %11706 = vst [vmem:[#allocation74_spill] sm:$0xff] %v9341_v17  ;;  %v9343_v26 = vpack.c.b16 %v1230_v51, %v1228_v7  ;;  %v11707_v7 = vshrl.u32 %v9142_v5, 16  ;;  %v978_v51 = vrot.slane %v976_v20, 1 }
 0x165   : > { %v9332_v4 = vcombine.low %v9325_v55, %v9328_v15  ;;  %v973_v21 = vrot.slane %v971_v9, 1  ;;  %v7901_v9 = vld [vmem:[#allocation5 + $0x1f8] sm:$0xff]  }
 0x166   : > { %2831 = vmatpush1.bf16.msra.mxu1 %v7893_v18  ;;  %v6361_v18 = vcombine.low %v9107_v22, %v9117_v14  ;;  %v929_v22 = vor.u32 %v9210_v1, %v11707_v7  ;;  %v980_v1 = vshrl.u32 %v9292_v16, 16  ;;  %v11714_v7 = vrot.slane %v9181_v10, 1 }
 0x167   : > { %11705 = vst [vmem:[#allocation73_spill] sm:$0xff] %v9332_v4  ;;  %2832 = vmatprep.subr.bf16.mxu1 %v11676_v36 }
 0x168   : > { %2164 = vmatmul.mubr.bf16.gmra.mrb[36].mxu0 %v9037_v0  ;;  %2413 = vmatmul.mubr.bf16.gmra.mrb[36].mxu1 %v9247_v3  ;;  %v9365_v4 = vsel %vm802_vm0, %v929_v22, %v9218_v25  ;;  %v9412_v22 = vsel %vm1073_vm4, %v11714_v7, %v9287_v19 }
 0x169   : > { %2171 = vmatprep.mubr.bf16.mxu0 %v9265_v23  ;;  %2420 = vmatprep.mubr.bf16.mxu1 %v6355_v11  ;;  %v9336_v11 = vcombine.low %v9078_v52, %v8842_v53  ;;  %v1229_v52 = vunpack.c.h.b16 %v9321_v31  ;;  %v1231_v53 = vunpack.c.l.b16 %v9206_v44 }
 0x16a   : > { %2833 = vmatpush1.bf16.msra.mxu1 %v7895_v39  ;;  %v9358_v39 = vcombine.low %v8845_v54, %v8848_v59  ;;  %v11710_v54 = vshrl.u32 %v9152_v58, 16  ;;  %v11711_v58 = vshrl.u32 %v9200_v29, 16 }
 0x16b   : > { %2834 = vmatprep.subr.bf16.mxu1 %v11676_v36 }
 0x16c   : > { %v9376_v59 = vor.u32 %v11710_v54, %v9218_v25  ;;  %v9393_v25 = vor.u32 %v11711_v58, %v9272_v34  ;;  %v7994_v58 = vld [vmem:[%s8658_s16 + $0x94] sm:$0xf] }
 0x16e   : > { %2835 = vmatpush1.bf16.msra.mxu1 %v7900_v2  ;;  %11712 = vst [vmem:[#allocation76_spill] sm:$0xff] %v9393_v25 }
 0x16f   : > { %2836 = vmatprep.subr.bf16.mxu1 %v11676_v36  ;;  %v7996_v36 = vld [vmem:[%s8658_s16 + $0xb0] sm:$0xf] }
 0x170   : > { %2172 = vmatmul.mubr.bf16.gmra.mrb[40].mxu0 %v9336_v11  ;;  %2421 = vmatmul.mubr.bf16.gmra.mrb[40].mxu1 %v9341_v17  ;;  %v9361_v17 = vpack.c.b16 %v1231_v53, %v1229_v52  ;;  %v11713_v52 = vrot.slane %v9142_v5, 1  ;;  %v6363_v53 = vcombine.low %v8898_v50, %v9213_v57  ;;  %v9416_v50 = vcombine.low %v9117_v14, %v8886_v40 }
 0x171   : > { %2179 = vmatprep.mubr.bf16.mxu0 %v9343_v26  ;;  %2428 = vmatprep.mubr.bf16.mxu1 %v6361_v18  ;;  %v11709_v18 = vshrl.u32 %v9181_v10, 16  ;;  %v9420_v57 = vcombine.low %v9222_v33, %v9412_v22  ;;  %v1241_v40 = vunpack.c.h.b16 %v9412_v22  ;;  %v1243_v14 = vunpack.c.l.b16 %v9287_v19 }
 0x172   : > { %11708 = vst [vmem:[#allocation75_spill] sm:$0xff] %v9361_v17  ;;  %2837 = vmatpush1.bf16.msra.mxu1 %v7901_v9 }
 0x173   : > { %v944_v24 = vor.u32 %v9270_v56, %v11709_v18  ;;  %v11557_v56 = vmov 0.0   ;;  %11715 = vst [vmem:[#allocation77_spill] sm:$0xff] %v9420_v57  ;;  %v6369_v18 = vcombine.low %v9194_v41, %v9216_v43  ;;  %v7995_v41 = vld [vmem:[%s8658_s16 + $0x98] sm:$0xf] }
 0x174   : > { %7265 = vmatprep.subr.bf16.mxu0 %v11557_v56  ;;  %7485 = vmatprep.subr.bf16.mxu1 %v11557_v56  ;;  %v453_v56 = vld [vmem:[%s8658_s16 + $0xdc] sm:$0x1] }
 0x175   : > { %v9382_v20 = vsel %vm802_vm0, %v944_v24, %v9272_v34  ;;  %v9399_v24 = vsel %vm1073_vm4, %v11713_v52, %v9222_v33  ;;  %v1242_v34 = vunpack.c.l.b16 %v9393_v25  ;;  %v9436_v52 = vcombine.low %v7994_v58, %v7995_v41 }
 0x176   : > { %v9388_v2 = vcombine.low %v9376_v59, %v9382_v20  ;;  %v1240_v29 = vunpack.c.h.b16 %v9382_v20  ;;  %v1107_v58 = vrot.slane %v9280_v60, 1  ;;  %v9467_v41 = vrot.slane %v9292_v16, 1 }
 0x178   : > { %2180 = vmatmul.mubr.bf16.gmra.mrb[44].mxu0 %v9358_v39  ;;  %2429 = vmatmul.mubr.bf16.gmra.mrb[44].mxu1 %v9361_v17  ;;  %v9422_v9 = vpack.c.b16 %v1242_v34, %v1240_v29  ;;  %v11718_v34 = vshrl.u32 %v9280_v60, 16  ;;  %11723 = vst [vmem:[#allocation82_spill] sm:$0xff] %v9467_v41 }
 0x179   : > { %2187 = vmatprep.mubr.bf16.mxu0 %v9365_v4  ;;  %2436 = vmatprep.mubr.bf16.mxu1 %v9181_v10  ;;  %v11716_v10 = vshrl.u32 %v9237_v61, 16 }
 0x17a   : > { %v974_v7 = vor.u32 %v973_v21, %v11718_v34  ;;  %v449_v21 = vld [vmem:[%s8658_s16 + $0xcc] sm:$0x1] }
 0x17b   : > { %v959_v54 = vor.u32 %v9301_v46, %v11716_v10  ;;  %v11719_v46 = vshrl.u32 %v9240_v6, 16  ;;  %v9469_v6 = vor.u32 %v980_v1, %v978_v51 }
 0x17c   : > { %v9458_v10 = vsel %vm802_vm0, %v974_v7, %v978_v51 }
 0x17d   : > { %v9442_v29 = vsel %vm802_vm0, %v959_v54, %v9303_v48  ;;  %11721 = vst [vmem:[#allocation80_spill] sm:$0xff] %v9458_v10  ;;  %11724 = vst [vmem:[#allocation83_spill] sm:$0xff] %v9469_v6  ;;  %v1252_v16 = vunpack.c.h.b16 %v9458_v10  ;;  %v1254_v51 = vunpack.c.l.b16 %v9469_v6 }
 0x180   : > { %2188 = vmatmul.mubr.bf16.gmra.mrb[48].mxu0 %v9142_v5  ;;  %2437 = vmatmul.mubr.bf16.gmra.mrb[48].mxu1 %v9399_v24 }
 0x181   : > { %2195 = vmatprep.mubr.bf16.mxu0 %v9388_v2  ;;  %2444 = vmatprep.mubr.bf16.mxu1 %v6363_v53  ;;  %v9438_v53 = vpack.c.b16 %v1243_v14, %v1241_v40  ;;  %v446_v40 = vld [vmem:[%s8658_s16 + $0xc0] sm:$0xf]  ;;  %v447_v14 = vld [vmem:[%s8658_s16 + $0xc4] sm:$0xf] }
 0x182   : > { %v6371_v7 = vcombine.low %v8983_v12, %v446_v40  ;;  %v9491_v12 = vsel %vm1073_vm4, %v1107_v58, %v9467_v41 }
 0x183   : > { %11717 = vst [vmem:[#allocation78_spill] sm:$0xff] %v9438_v53  ;;  %11727 = vst [vmem:[#allocation85_spill] sm:$0xff] %v9491_v12 }
 0x188   : > { %2196 = vmatmul.mubr.bf16.gmra.mrb[52].mxu0 %v9416_v50  ;;  %2445 = vmatmul.mubr.bf16.gmra.mrb[52].mxu1 %v9420_v57  ;;  %v9503_v57 = vcombine.low %v9312_v30, %v9491_v12 }
 0x189   : > { %2203 = vmatprep.mubr.bf16.mxu0 %v9422_v9  ;;  %2452 = vmatprep.mubr.bf16.mxu1 %v6369_v18  ;;  %v9452_v18 = vor.u32 %v11719_v46, %v9303_v48  ;;  %v11725_v48 = vrot.slane %v9237_v61, 1  ;;  %v9478_v46 = vcombine.low %v446_v40, %v447_v14 }
 0x18a   : > { %11729 = vst [vmem:[#allocation87_spill] sm:$0xff] %v9503_v57 }
 0x18b   : > { %11720 = vst [vmem:[#allocation79_spill] sm:$0xff] %v9452_v18  ;;  %v9463_v54 = vcombine.low %v9452_v18, %v9458_v10  ;;  %v9475_v34 = vsel %vm1073_vm4, %v11725_v48, %v9312_v30  ;;  %11726 = vst [vmem:[#allocation84_spill] sm:$0xff] %v9478_v46  ;;  %v986_v40 = vshll.u32 %v9478_v46, 16  ;;  %v6313_v48 = vcombine.low %v9040_v38, %v9043_v47 }
 0x18c   : > { %v984_v17 = vshrl.u32 %v9478_v46, 16  ;;  %v6314_v47 = vcombine.low %v9046_v35, %v453_v56 }
 0x18d   : > { %11722 = vst [vmem:[#allocation81_spill] sm:$0xff] %v9463_v54  ;;  %v988_v6 = vrot.slane %v986_v40, 1  ;;  %v1001_v10 = vshll.u32 %v6313_v48, 16  ;;  %v7997_v40 = vld [vmem:[%s8658_s16 + $0xb4] sm:$0xf] }
 0x18e   : > { %v1006_v25 = vshll.u32 %v6314_v47, 16 }
 0x18f   : > { %v1003_v18 = vrot.slane %v1001_v10, 1 }
 0x190   : > { %2204 = vmatmul.mubr.bf16.gmra.mrb[56].mxu0 %v9436_v52  ;;  %2453 = vmatmul.mubr.bf16.gmra.mrb[56].mxu1 %v9438_v53  ;;  %v9499_v53 = vcombine.low %v9216_v43, %v7996_v36  ;;  %v1253_v36 = vunpack.c.h.b16 %v9491_v12  ;;  %v1255_v43 = vunpack.c.l.b16 %v9467_v41  ;;  %v1008_v41 = vrot.slane %v1006_v25, 1  ;;  %v454_v25 = vld [vmem:[%s8658_s16 + $0xe0] sm:$0xf] }
 0x191   : > { %2211 = vmatprep.mubr.bf16.mxu0 %v9442_v29  ;;  %2460 = vmatprep.mubr.bf16.mxu1 %v9280_v60  ;;  %v9482_v60 = vld [vmem:[%s8658_s16 + $0xc8] sm:$0xf] }
 0x192   : > { %v6312_v1 = vcombine.low %v9482_v60, %v449_v21  ;;  %11728 = vst [vmem:[#allocation86_spill] sm:$0xff] %v9499_v53  ;;  %v9505_v21 = vpack.c.b16 %v1254_v51, %v1252_v16  ;;  %v989_v16 = vor.u32 %v988_v6, %v984_v17  ;;  %v999_v51 = vshrl.u32 %v6313_v48, 16 }
 0x193   : > { %v1110_v17 = vrot.slane %v9478_v46, 1  ;;  %v1010_v6 = vshrl.u32 %v6314_v47, 16 }
 0x194   : > { %11730 = vst [vmem:[#allocation88_spill] sm:$0xff] %v9505_v21  ;;  %v991_v58 = vshll.u32 %v6312_v1, 16  ;;  %v1004_v12 = vor.u32 %v1003_v18, %v999_v51  ;;  %v9528_v10 = vrot.slane %v6312_v1, 1  ;;  %v455_v18 = vld [vmem:[%s8658_s16 + $0xe4] sm:$0xf] }
 0x195   : > { %v9555_v51 = vld [vmem:[%s8658_s16 + $0xe8] sm:$0xf] }
 0x196   : > { %11732 = vst [vmem:[#allocation90_spill] sm:$0xff] %v9528_v10 }
 0x198   : > { %2212 = vmatmul.mubr.bf16.gmra.mrb[60].mxu0 %v9237_v61  ;;  %2461 = vmatmul.mubr.bf16.gmra.mrb[60].mxu1 %v9475_v34 }
 0x199   : > { %2219 = vmatprep.mubr.bf16.mxu0 %v9463_v54  ;;  %2468 = vmatprep.mubr.bf16.mxu1 %v6371_v7  ;;  %v6377_v7 = vcombine.low %v447_v14, %v9482_v60  ;;  %v993_v14 = vrot.slane %v991_v58, 1  ;;  %v7998_v54 = vld [vmem:[%s8658_s16 + $0xb8] sm:$0xf]  ;;  %v9539_v58 = vsel %vm1073_vm4, %v1110_v17, %v9528_v10  ;;  %v6317_v17 = vcombine.low %v9120_v8, %v9145_v63 }
 0x19a   : > { %v9517_v56 = vcombine.low %v7997_v40, %v7998_v54  ;;  %11735 = vst [vmem:[#allocation93_spill] sm:$0xff] %v9539_v58 }
 0x1a0   : > { %2220 = vmatmul.mubr.bf16.gmra.mrb[64].mxu0 %v9499_v53  ;;  %2469 = vmatmul.mubr.bf16.gmra.mrb[64].mxu1 %v9503_v57  ;;  %v9519_v53 = vpack.c.b16 %v1255_v43, %v1253_v36  ;;  %v995_v57 = vshrl.u32 %v6312_v1, 16  ;;  %v9545_v1 = vor.u32 %v1010_v6, %v1008_v41  ;;  %v1113_v43 = vrot.slane %v6313_v48, 1  ;;  %v461_v6 = vld [vmem:[%s8658_s16 + $0xfc] sm:$0x1] }
 0x1a1   : > { %2227 = vmatprep.mubr.bf16.mxu0 %v9505_v21  ;;  %2476 = vmatprep.mubr.bf16.mxu1 %v6377_v7  ;;  %v9522_v21 = vsel %vm802_vm0, %v989_v16, %v993_v14  ;;  %v9533_v7 = vsel %vm802_vm0, %v1004_v12, %v1008_v41  ;;  %v457_v12 = vld [vmem:[%s8658_s16 + $0xec] sm:$0x1]  ;;  %v9551_v16 = vcombine.low %v454_v25, %v455_v18 }
 0x1a2   : > { %11731 = vst [vmem:[#allocation89_spill] sm:$0xff] %v9519_v53  ;;  %v9530_v54 = vor.u32 %v995_v57, %v993_v14  ;;  %11734 = vst [vmem:[#allocation92_spill] sm:$0xff] %v9533_v7  ;;  %v6379_v57 = vcombine.low %v9046_v35, %v454_v25  ;;  %v9548_v14 = vrot.slane %v6314_v47, 1  ;;  %v1264_v41 = vunpack.c.h.b16 %v9533_v7 }
 0x1a3   : > { %11737 = vst [vmem:[#allocation95_spill] sm:$0xff] %v9545_v1  ;;  %11739 = vst [vmem:[#allocation97_spill] sm:$0xff] %v9551_v16  ;;  %v1266_v40 = vunpack.c.l.b16 %v9545_v1  ;;  %v6316_v35 = vcombine.low %v9555_v51, %v457_v12  ;;  %v1016_v47 = vshll.u32 %v9551_v16, 16  ;;  %v9572_v25 = vcombine.low %v9482_v60, %v9040_v38 }
 0x1a4   : > { %11733 = vst [vmem:[#allocation91_spill] sm:$0xff] %v9530_v54  ;;  %v9543_v36 = vcombine.low %v9530_v54, %v9533_v7  ;;  %11738 = vst [vmem:[#allocation96_spill] sm:$0xff] %v9548_v14  ;;  %v1014_v1 = vshrl.u32 %v9551_v16, 16  ;;  %v6318_v54 = vcombine.low %v9148_v45, %v461_v6  ;;  %v1267_v60 = vunpack.c.l.b16 %v9548_v14 }
 0x1a5   : > { %11741 = vst [vmem:[#allocation99_spill] sm:$0xff] %v9572_v25  ;;  %v9578_v12 = vpack.c.b16 %v1266_v40, %v1264_v41  ;;  %v1018_v7 = vrot.slane %v1016_v47, 1  ;;  %v1029_v40 = vshrl.u32 %v6317_v17, 16  ;;  %v7999_v47 = vld [vmem:[%s8658_s16 + $0xd4] sm:$0xf] }
 0x1a6   : > { %11736 = vst [vmem:[#allocation94_spill] sm:$0xff] %v9543_v36 }
 0x1a7   : > { %11743 = vst [vmem:[#allocation101_spill] sm:$0xff] %v9578_v12  ;;  %v1019_v41 = vor.u32 %v1018_v7, %v1014_v1  ;;  %v1116_v7 = vrot.slane %v9551_v16, 1  ;;  %v1040_v1 = vshrl.u32 %v6318_v54, 16 }
 0x1a8   : > { %2228 = vmatmul.mubr.bf16.gmra.mrb[68].mxu0 %v9517_v56  ;;  %2477 = vmatmul.mubr.bf16.gmra.mrb[68].mxu1 %v9519_v53 }
 0x1a9   : > { %2235 = vmatprep.mubr.bf16.mxu0 %v9522_v21  ;;  %2484 = vmatprep.mubr.bf16.mxu1 %v6313_v48  ;;  %v9564_v48 = vsel %vm1073_vm4, %v1113_v43, %v9548_v14  ;;  %v1021_v43 = vshll.u32 %v6316_v35, 16 }
 0x1aa   : > { %11740 = vst [vmem:[#allocation98_spill] sm:$0xff] %v9564_v48  ;;  %v9576_v53 = vcombine.low %v9528_v10, %v9564_v48  ;;  %v1265_v38 = vunpack.c.h.b16 %v9564_v48 }
 0x1ac   : > { %11742 = vst [vmem:[#allocation100_spill] sm:$0xff] %v9576_v53 }
 0x1b0   : > { %2236 = vmatmul.mubr.bf16.gmra.mrb[72].mxu0 %v9478_v46  ;;  %2485 = vmatmul.mubr.bf16.gmra.mrb[72].mxu1 %v9539_v58  ;;  %v1036_v46 = vshll.u32 %v6318_v54, 16  ;;  %v8000_v58 = vld [vmem:[%s8658_s16 + $0xd8] sm:$0xf] }
 0x1b1   : > { %2243 = vmatprep.mubr.bf16.mxu0 %v9543_v36  ;;  %2492 = vmatprep.mubr.bf16.mxu1 %v6379_v57  ;;  %v6385_v57 = vcombine.low %v455_v18, %v9555_v51  ;;  %v1031_v36 = vshll.u32 %v6317_v17, 16  ;;  %v1023_v18 = vrot.slane %v1021_v43, 1  ;;  %v9590_v6 = vcombine.low %v7999_v47, %v8000_v58 }
 0x1b2   : > { %v1038_v14 = vrot.slane %v1036_v46, 1  ;;  %v9601_v58 = vrot.slane %v6316_v35, 1  ;;  %v462_v46 = vld [vmem:[%s8658_s16 + $0x100] sm:$0xf] }
 0x1b3   : > { %v1033_v10 = vrot.slane %v1031_v36, 1 }
 0x1b4   : > { %11745 = vst [vmem:[#allocation103_spill] sm:$0xff] %v9601_v58  ;;  %v9612_v43 = vsel %vm1073_vm4, %v1116_v7, %v9601_v58 }
 0x1b5   : > { %v1034_v48 = vor.u32 %v1033_v10, %v1029_v40  ;;  %v463_v10 = vld [vmem:[%s8658_s16 + $0x104] sm:$0xf]  ;;  %11748 = vst [vmem:[#allocation106_spill] sm:$0xff] %v9612_v43  ;;  %v464_v40 = vld [vmem:[%s8658_s16 + $0x108] sm:$0xf] }
 0x1b8   : > { %2244 = vmatmul.mubr.bf16.gmra.mrb[76].mxu0 %v9572_v25  ;;  %2493 = vmatmul.mubr.bf16.gmra.mrb[76].mxu1 %v9576_v53  ;;  %v9592_v25 = vpack.c.b16 %v1267_v60, %v1265_v38  ;;  %v1025_v53 = vshrl.u32 %v6316_v35, 16  ;;  %v9618_v35 = vor.u32 %v1040_v1, %v1038_v14  ;;  %v1119_v60 = vrot.slane %v6317_v17, 1 }
 0x1b9   : > { %2251 = vmatprep.mubr.bf16.mxu0 %v9578_v12  ;;  %2500 = vmatprep.mubr.bf16.mxu1 %v6385_v57  ;;  %v9595_v12 = vsel %vm802_vm0, %v1019_v41, %v1023_v18  ;;  %v9606_v57 = vsel %vm802_vm0, %v1034_v48, %v1038_v14  ;;  %v465_v48 = vld [vmem:[%s8658_s16 + $0x10c] sm:$0x1]  ;;  %v9624_v41 = vcombine.low %v462_v46, %v463_v10 }
 0x1ba   : > { %11744 = vst [vmem:[#allocation102_spill] sm:$0xff] %v9592_v25  ;;  %v9603_v36 = vor.u32 %v1025_v53, %v1023_v18  ;;  %11747 = vst [vmem:[#allocation105_spill] sm:$0xff] %v9606_v57  ;;  %v6387_v53 = vcombine.low %v9148_v45, %v462_v46  ;;  %v9621_v18 = vrot.slane %v6318_v54, 1  ;;  %v1276_v47 = vunpack.c.h.b16 %v9606_v57  ;;  %v469_v46 = vld [vmem:[%s8658_s16 + $0x11c] sm:$0x1] }
 0x1bb   : > { %11750 = vst [vmem:[#allocation108_spill] sm:$0xff] %v9618_v35  ;;  %v1278_v14 = vunpack.c.l.b16 %v9618_v35  ;;  %v6320_v7 = vcombine.low %v464_v40, %v465_v48  ;;  %v6321_v1 = vcombine.low %v9228_v13, %v9251_v49 }
 0x1bc   : > { %11746 = vst [vmem:[#allocation104_spill] sm:$0xff] %v9603_v36  ;;  %v9616_v38 = vcombine.low %v9603_v36, %v9606_v57  ;;  %v9634_v54 = vsel %vm1073_vm4, %v1119_v60, %v9621_v18  ;;  %v1044_v60 = vshrl.u32 %v9624_v41, 16 }
 0x1bd   : > { %11751 = vst [vmem:[#allocation109_spill] sm:$0xff] %v9634_v54  ;;  %v9646_v57 = vcombine.low %v9601_v58, %v9634_v54  ;;  %v9648_v48 = vpack.c.b16 %v1278_v14, %v1276_v47  ;;  %v1051_v35 = vshll.u32 %v6320_v7, 16  ;;  %v1059_v14 = vshrl.u32 %v6321_v1, 16 }
 0x1be   : > { %11749 = vst [vmem:[#allocation107_spill] sm:$0xff] %v9616_v38 }
 0x1bf   : > { %11753 = vst [vmem:[#allocation111_spill] sm:$0xff] %v9646_v57  ;;  %11754 = vst [vmem:[#allocation112_spill] sm:$0xff] %v9648_v48  ;;  %v1053_v47 = vrot.slane %v1051_v35, 1 }
 0x1c0   : > { %2252 = vmatmul.mubr.bf16.gmra.mrb[80].mxu0 %v9590_v6  ;;  %2501 = vmatmul.mubr.bf16.gmra.mrb[80].mxu1 %v9592_v25  ;;  %v9642_v25 = vcombine.low %v9555_v51, %v9120_v8  ;;  %v1277_v8 = vunpack.c.h.b16 %v9634_v54  ;;  %v1279_v51 = vunpack.c.l.b16 %v9621_v18 }
 0x1c1   : > { %2259 = vmatprep.mubr.bf16.mxu0 %v9595_v12  ;;  %2508 = vmatprep.mubr.bf16.mxu1 %v6317_v17  ;;  %v1046_v17 = vshll.u32 %v9624_v41, 16 }
 0x1c2   : > { %11752 = vst [vmem:[#allocation110_spill] sm:$0xff] %v9642_v25 }
 0x1c3   : > { %v1048_v36 = vrot.slane %v1046_v17, 1  ;;  %v9659_v17 = vcombine.low %v9145_v63, %v9148_v45  ;;  %v1122_v63 = vrot.slane %v9624_v41, 1  ;;  %v9672_v45 = vrot.slane %v6320_v7, 1 }
 0x1c8   : > { %2260 = vmatmul.mubr.bf16.gmra.mrb[84].mxu0 %v9551_v16  ;;  %2509 = vmatmul.mubr.bf16.gmra.mrb[84].mxu1 %v9612_v43  ;;  %v1061_v16 = vshll.u32 %v6321_v1, 16 }
 0x1c9   : > { %2267 = vmatprep.mubr.bf16.mxu0 %v9616_v38  ;;  %2516 = vmatprep.mubr.bf16.mxu1 %v6387_v53  ;;  %v6393_v53 = vcombine.low %v463_v10, %v464_v40  ;;  %v6322_v38 = vcombine.low %v9254_v42, %v469_v46  ;;  %v1049_v10 = vor.u32 %v1048_v36, %v1044_v60  ;;  %v1125_v60 = vrot.slane %v6321_v1, 1 }
 0x1ca   : > { %v1063_v58 = vrot.slane %v1061_v16, 1  ;;  %v9661_v46 = vpack.c.b16 %v1279_v51, %v1277_v8  ;;  %v9701_v51 = vld [vmem:[%s8658_s16 + $0x128] sm:$0xf] }
 0x1cb   : > { %v1066_v43 = vshll.u32 %v6322_v38, 16  ;;  %v1070_v36 = vshrl.u32 %v6322_v38, 16  ;;  %v9689_v8 = vrot.slane %v6322_v38, 1 }
 0x1cc   : > { %11755 = vst [vmem:[#allocation113_spill] sm:$0xff] %v9661_v46 }
 0x1cd   : > { %v1068_v54 = vrot.slane %v1066_v43, 1 }
 0x1cf   : > { %v9681_v43 = vor.u32 %v1070_v36, %v1068_v54 }
 0x1d0   : > { %2268 = vmatmul.mubr.bf16.gmra.mrb[88].mxu0 %v9642_v25  ;;  %2517 = vmatmul.mubr.bf16.gmra.mrb[88].mxu1 %v9646_v57  ;;  %v1055_v25 = vshrl.u32 %v6320_v7, 16  ;;  %v9664_v57 = vsel %vm802_vm0, %v1049_v10, %v1053_v47 }
 0x1d1   : > { %2275 = vmatprep.mubr.bf16.mxu0 %v9648_v48  ;;  %2524 = vmatprep.mubr.bf16.mxu1 %v6393_v53  ;;  %v1064_v48 = vor.u32 %v1063_v58, %v1059_v14  ;;  %11757 = vst [vmem:[#allocation115_spill] sm:$0xff] %v9681_v43  ;;  %v6395_v53 = vcombine.low %v9254_v42, %v9325_v55 }
 0x1d2   : > { %v9669_v16 = vor.u32 %v1055_v25, %v1053_v47  ;;  %v9685_v25 = vsel %vm1073_vm4, %v1122_v63, %v9672_v45  ;;  %v9704_v55 = vcombine.low %v464_v40, %v9228_v13  ;;  %v6401_v47 = vcombine.low %v9328_v15, %v9701_v51 }
 0x1d3   : > { %v9675_v35 = vsel %vm802_vm0, %v1064_v48, %v1068_v54  ;;  %11758 = vst [vmem:[#allocation116_spill] sm:$0xff] %v9685_v25  ;;  %v1290_v54 = vunpack.c.l.b16 %v9681_v43  ;;  %v9698_v48 = vsel %vm1073_vm4, %v1125_v60, %v9689_v8  ;;  %v1291_v13 = vunpack.c.l.b16 %v9689_v8 }
 0x1d4   : > { %11756 = vst [vmem:[#allocation114_spill] sm:$0xff] %v9675_v35  ;;  %v9679_v58 = vcombine.low %v9669_v16, %v9675_v35  ;;  %v1288_v7 = vunpack.c.h.b16 %v9675_v35  ;;  %v9708_v38 = vcombine.low %v9672_v45, %v9698_v48  ;;  %v1289_v10 = vunpack.c.h.b16 %v9698_v48  ;;  %v11786_v35 = vld [vmem:[#allocation59_spill] sm:$0xff] }
 0x1d5   : > { %v9721_v40 = vcombine.low %v9251_v49, %v9254_v42  ;;  %v6332_v42 = vcombine.low %v8799_v28, %v8933_v62 }
 0x1d6   : > { %11759 = vst [vmem:[#allocation117_spill] sm:$0xff] %v9708_v38  ;;  %v9723_v14 = vpack.c.b16 %v1291_v13, %v1289_v10  ;;  %v11761_v10 = vld [vmem:[#allocation23_spill] sm:$0xff]  ;;  %v11762_v13 = vld [vmem:[#allocation26_spill] sm:$0xff] }
 0x1d8   : > { %2276 = vmatmul.mubr.bf16.gmra.mrb[92].mxu0 %v9659_v17  ;;  %2525 = vmatmul.mubr.bf16.gmra.mrb[92].mxu1 %v9661_v46  ;;  %11760 = vst [vmem:[#allocation118_spill] sm:$0xff] %v9723_v14  ;;  %v11763_v46 = vld [vmem:[#allocation32_spill] sm:$0xff] }
 0x1d9   : > { %2283 = vmatprep.mubr.bf16.mxu0 %v9664_v57  ;;  %2532 = vmatprep.mubr.bf16.mxu1 %v6321_v1  ;;  %v9710_v1 = vpack.c.b16 %v1290_v54, %v1288_v7  ;;  %v7902_v7 = vld [vmem:[#allocation5 + $0x200] sm:$0xff]  }
 0x1e0   : > { %2284 = vmatmul.mubr.bf16.gmra.mrb[96].mxu0 %v9624_v41  ;;  %2533 = vmatmul.mubr.bf16.gmra.mrb[96].mxu1 %v9685_v25 }
 0x1e1   : > { %2291 = vmatprep.mubr.bf16.mxu0 %v9679_v58  ;;  %2540 = vmatprep.mubr.bf16.mxu1 %v6395_v53 }
 0x1e8   : > { %2292 = vmatmul.mubr.bf16.gmra.mrb[100].mxu0 %v9704_v55  ;;  %2541 = vmatmul.mubr.bf16.gmra.mrb[100].mxu1 %v9708_v38 }
 0x1e9   : > { %2299 = vmatprep.mubr.bf16.mxu0 %v9710_v1  ;;  %2548 = vmatprep.mubr.bf16.mxu1 %v6401_v47 }
 0x1f0   : > { %2300 = vmatmul.mubr.bf16.gmra.mrb[104].mxu0 %v9721_v40  ;;  %2549 = vmatmul.mubr.bf16.gmra.mrb[104].mxu1 %v9723_v14 }
 0x1f1   : > { %2589 = vmatprep.mubr.bf16.mxu0 %v8825_v37  ;;  %2838 = vmatprep.mubr.bf16.mxu1 %v8879_v27  ;;  %v1195_v37 = vunpack.c.h.b16 %v8933_v62 }
 0x1f3   : > { %v2093_v15 = vpop.f32.mrb[0].mxu0  ;;  %v2342_v63 = vpop.f32.mrb[0].mxu1 }
 0x1f4   : > { %v2095_v36 = vpop.f32.mrb[1].mxu0  ;;  %v2344_v60 = vpop.f32.mrb[1].mxu1  ;;  %v1201_v15 = vunpack.c.l.b16 %v11763_v46  ;;  %v11764_v63 = vld [vmem:[#allocation36_spill] sm:$0xff] }
 0x1f5   : > { %v2096_v53 = vpop.f32.mrb[2].mxu0  ;;  %v2345_v47 = vpop.f32.mrb[2].mxu1  ;;  %v7903_v36 = vld [vmem:[#allocation5 + $0x208] sm:$0xff]   ;;  %v11765_v60 = vmov 0.0  }
 0x1f6   : > { %v2098_v54 = vpop.f32.mrb[3].mxu0  ;;  %v2347_v49 = vpop.f32.mrb[3].mxu1  ;;  %v11766_v47 = vld [vmem:[#allocation25_spill] sm:$0xff]  ;;  %v1324_v14 = vpack.c.b16 %v1201_v15, %v1195_v37  ;;  %v11770_v37 = vld [vmem:[#allocation43_spill] sm:$0xff] }
 0x1f7   : > { %v6331_v49 = vcombine.low %v11766_v47, %v8879_v27  ;;  %v11769_v47 = vld [vmem:[#allocation41_spill] sm:$0xff] }
 0x1f8   : > { %2590 = vmatmul.mubr.bf16.vlgmr.msra.gmra.mrb[108].mxu0 %v11761_v10  ;;  %2839 = vmatmul.mubr.bf16.vlgmr.msra.gmra.mrb[108].mxu1 %v11762_v13 }
 0x1f9   : > { %7266 = vmatpush3.bf16.msra.mxu0 %v7902_v7  ;;  %2597 = vmatprep.mubr.bf16.mxu0 %v6332_v42  ;;  %v7904_v42 = vld [vmem:[#allocation5 + $0x210] sm:$0xff]  }
 0x1fa   : > { %2846 = vmatprep.mubr.bf16.mxu1 %v11764_v63  ;;  %7267 = vmatprep.subr.bf16.mxu0 %v11765_v60 }
 0x1fb   : > { %v2101_v53 = vpop.f32.mrb[4].mxu0  ;;  %7493 = vmatpush3.bf16.msra.mxu1 %v7902_v7  ;;  %v2350_v54 = vpop.f32.mrb[4].mxu1  ;;  %v1194_v7 = vunpack.c.h.b16 %v8879_v27 }
 0x1fc   : > { %v2103_v28 = vpop.f32.mrb[5].mxu0  ;;  %7486 = vmatprep.subr.bf16.mxu1 %v11765_v60  ;;  %v2352_v10 = vpop.f32.mrb[5].mxu1  ;;  %v11768_v54 = vld [vmem:[#allocation30_spill] sm:$0xff] }
 0x1fd   : > { %v2104_v13 = vpop.f32.mrb[6].mxu0  ;;  %7268 = vmatpush3.bf16.msra.mxu0 %v7903_v36  ;;  %v2353_v46 = vpop.f32.mrb[6].mxu1  ;;  %v1200_v28 = vunpack.c.l.b16 %v11768_v54 }
 0x1fe   : > { %v2106_v38 = vpop.f32.mrb[7].mxu0  ;;  %7269 = vmatprep.subr.bf16.mxu0 %v11765_v60  ;;  %v9741_v63 = vadd.f32 %v2353_v46, %v2104_v13  ;;  %v2355_v53 = vpop.f32.mrb[7].mxu1 }
 0x1ff   : > { %7494 = vmatpush3.bf16.msra.mxu1 %v7903_v36  ;;  %v7905_v38 = vld [vmem:[#allocation5 + $0x218] sm:$0xff]  }
 0x200   : > { %11767 = vst [vmem:[#allocation23_spill] sm:$0xff] %v9741_v63  ;;  %2598 = vmatmul.mubr.bf16.gmra.mrb[112].mxu0 %v6331_v49  ;;  %7487 = vmatprep.subr.bf16.mxu1 %v11765_v60  ;;  %v1323_v49 = vpack.c.b16 %v1200_v28, %v1194_v7  ;;  %v11774_v7 = vld [vmem:[#allocation40_spill] sm:$0xff] }
 0x201   : > { %2847 = vmatmul.mubr.bf16.gmra.mrb[112].mxu1 %v11769_v47  ;;  %2605 = vmatprep.mubr.bf16.mxu0 %v1324_v14  ;;  %v7906_v14 = vld [vmem:[#allocation5 + $0x220] sm:$0xff]  }
 0x202   : > { %2854 = vmatprep.mubr.bf16.mxu1 %v11770_v37  ;;  %7270 = vmatpush3.bf16.msra.mxu0 %v7904_v42  ;;  %v11775_v28 = vld [vmem:[#allocation48_spill] sm:$0xff] }
 0x203   : > { %v2109_v15 = vpop.f32.mrb[8].mxu0  ;;  %7271 = vmatprep.subr.bf16.mxu0 %v11765_v60  ;;  %7495 = vmatpush3.bf16.msra.mxu1 %v7904_v42  ;;  %v2358_v10 = vpop.f32.mrb[8].mxu1  ;;  %v11773_v42 = vld [vmem:[#allocation46_spill] sm:$0xff] }
 0x204   : > { %v2111_v36 = vpop.f32.mrb[9].mxu0  ;;  %7488 = vmatprep.subr.bf16.mxu1 %v11765_v60  ;;  %v9750_v27 = vadd.f32 %v2358_v10, %v2109_v15  ;;  %v2360_v13 = vpop.f32.mrb[9].mxu1  ;;  %v7907_v15 = vld [vmem:[#allocation5 + $0x228] sm:$0xff]  }
 0x205   : > { %v2112_v46 = vpop.f32.mrb[10].mxu0  ;;  %v2361_v53 = vpop.f32.mrb[10].mxu1 }
 0x206   : > { %11771 = vst [vmem:[#allocation26_spill] sm:$0xff] %v9750_v27  ;;  %v2114_v54 = vpop.f32.mrb[11].mxu0  ;;  %7272 = vmatpush3.bf16.msra.mxu0 %v7905_v38  ;;  %v9752_v47 = vadd.f32 %v2361_v53, %v2112_v46  ;;  %v2363_v37 = vpop.f32.mrb[11].mxu1  ;;  %v11777_v53 = vld [vmem:[#allocation52_spill] sm:$0xff] }
 0x207   : > { %7273 = vmatprep.subr.bf16.mxu0 %v11765_v60  ;;  %7496 = vmatpush3.bf16.msra.mxu1 %v7905_v38  ;;  %v11778_v54 = vld [vmem:[#allocation34_spill] sm:$0xff] }
 0x208   : > { %11772 = vst [vmem:[#allocation32_spill] sm:$0xff] %v9752_v47  ;;  %2606 = vmatmul.mubr.bf16.gmra.mrb[116].mxu0 %v1323_v49  ;;  %7489 = vmatprep.subr.bf16.mxu1 %v11765_v60  ;;  %v6341_v37 = vcombine.low %v11778_v54, %v11777_v53  ;;  %v11783_v54 = vld [vmem:[#allocation54_spill] sm:$0xff] }
 0x209   : > { %2855 = vmatmul.mubr.bf16.gmra.mrb[116].mxu1 %v11773_v42  ;;  %2613 = vmatprep.mubr.bf16.mxu0 %v11774_v7 }
 0x20a   : > { %2862 = vmatprep.mubr.bf16.mxu1 %v11775_v28  ;;  %7274 = vmatpush3.bf16.msra.mxu0 %v7906_v14 }
 0x20b   : > { %v2117_v10 = vpop.f32.mrb[12].mxu0  ;;  %7275 = vmatprep.subr.bf16.mxu0 %v11765_v60  ;;  %7497 = vmatpush3.bf16.msra.mxu1 %v7906_v14  ;;  %v2366_v36 = vpop.f32.mrb[12].mxu1  ;;  %v11780_v14 = vld [vmem:[#allocation33_spill] sm:$0xff] }
 0x20c   : > { %v2119_v13 = vpop.f32.mrb[13].mxu0  ;;  %7490 = vmatprep.subr.bf16.mxu1 %v11765_v60  ;;  %v9761_v38 = vadd.f32 %v2366_v36, %v2117_v10  ;;  %v2368_v49 = vpop.f32.mrb[13].mxu1  ;;  %v11781_v10 = vld [vmem:[#allocation31_spill] sm:$0xff]  ;;  %v1211_v36 = vunpack.c.h.b16 %v11777_v53 }
 0x20d   : > { %v2120_v46 = vpop.f32.mrb[14].mxu0  ;;  %v2369_v42 = vpop.f32.mrb[14].mxu1  ;;  %v11782_v13 = vld [vmem:[#allocation49_spill] sm:$0xff] }
 0x20e   : > { %11776 = vst [vmem:[#allocation36_spill] sm:$0xff] %v9761_v38  ;;  %v2122_v7 = vpop.f32.mrb[15].mxu0  ;;  %7276 = vmatpush3.bf16.msra.mxu0 %v7907_v15  ;;  %v9765_v47 = vadd.f32 %v2369_v42, %v2120_v46  ;;  %v2371_v27 = vpop.f32.mrb[15].mxu1  ;;  %v1213_v49 = vunpack.c.l.b16 %v11782_v13  ;;  %v1210_v13 = vunpack.c.h.b16 %v11775_v28 }
 0x20f   : > { %7277 = vmatprep.subr.bf16.mxu0 %v11765_v60  ;;  %7498 = vmatpush3.bf16.msra.mxu1 %v7907_v15  ;;  %v11784_v27 = vld [vmem:[#allocation37_spill] sm:$0xff] }
 0x210   : > { %11779 = vst [vmem:[#allocation25_spill] sm:$0xff] %v9765_v47  ;;  %2614 = vmatmul.mubr.bf16.gmra.mrb[120].mxu0 %v11780_v14  ;;  %7491 = vmatprep.subr.bf16.mxu1 %v11765_v60  ;;  %v6340_v47 = vcombine.low %v11784_v27, %v11775_v28  ;;  %v1340_v63 = vpack.c.b16 %v1213_v49, %v1211_v36  ;;  %v7908_v36 = vld [vmem:[#allocation5 + $0x230] sm:$0xff]  }
 0x211   : > { %2863 = vmatmul.mubr.bf16.gmra.mrb[120].mxu1 %v11781_v10  ;;  %2621 = vmatprep.mubr.bf16.mxu0 %v6341_v37 }
 0x212   : > { %2870 = vmatprep.mubr.bf16.mxu1 %v11783_v54  ;;  %v11785_v54 = vld [vmem:[#allocation50_spill] sm:$0xff]  ;;  %7278 = vmatpush3.bf16.msra.mxu0 %v7908_v36 }
 0x213   : > { %v2125_v7 = vpop.f32.mrb[16].mxu0  ;;  %v2374_v46 = vpop.f32.mrb[16].mxu1  ;;  %v1212_v43 = vunpack.c.l.b16 %v11785_v54  ;;  %7499 = vmatpush3.bf16.msra.mxu1 %v7908_v36  ;;  %7279 = vmatprep.subr.bf16.mxu0 %v11765_v60  ;;  %v11791_v36 = vld [vmem:[#allocation55_spill] sm:$0xff] }
 0x214   : > { %v2127_v42 = vpop.f32.mrb[17].mxu0  ;;  %v9776_v15 = vadd.f32 %v2374_v46, %v2125_v7  ;;  %v2376_v14 = vpop.f32.mrb[17].mxu1  ;;  %7492 = vmatprep.subr.bf16.mxu1 %v11765_v60 }
 0x215   : > { %v2128_v38 = vpop.f32.mrb[18].mxu0  ;;  %v2377_v62 = vpop.f32.mrb[18].mxu1  ;;  %v11787_v42 = vld [vmem:[#allocation61_spill] sm:$0xff]  ;;  %v1339_v14 = vpack.c.b16 %v1212_v43, %v1210_v13  ;;  %v11789_v43 = vld [vmem:[#allocation58_spill] sm:$0xff] }
 0x216   : > { %v2130_v10 = vpop.f32.mrb[19].mxu0  ;;  %v9778_v37 = vadd.f32 %v2377_v62, %v2128_v38  ;;  %v2379_v53 = vpop.f32.mrb[19].mxu1 }
 0x218   : > { %2622 = vmatmul.mubr.bf16.gmra.mrb[124].mxu0 %v6340_v47 }
 0x219   : > { %2871 = vmatmul.mubr.bf16.gmra.mrb[124].mxu1 %v11786_v35  ;;  %2629 = vmatprep.mubr.bf16.mxu0 %v1340_v63  ;;  %v11788_v35 = vld [vmem:[#allocation63_spill] sm:$0xff]  ;;  %v11790_v63 = vld [vmem:[#allocation66_spill] sm:$0xff] }
 0x21a   : > { %2878 = vmatprep.mubr.bf16.mxu1 %v11787_v42 }
 0x21b   : > { %v2133_v7 = vpop.f32.mrb[20].mxu0  ;;  %v2382_v46 = vpop.f32.mrb[20].mxu1 }
 0x21c   : > { %v2135_v27 = vpop.f32.mrb[21].mxu0  ;;  %v9784_v49 = vadd.f32 %v2382_v46, %v2133_v7  ;;  %v2384_v62 = vpop.f32.mrb[21].mxu1 }
 0x21d   : > { %v2136_v38 = vpop.f32.mrb[22].mxu0  ;;  %v2385_v53 = vpop.f32.mrb[22].mxu1  ;;  %v6349_v62 = vcombine.low %v11791_v36, %v9247_v3 }
 0x21e   : > { %v2138_v47 = vpop.f32.mrb[23].mxu0  ;;  %v9786_v28 = vadd.f32 %v2385_v53, %v2136_v38  ;;  %v2387_v10 = vpop.f32.mrb[23].mxu1 }
 0x21f   : > { %v11793_v10 = vld [vmem:[#allocation51_spill] sm:$0xff] }
 0x220   : > { %2630 = vmatmul.mubr.bf16.gmra.mrb[128].mxu0 %v1339_v14 }
 0x221   : > { %2879 = vmatmul.mubr.bf16.gmra.mrb[128].mxu1 %v11788_v35  ;;  %2637 = vmatprep.mubr.bf16.mxu0 %v11789_v43  ;;  %v1223_v35 = vunpack.c.h.b16 %v9247_v3  ;;  %v1225_v43 = vunpack.c.l.b16 %v9176_v32  ;;  %v1222_v32 = vunpack.c.h.b16 %v11790_v63 }
 0x222   : > { %2886 = vmatprep.mubr.bf16.mxu1 %v11790_v63 }
 0x223   : > { %v2141_v13 = vpop.f32.mrb[24].mxu0  ;;  %v2390_v54 = vpop.f32.mrb[24].mxu1 }
 0x224   : > { %v2143_v42 = vpop.f32.mrb[25].mxu0  ;;  %v9793_v7 = vadd.f32 %v2390_v54, %v2141_v13  ;;  %v2392_v46 = vpop.f32.mrb[25].mxu1 }
 0x225   : > { %v2144_v27 = vpop.f32.mrb[26].mxu0  ;;  %v2393_v38 = vpop.f32.mrb[26].mxu1  ;;  %v11794_v46 = vld [vmem:[#allocation56_spill] sm:$0xff] }
 0x226   : > { %v2146_v53 = vpop.f32.mrb[27].mxu0  ;;  %v9797_v47 = vadd.f32 %v2393_v38, %v2144_v27  ;;  %v2395_v14 = vpop.f32.mrb[27].mxu1  ;;  %v6348_v36 = vcombine.low %v11794_v46, %v11790_v63 }
 0x227   : > { %v1356_v14 = vpack.c.b16 %v1225_v43, %v1223_v35 }
 0x228   : > { %11792 = vst [vmem:[#allocation30_spill] sm:$0xff] %v9797_v47  ;;  %2638 = vmatmul.mubr.bf16.gmra.mrb[132].mxu0 %v11793_v10 }
 0x229   : > { %2887 = vmatmul.mubr.bf16.gmra.mrb[132].mxu1 %v9037_v0  ;;  %2645 = vmatprep.mubr.bf16.mxu0 %v6349_v62 }
 0x22a   : > { %2894 = vmatprep.mubr.bf16.mxu1 %v9265_v23  ;;  %v11795_v23 = vld [vmem:[#allocation67_spill] sm:$0xff] }
 0x22b   : > { %v2149_v13 = vpop.f32.mrb[28].mxu0  ;;  %v2398_v54 = vpop.f32.mrb[28].mxu1  ;;  %v1224_v47 = vunpack.c.l.b16 %v11795_v23 }
 0x22c   : > { %v2151_v42 = vpop.f32.mrb[29].mxu0  ;;  %v9806_v27 = vadd.f32 %v2398_v54, %v2149_v13  ;;  %v2400_v38 = vpop.f32.mrb[29].mxu1 }
 0x22d   : > { %v2152_v53 = vpop.f32.mrb[30].mxu0  ;;  %v2401_v10 = vpop.f32.mrb[30].mxu1  ;;  %v1355_v46 = vpack.c.b16 %v1224_v47, %v1222_v32  ;;  %v6357_v32 = vcombine.low %v9206_v44, %v9399_v24 }
 0x22e   : > { %v2154_v0 = vpop.f32.mrb[31].mxu0  ;;  %v9808_v62 = vadd.f32 %v2401_v10, %v2152_v53  ;;  %v2403_v3 = vpop.f32.mrb[31].mxu1 }
 0x230   : > { %2646 = vmatmul.mubr.bf16.gmra.mrb[136].mxu0 %v6348_v36  ;;  %v7909_v36 = vld [vmem:[#allocation5 + $0x238] sm:$0xff]  }
 0x231   : > { %2895 = vmatmul.mubr.bf16.gmra.mrb[136].mxu1 %v9336_v11  ;;  %2653 = vmatprep.mubr.bf16.mxu0 %v1356_v14 }
 0x232   : > { %2902 = vmatprep.mubr.bf16.mxu1 %v9343_v26  ;;  %7500 = vmatpush3.bf16.msra.mxu1 %v7909_v36 }
 0x233   : > { %v2157_v13 = vpop.f32.mrb[32].mxu0  ;;  %v2406_v54 = vpop.f32.mrb[32].mxu1  ;;  %7280 = vmatpush3.bf16.msra.mxu0 %v7909_v36 }
 0x234   : > { %v2159_v42 = vpop.f32.mrb[33].mxu0  ;;  %v9814_v35 = vadd.f32 %v2406_v54, %v2157_v13  ;;  %v2408_v43 = vpop.f32.mrb[33].mxu1 }
 0x235   : > { %v2160_v38 = vpop.f32.mrb[34].mxu0  ;;  %v2409_v53 = vpop.f32.mrb[34].mxu1  ;;  %v1237_v43 = vunpack.c.l.b16 %v9222_v33  ;;  %v1234_v33 = vunpack.c.h.b16 %v9365_v4 }
 0x236   : > { %v2162_v3 = vpop.f32.mrb[35].mxu0  ;;  %v9816_v10 = vadd.f32 %v2409_v53, %v2160_v38  ;;  %v2411_v63 = vpop.f32.mrb[35].mxu1 }
 0x237   : > { %v11797_v3 = vld [vmem:[#allocation70_spill] sm:$0xff] }
 0x238   : > { %2654 = vmatmul.mubr.bf16.gmra.mrb[140].mxu0 %v1355_v46  ;;  %v6356_v36 = vcombine.low %v11797_v3, %v9365_v4 }
 0x239   : > { %2903 = vmatmul.mubr.bf16.gmra.mrb[140].mxu1 %v9358_v39  ;;  %2661 = vmatprep.mubr.bf16.mxu0 %v9321_v31  ;;  %v11796_v39 = vld [vmem:[#allocation68_spill] sm:$0xff]  ;;  %v1235_v31 = vunpack.c.h.b16 %v9399_v24 }
 0x23a   : > { %2910 = vmatprep.mubr.bf16.mxu1 %v9365_v4 }
 0x23b   : > { %v2165_v11 = vpop.f32.mrb[36].mxu0  ;;  %v2414_v26 = vpop.f32.mrb[36].mxu1 }
 0x23c   : > { %v2167_v47 = vpop.f32.mrb[37].mxu0  ;;  %v2416_v14 = vpop.f32.mrb[37].mxu1  ;;  %v9823_v23 = vadd.f32 %v2414_v26, %v2165_v11  ;;  %v1372_v26 = vpack.c.b16 %v1237_v43, %v1235_v31 }
 0x23d   : > { %v2168_v0 = vpop.f32.mrb[38].mxu0  ;;  %v2417_v13 = vpop.f32.mrb[38].mxu1 }
 0x23e   : > { %v2170_v54 = vpop.f32.mrb[39].mxu0  ;;  %v2419_v42 = vpop.f32.mrb[39].mxu1  ;;  %v9825_v46 = vadd.f32 %v2417_v13, %v2168_v0 }
 0x240   : > { %2662 = vmatmul.mubr.bf16.gmra.mrb[144].mxu0 %v11796_v39 }
 0x241   : > { %2911 = vmatmul.mubr.bf16.gmra.mrb[144].mxu1 %v9142_v5  ;;  %2669 = vmatprep.mubr.bf16.mxu0 %v6357_v32 }
 0x242   : > { %2918 = vmatprep.mubr.bf16.mxu1 %v9388_v2  ;;  %v1236_v2 = vunpack.c.l.b16 %v9376_v59 }
 0x243   : > { %v2173_v38 = vpop.f32.mrb[40].mxu0  ;;  %v2422_v44 = vpop.f32.mrb[40].mxu1 }
 0x244   : > { %v2175_v53 = vpop.f32.mrb[41].mxu0  ;;  %v2424_v63 = vpop.f32.mrb[41].mxu1  ;;  %v9834_v47 = vadd.f32 %v2422_v44, %v2173_v38  ;;  %v1371_v39 = vpack.c.b16 %v1236_v2, %v1234_v33  ;;  %v11798_v2 = vld [vmem:[#allocation81_spill] sm:$0xff] }
 0x245   : > { %v2176_v11 = vpop.f32.mrb[42].mxu0  ;;  %v2425_v14 = vpop.f32.mrb[42].mxu1 }
 0x246   : > { %v2178_v5 = vpop.f32.mrb[43].mxu0  ;;  %v2427_v0 = vpop.f32.mrb[43].mxu1  ;;  %v9836_v32 = vadd.f32 %v2425_v14, %v2176_v11  ;;  %v6365_v11 = vcombine.low %v9287_v19, %v9475_v34 }
 0x248   : > { %2670 = vmatmul.mubr.bf16.gmra.mrb[148].mxu0 %v6356_v36 }
 0x249   : > { %2919 = vmatmul.mubr.bf16.gmra.mrb[148].mxu1 %v9416_v50  ;;  %2677 = vmatprep.mubr.bf16.mxu0 %v1372_v26 }
 0x24a   : > { %2926 = vmatprep.mubr.bf16.mxu1 %v9422_v9 }
 0x24b   : > { %v2181_v13 = vpop.f32.mrb[44].mxu0  ;;  %v2430_v54 = vpop.f32.mrb[44].mxu1 }
 0x24c   : > { %v2183_v42 = vpop.f32.mrb[45].mxu0  ;;  %v2432_v31 = vpop.f32.mrb[45].mxu1  ;;  %v9842_v38 = vadd.f32 %v2430_v54, %v2181_v13 }
 0x24d   : > { %v2184_v43 = vpop.f32.mrb[46].mxu0  ;;  %v2433_v44 = vpop.f32.mrb[46].mxu1  ;;  %v11799_v42 = vld [vmem:[#allocation76_spill] sm:$0xff] }
 0x24e   : > { %v2186_v53 = vpop.f32.mrb[47].mxu0  ;;  %v2435_v3 = vpop.f32.mrb[47].mxu1  ;;  %v9844_v36 = vadd.f32 %v2433_v44, %v2184_v43 }
 0x250   : > { %2678 = vmatmul.mubr.bf16.gmra.mrb[152].mxu0 %v1371_v39  ;;  %v6364_v39 = vcombine.low %v11799_v42, %v9442_v29 }
 0x251   : > { %2927 = vmatmul.mubr.bf16.gmra.mrb[152].mxu1 %v9436_v52  ;;  %2685 = vmatprep.mubr.bf16.mxu0 %v9412_v22  ;;  %v1247_v22 = vunpack.c.h.b16 %v9475_v34  ;;  %v1249_v52 = vunpack.c.l.b16 %v9312_v30  ;;  %v1246_v30 = vunpack.c.h.b16 %v9442_v29 }
 0x252   : > { %2934 = vmatprep.mubr.bf16.mxu1 %v9442_v29  ;;  %v11803_v29 = vld [vmem:[#allocation85_spill] sm:$0xff] }
 0x253   : > { %v2189_v4 = vpop.f32.mrb[48].mxu0  ;;  %v2438_v59 = vpop.f32.mrb[48].mxu1  ;;  %v1388_v44 = vpack.c.b16 %v1249_v52, %v1247_v22 }
 0x254   : > { %v2191_v50 = vpop.f32.mrb[49].mxu0  ;;  %v2440_v9 = vpop.f32.mrb[49].mxu1  ;;  %v9851_v26 = vadd.f32 %v2438_v59, %v2189_v4  ;;  %v11800_v59 = vld [vmem:[#allocation79_spill] sm:$0xff] }
 0x255   : > { %v2192_v63 = vpop.f32.mrb[50].mxu0  ;;  %v2441_v14 = vpop.f32.mrb[50].mxu1  ;;  %v1248_v50 = vunpack.c.l.b16 %v11800_v59  ;;  %v11801_v9 = vld [vmem:[#allocation86_spill] sm:$0xff] }
 0x256   : > { %v2194_v5 = vpop.f32.mrb[51].mxu0  ;;  %v2443_v0 = vpop.f32.mrb[51].mxu1  ;;  %v9853_v33 = vadd.f32 %v2441_v14, %v2192_v63  ;;  %v11802_v63 = vld [vmem:[#allocation88_spill] sm:$0xff] }
 0x257   : > { %v1387_v0 = vpack.c.b16 %v1248_v50, %v1246_v30 }
 0x258   : > { %2686 = vmatmul.mubr.bf16.gmra.mrb[156].mxu0 %v9382_v20 }
 0x259   : > { %2935 = vmatmul.mubr.bf16.gmra.mrb[156].mxu1 %v9237_v61  ;;  %2693 = vmatprep.mubr.bf16.mxu0 %v6365_v11 }
 0x25a   : > { %2942 = vmatprep.mubr.bf16.mxu1 %v11798_v2 }
 0x25b   : > { %v2197_v13 = vpop.f32.mrb[52].mxu0  ;;  %v2446_v19 = vpop.f32.mrb[52].mxu1 }
 0x25c   : > { %v2199_v54 = vpop.f32.mrb[53].mxu0  ;;  %v2448_v31 = vpop.f32.mrb[53].mxu1  ;;  %v9862_v53 = vadd.f32 %v2446_v19, %v2197_v13 }
 0x25d   : > { %v2200_v43 = vpop.f32.mrb[54].mxu0  ;;  %v2449_v20 = vpop.f32.mrb[54].mxu1 }
 0x25e   : > { %v2202_v61 = vpop.f32.mrb[55].mxu0  ;;  %v2451_v3 = vpop.f32.mrb[55].mxu1  ;;  %v9864_v4 = vadd.f32 %v2449_v20, %v2200_v43 }
 0x25f   : > { %v11804_v61 = vld [vmem:[#allocation93_spill] sm:$0xff]  ;;  %v11805_v3 = vld [vmem:[#allocation82_spill] sm:$0xff] }
 0x260   : > { %2694 = vmatmul.mubr.bf16.gmra.mrb[160].mxu0 %v6364_v39  ;;  %v6373_v30 = vcombine.low %v11805_v3, %v11804_v61 }
 0x261   : > { %2943 = vmatmul.mubr.bf16.gmra.mrb[160].mxu1 %v11801_v9  ;;  %2701 = vmatprep.mubr.bf16.mxu0 %v1388_v44 }
 0x262   : > { %2950 = vmatprep.mubr.bf16.mxu1 %v11802_v63 }
 0x263   : > { %v2205_v11 = vpop.f32.mrb[56].mxu0  ;;  %v2454_v14 = vpop.f32.mrb[56].mxu1 }
 0x264   : > { %v2207_v5 = vpop.f32.mrb[57].mxu0  ;;  %v2456_v22 = vpop.f32.mrb[57].mxu1  ;;  %v9870_v2 = vadd.f32 %v2454_v14, %v2205_v11  ;;  %v11807_v14 = vld [vmem:[#allocation84_spill] sm:$0xff] }
 0x265   : > { %v2208_v52 = vpop.f32.mrb[58].mxu0  ;;  %v2457_v13 = vpop.f32.mrb[58].mxu1  ;;  %v1259_v5 = vunpack.c.h.b16 %v11804_v61 }
 0x266   : > { %v2210_v19 = vpop.f32.mrb[59].mxu0  ;;  %v2459_v54 = vpop.f32.mrb[59].mxu1  ;;  %v9872_v42 = vadd.f32 %v2457_v13, %v2208_v52  ;;  %v11809_v52 = vld [vmem:[#allocation94_spill] sm:$0xff] }
 0x268   : > { %2702 = vmatmul.mubr.bf16.gmra.mrb[164].mxu0 %v1387_v0  ;;  %v11808_v0 = vld [vmem:[#allocation90_spill] sm:$0xff] }
 0x269   : > { %2951 = vmatmul.mubr.bf16.gmra.mrb[164].mxu1 %v9517_v56  ;;  %2709 = vmatprep.mubr.bf16.mxu0 %v11803_v29  ;;  %v11806_v56 = vld [vmem:[#allocation80_spill] sm:$0xff]  ;;  %v1261_v22 = vunpack.c.l.b16 %v11808_v0  ;;  %v11810_v29 = vld [vmem:[#allocation83_spill] sm:$0xff] }
 0x26a   : > { %2958 = vmatprep.mubr.bf16.mxu1 %v9522_v21  ;;  %v11812_v0 = vld [vmem:[#allocation99_spill] sm:$0xff] }
 0x26b   : > { %v2213_v39 = vpop.f32.mrb[60].mxu0  ;;  %v2462_v31 = vpop.f32.mrb[60].mxu1 }
 0x26c   : > { %v2215_v43 = vpop.f32.mrb[61].mxu0  ;;  %v2464_v44 = vpop.f32.mrb[61].mxu1  ;;  %v9879_v59 = vadd.f32 %v2462_v31, %v2213_v39  ;;  %v6372_v39 = vcombine.low %v11810_v29, %v9522_v21 }
 0x26d   : > { %v2216_v20 = vpop.f32.mrb[62].mxu0  ;;  %v2465_v50 = vpop.f32.mrb[62].mxu1  ;;  %v1404_v44 = vpack.c.b16 %v1261_v22, %v1259_v5 }
 0x26e   : > { %v2218_v9 = vpop.f32.mrb[63].mxu0  ;;  %v2467_v63 = vpop.f32.mrb[63].mxu1  ;;  %v9881_v11 = vadd.f32 %v2465_v50, %v2216_v20 }
 0x26f   : > { %v1258_v63 = vunpack.c.h.b16 %v9522_v21  ;;  %v11816_v21 = vld [vmem:[#allocation98_spill] sm:$0xff] }
 0x270   : > { %2710 = vmatmul.mubr.bf16.gmra.mrb[168].mxu0 %v11806_v56  ;;  %v11811_v56 = vld [vmem:[#allocation91_spill] sm:$0xff] }
 0x271   : > { %2959 = vmatmul.mubr.bf16.gmra.mrb[168].mxu1 %v11807_v14  ;;  %2717 = vmatprep.mubr.bf16.mxu0 %v6373_v30  ;;  %v1260_v14 = vunpack.c.l.b16 %v11811_v56 }
 0x272   : > { %2966 = vmatprep.mubr.bf16.mxu1 %v11809_v52  ;;  %v11813_v52 = vld [vmem:[#allocation101_spill] sm:$0xff] }
 0x273   : > { %v2221_v13 = vpop.f32.mrb[64].mxu0  ;;  %v2470_v19 = vpop.f32.mrb[64].mxu1  ;;  %v1403_v22 = vpack.c.b16 %v1260_v14, %v1258_v63 }
 0x274   : > { %v2223_v54 = vpop.f32.mrb[65].mxu0  ;;  %v2472_v31 = vpop.f32.mrb[65].mxu1  ;;  %v9890_v20 = vadd.f32 %v2470_v19, %v2221_v13 }
 0x275   : > { %v2224_v43 = vpop.f32.mrb[66].mxu0  ;;  %v2473_v3 = vpop.f32.mrb[66].mxu1 }
 0x276   : > { %v2226_v50 = vpop.f32.mrb[67].mxu0  ;;  %v2475_v30 = vpop.f32.mrb[67].mxu1  ;;  %v9892_v9 = vadd.f32 %v2473_v3, %v2224_v43 }
 0x278   : > { %2718 = vmatmul.mubr.bf16.gmra.mrb[172].mxu0 %v6372_v39 }
 0x279   : > { %2967 = vmatmul.mubr.bf16.gmra.mrb[172].mxu1 %v11812_v0  ;;  %2725 = vmatprep.mubr.bf16.mxu0 %v1404_v44  ;;  %v11817_v0 = vld [vmem:[#allocation106_spill] sm:$0xff] }
 0x27a   : > { %2974 = vmatprep.mubr.bf16.mxu1 %v11813_v52  ;;  %v11818_v52 = vld [vmem:[#allocation96_spill] sm:$0xff] }
 0x27b   : > { %v2229_v54 = vpop.f32.mrb[68].mxu0  ;;  %v2478_v29 = vpop.f32.mrb[68].mxu1 }
 0x27c   : > { %v2231_v5 = vpop.f32.mrb[69].mxu0  ;;  %v2480_v13 = vpop.f32.mrb[69].mxu1  ;;  %v9898_v31 = vadd.f32 %v2478_v29, %v2229_v54  ;;  %v6381_v54 = vcombine.low %v11818_v52, %v11817_v0 }
 0x27d   : > { %v2232_v19 = vpop.f32.mrb[70].mxu0  ;;  %v2481_v43 = vpop.f32.mrb[70].mxu1 }
 0x27e   : > { %11814 = vst [vmem:[#allocation41_spill] sm:$0xff] %v9898_v31  ;;  %v2234_v3 = vpop.f32.mrb[71].mxu0  ;;  %v2483_v39 = vpop.f32.mrb[71].mxu1  ;;  %v9900_v50 = vadd.f32 %v2481_v43, %v2232_v19  ;;  %v11822_v43 = vld [vmem:[#allocation97_spill] sm:$0xff] }
 0x27f   : > { %v1271_v3 = vunpack.c.h.b16 %v11817_v0  ;;  %v11823_v39 = vld [vmem:[#allocation103_spill] sm:$0xff] }
 0x280   : > { %11815 = vst [vmem:[#allocation43_spill] sm:$0xff] %v9900_v50  ;;  %2726 = vmatmul.mubr.bf16.gmra.mrb[176].mxu0 %v1403_v22  ;;  %v11829_v50 = vld [vmem:[#allocation110_spill] sm:$0xff] }
 0x281   : > { %2975 = vmatmul.mubr.bf16.gmra.mrb[176].mxu1 %v9590_v6  ;;  %2733 = vmatprep.mubr.bf16.mxu0 %v11816_v21  ;;  %v11821_v6 = vld [vmem:[#allocation92_spill] sm:$0xff]  ;;  %v1273_v21 = vunpack.c.l.b16 %v11823_v39  ;;  %v1270_v39 = vunpack.c.h.b16 %v9595_v12 }
 0x282   : > { %2982 = vmatprep.mubr.bf16.mxu1 %v9595_v12 }
 0x283   : > { %v2237_v44 = vpop.f32.mrb[72].mxu0  ;;  %v2486_v30 = vpop.f32.mrb[72].mxu1 }
 0x284   : > { %v2239_v56 = vpop.f32.mrb[73].mxu0  ;;  %v2488_v63 = vpop.f32.mrb[73].mxu1  ;;  %v9907_v29 = vadd.f32 %v2486_v30, %v2237_v44  ;;  %v11825_v30 = vld [vmem:[#allocation95_spill] sm:$0xff] }
 0x285   : > { %v2240_v14 = vpop.f32.mrb[74].mxu0  ;;  %v2489_v5 = vpop.f32.mrb[74].mxu1  ;;  %v11824_v56 = vld [vmem:[#allocation107_spill] sm:$0xff] }
 0x286   : > { %11819 = vst [vmem:[#allocation46_spill] sm:$0xff] %v9907_v29  ;;  %v2242_v13 = vpop.f32.mrb[75].mxu0  ;;  %v2491_v19 = vpop.f32.mrb[75].mxu1  ;;  %v9909_v22 = vadd.f32 %v2489_v5, %v2240_v14  ;;  %v1420_v5 = vpack.c.b16 %v1273_v21, %v1271_v3 }
 0x287   : > { %v6380_v13 = vcombine.low %v11825_v30, %v9595_v12  ;;  %v11833_v12 = vld [vmem:[#allocation109_spill] sm:$0xff] }
 0x288   : > { %11820 = vst [vmem:[#allocation40_spill] sm:$0xff] %v9909_v22  ;;  %2734 = vmatmul.mubr.bf16.gmra.mrb[180].mxu0 %v11821_v6 }
 0x289   : > { %2983 = vmatmul.mubr.bf16.gmra.mrb[180].mxu1 %v11822_v43  ;;  %2741 = vmatprep.mubr.bf16.mxu0 %v6381_v54 }
 0x28a   : > { %2990 = vmatprep.mubr.bf16.mxu1 %v11824_v56  ;;  %v11828_v56 = vld [vmem:[#allocation104_spill] sm:$0xff] }
 0x28b   : > { %v2245_v63 = vpop.f32.mrb[76].mxu0  ;;  %v2494_v52 = vpop.f32.mrb[76].mxu1  ;;  %v1272_v0 = vunpack.c.l.b16 %v11828_v56 }
 0x28c   : > { %v2247_v44 = vpop.f32.mrb[77].mxu0  ;;  %v2496_v19 = vpop.f32.mrb[77].mxu1  ;;  %v9918_v22 = vadd.f32 %v2494_v52, %v2245_v63 }
 0x28d   : > { %v2248_v14 = vpop.f32.mrb[78].mxu0  ;;  %v2497_v6 = vpop.f32.mrb[78].mxu1  ;;  %v11830_v44 = vld [vmem:[#allocation112_spill] sm:$0xff]  ;;  %v1419_v21 = vpack.c.b16 %v1272_v0, %v1270_v39 }
 0x28e   : > { %11826 = vst [vmem:[#allocation48_spill] sm:$0xff] %v9918_v22  ;;  %v2250_v43 = vpop.f32.mrb[79].mxu0  ;;  %v2499_v54 = vpop.f32.mrb[79].mxu1  ;;  %v9920_v29 = vadd.f32 %v2497_v6, %v2248_v14 }
 0x290   : > { %11827 = vst [vmem:[#allocation34_spill] sm:$0xff] %v9920_v29  ;;  %2742 = vmatmul.mubr.bf16.gmra.mrb[184].mxu0 %v6380_v13 }
 0x291   : > { %2991 = vmatmul.mubr.bf16.gmra.mrb[184].mxu1 %v11829_v50  ;;  %2749 = vmatprep.mubr.bf16.mxu0 %v1420_v5 }
 0x292   : > { %2998 = vmatprep.mubr.bf16.mxu1 %v11830_v44  ;;  %v6389_v44 = vcombine.low %v9621_v18, %v9685_v25  ;;  %v1283_v18 = vunpack.c.h.b16 %v9685_v25 }
 0x293   : > { %v2253_v30 = vpop.f32.mrb[80].mxu0  ;;  %v2502_v19 = vpop.f32.mrb[80].mxu1 }
 0x294   : > { %v2255_v3 = vpop.f32.mrb[81].mxu0  ;;  %v2504_v63 = vpop.f32.mrb[81].mxu1  ;;  %v9926_v43 = vadd.f32 %v2502_v19, %v2253_v30 }
 0x295   : > { %v2256_v52 = vpop.f32.mrb[82].mxu0  ;;  %v2505_v14 = vpop.f32.mrb[82].mxu1  ;;  %v473_v63 = vld [vmem:[%s8658_s16 + $0x12c] sm:$0x1] }
 0x296   : > { %11831 = vst [vmem:[#allocation33_spill] sm:$0xff] %v9926_v43  ;;  %v2258_v6 = vpop.f32.mrb[83].mxu0  ;;  %v2507_v13 = vpop.f32.mrb[83].mxu1  ;;  %v9928_v54 = vadd.f32 %v2505_v14, %v2256_v52  ;;  %v11836_v52 = vld [vmem:[#allocation105_spill] sm:$0xff] }
 0x297   : > { %v9942_v14 = vld [vmem:[%s8658_s16 + $0x130] sm:$0xf]  ;;  %v9945_v6 = vld [vmem:[%s8658_s16 + $0x134] sm:$0xf]  ;;  %v1285_v13 = vunpack.c.l.b16 %v9672_v45 }
 0x298   : > { %11832 = vst [vmem:[#allocation31_spill] sm:$0xff] %v9928_v54  ;;  %2750 = vmatmul.mubr.bf16.gmra.mrb[188].mxu0 %v1419_v21 }
 0x299   : > { %2999 = vmatmul.mubr.bf16.gmra.mrb[188].mxu1 %v9659_v17  ;;  %2757 = vmatprep.mubr.bf16.mxu0 %v11833_v12  ;;  %v11837_v12 = vld [vmem:[#allocation73_spill] sm:$0xff] }
 0x29a   : > { %3006 = vmatprep.mubr.bf16.mxu1 %v9664_v57 }
 0x29b   : > { %v2261_v50 = vpop.f32.mrb[84].mxu0  ;;  %v2510_v0 = vpop.f32.mrb[84].mxu1 }
 0x29c   : > { %v2263_v5 = vpop.f32.mrb[85].mxu0  ;;  %v2512_v39 = vpop.f32.mrb[85].mxu1  ;;  %v9935_v30 = vadd.f32 %v2510_v0, %v2261_v50  ;;  %v1141_v50 = vshll.u32 %v11837_v12, 16  ;;  %v6324_v0 = vcombine.low %v9701_v51, %v473_v63 }
 0x29d   : > { %v2264_v56 = vpop.f32.mrb[86].mxu0  ;;  %v2513_v19 = vpop.f32.mrb[86].mxu1  ;;  %v9955_v39 = vcombine.low %v9942_v14, %v9945_v6 }
 0x29e   : > { %11834 = vst [vmem:[#allocation49_spill] sm:$0xff] %v9935_v30  ;;  %v2266_v3 = vpop.f32.mrb[87].mxu0  ;;  %v2515_v21 = vpop.f32.mrb[87].mxu1  ;;  %v9937_v17 = vadd.f32 %v2513_v19, %v2264_v56  ;;  %v1139_v30 = vshrl.u32 %v11837_v12, 16  ;;  %v1143_v54 = vrot.slane %v1141_v50, 1  ;;  %v1146_v29 = vshll.u32 %v6324_v0, 16 }
 0x29f   : > { %v9960_v3 = vld [vmem:[%s8658_s16 + $0x138] sm:$0xf]  ;;  %v477_v21 = vld [vmem:[%s8658_s16 + $0x13c] sm:$0x1] }
 0x2a0   : > { %11835 = vst [vmem:[#allocation54_spill] sm:$0xff] %v9937_v17  ;;  %2758 = vmatmul.mubr.bf16.gmra.mrb[192].mxu0 %v11836_v52  ;;  %v1148_v50 = vrot.slane %v1146_v29, 1 }
 0x2a1   : > { %3007 = vmatmul.mubr.bf16.gmra.mrb[192].mxu1 %v9624_v41  ;;  %2765 = vmatprep.mubr.bf16.mxu0 %v6389_v44  ;;  %v11838_v41 = vld [vmem:[#allocation108_spill] sm:$0xff] }
 0x2a2   : > { %3014 = vmatprep.mubr.bf16.mxu1 %v9679_v58  ;;  %v6388_v44 = vcombine.low %v11838_v41, %v9664_v57  ;;  %v1436_v58 = vpack.c.b16 %v1285_v13, %v1283_v18  ;;  %v1169_v41 = vshll.u32 %v9955_v39, 16  ;;  %v1284_v18 = vunpack.c.l.b16 %v9669_v16 }
 0x2a3   : > { %v2269_v5 = vpop.f32.mrb[88].mxu0  ;;  %v2518_v56 = vpop.f32.mrb[88].mxu1  ;;  %v1144_v13 = vor.u32 %v1143_v54, %v1139_v30  ;;  %v1150_v54 = vshrl.u32 %v6324_v0, 16 }
 0x2a4   : > { %v2271_v19 = vpop.f32.mrb[89].mxu0  ;;  %v2520_v45 = vpop.f32.mrb[89].mxu1  ;;  %v9963_v25 = vadd.f32 %v2518_v56, %v2269_v5  ;;  %v1167_v5 = vshrl.u32 %v9955_v39, 16  ;;  %v1171_v56 = vrot.slane %v1169_v41, 1 }
 0x2a5   : > { %v2272_v52 = vpop.f32.mrb[90].mxu0  ;;  %v2521_v17 = vpop.f32.mrb[90].mxu1  ;;  %v9967_v19 = vcombine.low %v9960_v3, %v477_v21  ;;  %v1282_v45 = vunpack.c.h.b16 %v9664_v57  ;;  %v1149_v30 = vsel %vm802_vm0, %v1144_v13, %v1148_v50 }
 0x2a6   : > { %11839 = vst [vmem:[#allocation37_spill] sm:$0xff] %v9963_v25  ;;  %v2274_v63 = vpop.f32.mrb[91].mxu0  ;;  %v2523_v43 = vpop.f32.mrb[91].mxu1  ;;  %v9970_v22 = vadd.f32 %v2521_v17, %v2272_v52  ;;  %v1172_v41 = vor.u32 %v1171_v56, %v1167_v5 }
 0x2a7   : > { %v1174_v21 = vshll.u32 %v9967_v19, 16 }
 0x2a8   : > { %11840 = vst [vmem:[#allocation50_spill] sm:$0xff] %v9970_v22  ;;  %2766 = vmatmul.mubr.bf16.gmra.mrb[196].mxu0 %v6388_v44  ;;  %v1435_v44 = vpack.c.b16 %v1284_v18, %v1282_v45  ;;  %v1152_v18 = vor.u32 %v1150_v54, %v1148_v50 }
 0x2a9   : > { %3015 = vmatmul.mubr.bf16.gmra.mrb[196].mxu1 %v9704_v55  ;;  %2773 = vmatprep.mubr.bf16.mxu0 %v1436_v58  ;;  %v1153_v58 = vrot.slane %v11837_v12, 1  ;;  %v1176_v25 = vrot.slane %v1174_v21, 1 }
 0x2aa   : > { %3022 = vmatprep.mubr.bf16.mxu1 %v9710_v1  ;;  %v9981_v1 = vrot.slane %v6324_v0, 1  ;;  %v1178_v0 = vshrl.u32 %v9967_v19, 16 }
 0x2ab   : > { %v2277_v43 = vpop.f32.mrb[92].mxu0  ;;  %v2526_v17 = vpop.f32.mrb[92].mxu1  ;;  %v1177_v13 = vsel %vm802_vm0, %v1172_v41, %v1176_v25 }
 0x2ac   : > { %v2279_v52 = vpop.f32.mrb[93].mxu0  ;;  %v2528_v63 = vpop.f32.mrb[93].mxu1  ;;  %v9978_v22 = vadd.f32 %v2526_v17, %v2277_v43  ;;  %v9990_v45 = vsel %vm1073_vm4, %v1153_v58, %v9981_v1  ;;  %v1297_v54 = vunpack.c.l.b16 %v9981_v1 }
 0x2ad   : > { %v2280_v57 = vpop.f32.mrb[94].mxu0  ;;  %v2529_v16 = vpop.f32.mrb[94].mxu1  ;;  %v6399_v63 = vcombine.low %v1152_v18, %v1177_v13  ;;  %v1295_v58 = vunpack.c.h.b16 %v9990_v45 }
 0x2ae   : > { %v2282_v55 = vpop.f32.mrb[95].mxu0  ;;  %v2531_v29 = vpop.f32.mrb[95].mxu1  ;;  %v9984_v31 = vadd.f32 %v2529_v16, %v2280_v57  ;;  %v1180_v57 = vor.u32 %v1178_v0, %v1176_v25 }
 0x2af   : > { %v11842_v55 = vld [vmem:[#allocation114_spill] sm:$0xff] }
 0x2b0   : > { %2774 = vmatmul.mubr.bf16.gmra.mrb[200].mxu0 %v1435_v44  ;;  %v1302_v29 = vunpack.c.l.b16 %v1180_v57 }
 0x2b1   : > { %3023 = vmatmul.mubr.bf16.gmra.mrb[200].mxu1 %v9721_v40  ;;  %2781 = vmatprep.mubr.bf16.mxu0 %v9698_v48  ;;  %v6397_v40 = vcombine.low %v9689_v8, %v9990_v45  ;;  %v1300_v8 = vunpack.c.h.b16 %v1177_v13  ;;  %v1296_v13 = vunpack.c.l.b16 %v1152_v18 }
 0x2b2   : > { %3030 = vmatprep.mubr.bf16.mxu1 %v1149_v30 }
 0x2b3   : > { %v2285_v43 = vpop.f32.mrb[96].mxu0  ;;  %v2534_v5 = vpop.f32.mrb[96].mxu1 }
 0x2b4   : > { %v2287_v56 = vpop.f32.mrb[97].mxu0  ;;  %v2536_v21 = vpop.f32.mrb[97].mxu1  ;;  %v9996_v52 = vadd.f32 %v2534_v5, %v2285_v43 }
 0x2b5   : > { %v2288_v17 = vpop.f32.mrb[98].mxu0  ;;  %v2537_v48 = vpop.f32.mrb[98].mxu1  ;;  %v11843_v56 = vld [vmem:[#allocation115_spill] sm:$0xff]  ;;  %v6398_v21 = vcombine.low %v9701_v51, %v9942_v14  ;;  %v6402_v51 = vcombine.low %v9945_v6, %v9960_v3 }
 0x2b6   : > { %v2290_v44 = vpop.f32.mrb[99].mxu0  ;;  %v2539_v16 = vpop.f32.mrb[99].mxu1  ;;  %v9998_v50 = vadd.f32 %v2537_v48, %v2288_v17  ;;  %v6396_v25 = vcombine.low %v11843_v56, %v1149_v30  ;;  %v1452_v17 = vpack.c.b16 %v1297_v54, %v1295_v58 }
 0x2b7   : > { %v1454_v44 = vpack.c.b16 %v1302_v29, %v1300_v8 }
 0x2b8   : > { %11841 = vst [vmem:[#allocation59_spill] sm:$0xff] %v9998_v50  ;;  %2782 = vmatmul.mubr.bf16.gmra.mrb[204].mxu0 %v11842_v55 }
 0x2b9   : > { %3031 = vmatmul.mubr.bf16.gmra.mrb[204].mxu1 %v11837_v12  ;;  %2789 = vmatprep.mubr.bf16.mxu0 %v6397_v40 }
 0x2ba   : > { %3038 = vmatprep.mubr.bf16.mxu1 %v6399_v63  ;;  %v1294_v63 = vunpack.c.h.b16 %v1149_v30 }
 0x2bb   : > { %v2293_v41 = vpop.f32.mrb[100].mxu0  ;;  %v2542_v5 = vpop.f32.mrb[100].mxu1 }
 0x2bc   : > { %v2295_v43 = vpop.f32.mrb[101].mxu0  ;;  %v2544_v48 = vpop.f32.mrb[101].mxu1  ;;  %v10007_v12 = vadd.f32 %v2542_v5, %v2293_v41  ;;  %v1451_v56 = vpack.c.b16 %v1296_v13, %v1294_v63  ;;  %v11846_v13 = vld [vmem:[#allocation23_spill] sm:$0xff] }
 0x2bd   : > { %v2296_v0 = vpop.f32.mrb[102].mxu0  ;;  %v2545_v16 = vpop.f32.mrb[102].mxu1 }
 0x2be   : > { %v2298_v40 = vpop.f32.mrb[103].mxu0  ;;  %v2547_v55 = vpop.f32.mrb[103].mxu1 }
 0x2c0   : > { %2790 = vmatmul.mubr.bf16.gmra.mrb[208].mxu0 %v6396_v25  ;;  %v11844_v25 = vld [vmem:[#allocation38_spill] sm:$0xff] }
 0x2c1   : > { %3039 = vmatmul.mubr.bf16.gmra.mrb[208].mxu1 %v6398_v21  ;;  %2797 = vmatprep.mubr.bf16.mxu0 %v1452_v17  ;;  %v11845_v21 = vld [vmem:[#allocation117_spill] sm:$0xff] }
 0x2c2   : > { %3046 = vmatprep.mubr.bf16.mxu1 %v1454_v44 }
 0x2c3   : > { %v2301_v57 = vpop.f32.mrb[104].mxu0  ;;  %v2550_v0 = vpop.f32.mrb[104].mxu1 }
 0x2c4   : > { %v2303_v43 = vpop.f32.mrb[105].mxu0  ;;  %v2552_v14 = vpop.f32.mrb[105].mxu1 }
 0x2c5   : > { %v2304_v50 = vpop.f32.mrb[106].mxu0  ;;  %v2553_v54 = vpop.f32.mrb[106].mxu1 }
 0x2c6   : > { %v2306_v58 = vpop.f32.mrb[107].mxu0  ;;  %v2555_v8 = vpop.f32.mrb[107].mxu1 }
 0x2c7   : > { %v11849_v8 = vld [vmem:[#allocation26_spill] sm:$0xff] }
 0x2c8   : > { %2798 = vmatmul.mubr.bf16.gmra.mrb[212].mxu0 %v1451_v56  ;;  %v11847_v56 = vld [vmem:[#allocation42_spill] sm:$0xff] }
 0x2c9   : > { %3047 = vmatmul.mubr.bf16.gmra.mrb[212].mxu1 %v6402_v51  ;;  %7281 = vmatprep.mubr.msk.bf16.mxu0 %vm8331_vm5, %v11765_v60  ;;  %v11848_v51 = vld [vmem:[#allocation118_spill] sm:$0xff] }
 0x2ca   : > { %7369 = vmatprep.mubr.msk.bf16.mxu1 %vm8331_vm5, %v11765_v60 }
 0x2cb   : > { %v2591_v30 = vpop.f32.mrb[108].mxu0  ;;  %v2840_v29 = vpop.f32.mrb[108].mxu1 }
 0x2cc   : > { %v2593_v18 = vpop.f32.mrb[109].mxu0  ;;  %v2842_v41 = vpop.f32.mrb[109].mxu1 }
 0x2cd   : > { %v2594_v50 = vpop.f32.mrb[110].mxu0  ;;  %v2843_v6 = vpop.f32.mrb[110].mxu1 }
 0x2ce   : > { %v2596_v5 = vpop.f32.mrb[111].mxu0  ;;  %v2845_v3 = vpop.f32.mrb[111].mxu1  ;;  %v1182_v6 = vrot.slane %v9967_v19, 1 }
 0x2cf   : > { %v1181_v5 = vrot.slane %v9955_v39, 1 }
 0x2d0   : > { %7282 = vmatmul.mubr.bf16.vlgmr.msra.gmra.mrb[216].mxu0 %v11844_v25  ;;  %v11850_v25 = vld [vmem:[#allocation32_spill] sm:$0xff] }
 0x2d1   : > { %7370 = vmatmul.mubr.bf16.vlgmr.msra.gmra.mrb[216].mxu1 %v11845_v21  ;;  %7285 = vmatprep.mubr.msk.bf16.mxu0 %vm8331_vm5, %v11765_v60  ;;  %v10047_v39 = vsel %vm1073_vm4, %v1181_v5, %v1182_v6 }
 0x2d2   : > { %7373 = vmatprep.mubr.msk.bf16.mxu1 %vm8331_vm5, %v11765_v60 }
 0x2d3   : > { %v2599_v17 = vpop.f32.mrb[112].mxu0 }
 0x2d4   : > { %v2601_v48 = vpop.f32.mrb[113].mxu0  ;;  %v2848_v40 = vpop.f32.mrb[112].mxu1 }
 0x2d5   : > { %v2602_v44 = vpop.f32.mrb[114].mxu0  ;;  %v2850_v16 = vpop.f32.mrb[113].mxu1  ;;  %v11851_v48 = vld [vmem:[#allocation47_spill] sm:$0xff] }
 0x2d6   : > { %v2604_v55 = vpop.f32.mrb[115].mxu0  ;;  %v2851_v63 = vpop.f32.mrb[114].mxu1  ;;  %v2603_v57 = vadd.f32 %v2602_v44, %v11846_v13 }
 0x2d7   : > { %v2853_v43 = vpop.f32.mrb[115].mxu1 }
 0x2d8   : > { %7286 = vmatmul.mubr.bf16.gmra.mrb[220].mxu0 %v11847_v56  ;;  %v10023_v0 = vadd.f32 %v2851_v63, %v2603_v57  ;;  %v11852_v63 = vld [vmem:[#allocation36_spill] sm:$0xff] }
 0x2d9   : > { %7374 = vmatmul.mubr.bf16.gmra.mrb[220].mxu1 %v11848_v51  ;;  %7289 = vmatprep.mubr.msk.bf16.mxu0 %vm8331_vm5, %v11765_v60 }
 0x2da   : > { %7377 = vmatprep.mubr.msk.bf16.mxu1 %vm8331_vm5, %v11765_v60 }
 0x2db   : > { %v2607_v14 = vpop.f32.mrb[116].mxu0 }
 0x2dc   : > { %v2609_v58 = vpop.f32.mrb[117].mxu0  ;;  %v2856_v54 = vpop.f32.mrb[116].mxu1  ;;  %v2608_v30 = vadd.f32 %v2607_v14, %v11849_v8 }
 0x2dd   : > { %v2610_v18 = vpop.f32.mrb[118].mxu0  ;;  %v2858_v29 = vpop.f32.mrb[117].mxu1  ;;  %v11853_v58 = vld [vmem:[#allocation25_spill] sm:$0xff] }
 0x2de   : > { %v2612_v50 = vpop.f32.mrb[119].mxu0  ;;  %v2859_v41 = vpop.f32.mrb[118].mxu1  ;;  %v10033_v3 = vadd.f32 %v2856_v54, %v2608_v30  ;;  %v2611_v21 = vadd.f32 %v2610_v18, %v11850_v25  ;;  %v11854_v30 = vld [vmem:[#allocation52_spill] sm:$0xff] }
 0x2df   : > { %v2861_v17 = vpop.f32.mrb[119].mxu1 }
 0x2e0   : > { %7290 = vmatmul.mubr.bf16.gmra.mrb[224].mxu0 %v11851_v48  ;;  %v10037_v40 = vadd.f32 %v2859_v41, %v2611_v21 }
 0x2e1   : > { %7378 = vmatmul.mubr.bf16.gmra.mrb[224].mxu1 %v9990_v45  ;;  %7293 = vmatprep.mubr.msk.bf16.mxu0 %vm8331_vm5, %v11765_v60  ;;  %v6400_v45 = vcombine.low %v9981_v1, %v10047_v39 }
 0x2e2   : > { %7381 = vmatprep.mubr.msk.bf16.mxu1 %vm8331_vm5, %v11765_v60 }
 0x2e3   : > { %v2615_v44 = vpop.f32.mrb[120].mxu0 }
 0x2e4   : > { %v2617_v16 = vpop.f32.mrb[121].mxu0  ;;  %v2864_v55 = vpop.f32.mrb[120].mxu1  ;;  %v2616_v13 = vadd.f32 %v2615_v44, %v11852_v63 }
 0x2e5   : > { %v2618_v57 = vpop.f32.mrb[122].mxu0  ;;  %v2866_v43 = vpop.f32.mrb[121].mxu1 }
 0x2e6   : > { %v2620_v56 = vpop.f32.mrb[123].mxu0  ;;  %v2867_v51 = vpop.f32.mrb[122].mxu1  ;;  %v10052_v14 = vadd.f32 %v2864_v55, %v2616_v13  ;;  %v2619_v54 = vadd.f32 %v2618_v57, %v11853_v58  ;;  %v11855_v55 = vld [vmem:[#allocation60_spill] sm:$0xff] }
 0x2e7   : > { %v2869_v8 = vpop.f32.mrb[123].mxu1 }
 0x2e8   : > { %7294 = vmatmul.mubr.bf16.gmra.mrb[228].mxu0 %v11854_v30  ;;  %v10056_v18 = vadd.f32 %v2867_v51, %v2619_v54  ;;  %v11856_v30 = vld [vmem:[#allocation65_spill] sm:$0xff] }
 0x2e9   : > { %7382 = vmatmul.mubr.bf16.gmra.mrb[228].mxu1 %v6400_v45  ;;  %7297 = vmatprep.mubr.msk.bf16.mxu0 %vm8331_vm5, %v11765_v60 }
 0x2ea   : > { %7385 = vmatprep.mubr.msk.bf16.mxu1 %vm8331_vm5, %v11765_v60 }
 0x2eb   : > { %v2623_v29 = vpop.f32.mrb[124].mxu0 }
 0x2ec   : > { %v2625_v1 = vpop.f32.mrb[125].mxu0  ;;  %v2872_v50 = vpop.f32.mrb[124].mxu1  ;;  %v2624_v41 = vadd.f32 %v2623_v29, %v9776_v15 }
 0x2ed   : > { %v2626_v5 = vpop.f32.mrb[126].mxu0  ;;  %v2874_v25 = vpop.f32.mrb[125].mxu1 }
 0x2ee   : > { %v2628_v21 = vpop.f32.mrb[127].mxu0  ;;  %v2875_v17 = vpop.f32.mrb[126].mxu1  ;;  %v10063_v48 = vadd.f32 %v2872_v50, %v2624_v41  ;;  %v2627_v44 = vadd.f32 %v2626_v5, %v9778_v37 }
 0x2ef   : > { %v2877_v16 = vpop.f32.mrb[127].mxu1 }
 0x2f0   : > { %7298 = vmatmul.mubr.bf16.gmra.mrb[232].mxu0 %v11855_v55  ;;  %v10067_v63 = vadd.f32 %v2875_v17, %v2627_v44 }
 0x2f1   : > { %7301 = vmatprep.mubr.msk.bf16.mxu0 %vm8331_vm5, %v11765_v60 }
 0x2f3   : > { %v2631_v13 = vpop.f32.mrb[128].mxu0 }
 0x2f4   : > { %v2633_v57 = vpop.f32.mrb[129].mxu0  ;;  %v2880_v43 = vpop.f32.mrb[128].mxu1  ;;  %v2632_v15 = vadd.f32 %v2631_v13, %v9784_v49  ;;  %v11858_v13 = vld [vmem:[#allocation69_spill] sm:$0xff] }
 0x2f5   : > { %v2634_v45 = vpop.f32.mrb[130].mxu0  ;;  %v2882_v56 = vpop.f32.mrb[129].mxu1 }
 0x2f6   : > { %v2636_v51 = vpop.f32.mrb[131].mxu0  ;;  %v2883_v58 = vpop.f32.mrb[130].mxu1  ;;  %v10072_v54 = vadd.f32 %v2880_v43, %v2632_v15  ;;  %v2635_v37 = vadd.f32 %v2634_v45, %v9786_v28  ;;  %v11857_v28 = vld [vmem:[#allocation30_spill] sm:$0xff] }
 0x2f7   : > { %v2885_v8 = vpop.f32.mrb[131].mxu1 }
 0x2f8   : > { %7302 = vmatmul.mubr.bf16.gmra.mrb[236].mxu0 %v11856_v30  ;;  %v10076_v29 = vadd.f32 %v2883_v58, %v2635_v37 }
 0x2f9   : > { %7305 = vmatprep.mubr.msk.bf16.mxu0 %vm8331_vm5, %v11765_v60 }
 0x2fb   : > { %v2639_v1 = vpop.f32.mrb[132].mxu0 }
 0x2fc   : > { %v2641_v50 = vpop.f32.mrb[133].mxu0  ;;  %v2888_v41 = vpop.f32.mrb[132].mxu1  ;;  %v2640_v49 = vadd.f32 %v2639_v1, %v9793_v7 }
 0x2fd   : > { %v2642_v5 = vpop.f32.mrb[134].mxu0  ;;  %v2890_v25 = vpop.f32.mrb[133].mxu1  ;;  %v11859_v50 = vld [vmem:[#allocation74_spill] sm:$0xff] }
 0x2fe   : > { %v2644_v21 = vpop.f32.mrb[135].mxu0  ;;  %v2891_v17 = vpop.f32.mrb[134].mxu1  ;;  %v10081_v44 = vadd.f32 %v2888_v41, %v2640_v49  ;;  %v2643_v16 = vadd.f32 %v2642_v5, %v11857_v28 }
 0x2ff   : > { %v2893_v55 = vpop.f32.mrb[135].mxu1 }
 0x300   : > { %7306 = vmatmul.mubr.bf16.gmra.mrb[240].mxu0 %v11858_v13  ;;  %v10085_v57 = vadd.f32 %v2891_v17, %v2643_v16 }
 0x301   : > { %7309 = vmatprep.mubr.msk.bf16.mxu0 %vm8331_vm5, %v11765_v60 }
 0x303   : > { %v2647_v43 = vpop.f32.mrb[136].mxu0 }
 0x304   : > { %v2649_v15 = vpop.f32.mrb[137].mxu0  ;;  %v2896_v45 = vpop.f32.mrb[136].mxu1  ;;  %v2648_v7 = vadd.f32 %v2647_v43, %v9806_v27  ;;  %v11860_v43 = vld [vmem:[#allocation75_spill] sm:$0xff] }
 0x305   : > { %v2650_v56 = vpop.f32.mrb[138].mxu0  ;;  %v2898_v51 = vpop.f32.mrb[137].mxu1 }
 0x306   : > { %v2652_v58 = vpop.f32.mrb[139].mxu0  ;;  %v2899_v37 = vpop.f32.mrb[138].mxu1  ;;  %v10090_v8 = vadd.f32 %v2896_v45, %v2648_v7  ;;  %v2651_v30 = vadd.f32 %v2650_v56, %v9808_v62 }
 0x307   : > { %v2901_v1 = vpop.f32.mrb[139].mxu1 }
 0x308   : > { %7310 = vmatmul.mubr.bf16.gmra.mrb[244].mxu0 %v11859_v50  ;;  %v10094_v41 = vadd.f32 %v2899_v37, %v2651_v30 }
 0x309   : > { %7313 = vmatprep.mubr.msk.bf16.mxu0 %vm8331_vm5, %v11765_v60 }
 0x30b   : > { %v2655_v49 = vpop.f32.mrb[140].mxu0 }
 0x30c   : > { %v2657_v5 = vpop.f32.mrb[141].mxu0  ;;  %v2904_v25 = vpop.f32.mrb[140].mxu1  ;;  %v2656_v27 = vadd.f32 %v2655_v49, %v9814_v35 }
 0x30d   : > { %v2658_v21 = vpop.f32.mrb[142].mxu0  ;;  %v2906_v17 = vpop.f32.mrb[141].mxu1 }
 0x30e   : > { %v2660_v28 = vpop.f32.mrb[143].mxu0  ;;  %v2907_v16 = vpop.f32.mrb[142].mxu1  ;;  %v10099_v55 = vadd.f32 %v2904_v25, %v2656_v27  ;;  %v2659_v62 = vadd.f32 %v2658_v21, %v9816_v10  ;;  %v7914_v21 = vld [vmem:[#allocation8 + $0x40] sm:$0xff]  }
 0x30f   : > { %v2909_v13 = vpop.f32.mrb[143].mxu1  ;;  %v7915_v28 = vld [vmem:[#allocation8] sm:$0xff]   ;;  %6769 = vmatprep.subr.bf16.mxu1 %v7914_v21 }
 0x310   : > { %7314 = vmatmul.mubr.bf16.gmra.mrb[248].mxu0 %v11860_v43  ;;  %v10103_v15 = vadd.f32 %v2907_v16, %v2659_v62  ;;  %6770 = vmatpush3.bf16.msra.mxu1 %v7915_v28  ;;  %v7922_v28 = vld [vmem:[#allocation8 + $0x148] sm:$0xff]  }
 0x311   : > { %7317 = vmatprep.mubr.msk.bf16.mxu0 %vm8331_vm5, %v11765_v60 }
 0x313   : > { %v2663_v45 = vpop.f32.mrb[144].mxu0 }
 0x314   : > { %v2664_v7 = vadd.f32 %v2663_v45, %v9823_v23  ;;  %v2665_v35 = vpop.f32.mrb[145].mxu0  ;;  %v2912_v56 = vpop.f32.mrb[144].mxu1 }
 0x315   : > { %v2666_v51 = vpop.f32.mrb[146].mxu0  ;;  %v2914_v58 = vpop.f32.mrb[145].mxu1  ;;  %v11861_v35 = vld [vmem:[#allocation77_spill] sm:$0xff] }
 0x316   : > { %v2667_v37 = vadd.f32 %v2666_v51, %v9825_v46  ;;  %v2668_v30 = vpop.f32.mrb[147].mxu0  ;;  %v2915_v1 = vpop.f32.mrb[146].mxu1  ;;  %v10109_v10 = vadd.f32 %v2912_v56, %v2664_v7  ;;  %v7917_v7 = vld [vmem:[#allocation8 + $0x8] sm:$0xff]  }
 0x317   : > { %v2917_v50 = vpop.f32.mrb[147].mxu1  ;;  %v7919_v30 = vld [vmem:[#allocation8 + $0x50] sm:$0xff]  }
 0x318   : > { %7318 = vmatmul.mubr.bf16.gmra.mrb[252].mxu0 %v9399_v24  ;;  %v10112_v49 = vadd.f32 %v2915_v1, %v2667_v37  ;;  %v7916_v24 = vld [vmem:[#allocation8 + $0x48] sm:$0xff]   ;;  %v7920_v1 = vld [vmem:[#allocation8 + $0x100] sm:$0xff]  }
 0x319   : > { %7321 = vmatprep.mubr.msk.bf16.mxu0 %vm8331_vm5, %v11765_v60  ;;  %6771 = vmatprep.subr.bf16.mxu1 %v7916_v24 }
 0x31a   : > { %6772 = vmatpush3.bf16.msra.mxu1 %v7917_v7 }
 0x31b   : > { %v2671_v5 = vpop.f32.mrb[148].mxu0  ;;  %6773 = vmatprep.subr.bf16.mxu1 %v7919_v30  ;;  %v7929_v30 = vld [vmem:[#allocation8 + $0x20] sm:$0xff]  }
 0x31c   : > { %v2672_v23 = vadd.f32 %v2671_v5, %v9834_v47  ;;  %v2673_v25 = vpop.f32.mrb[149].mxu0  ;;  %v2920_v27 = vpop.f32.mrb[148].mxu1 }
 0x31d   : > { %v2674_v17 = vpop.f32.mrb[150].mxu0  ;;  %v2922_v46 = vpop.f32.mrb[149].mxu1 }
 0x31e   : > { %v2675_v16 = vadd.f32 %v2674_v17, %v9836_v32  ;;  %v2676_v62 = vpop.f32.mrb[151].mxu0  ;;  %v2923_v13 = vpop.f32.mrb[150].mxu1  ;;  %v10118_v43 = vadd.f32 %v2920_v27, %v2672_v23  ;;  %v7918_v32 = vld [vmem:[#allocation8 + $0x140] sm:$0xff]   ;;  %v7921_v23 = vld [vmem:[#allocation8 + $0x10] sm:$0xff]  }
 0x31f   : > { %v2925_v45 = vpop.f32.mrb[151].mxu1  ;;  %6993 = vmatprep.subr.bf16.mxu0 %v7918_v32  ;;  %6774 = vmatpush3.bf16.msra.mxu1 %v7921_v23  ;;  %v7924_v62 = vld [vmem:[#allocation8 + $0x108] sm:$0xff]   ;;  %v7927_v32 = vld [vmem:[#allocation8 + $0x60] sm:$0xff]  }
 0x320   : > { %7322 = vmatmul.mubr.bf16.gmra.mrb[0].mxu0 %v11861_v35  ;;  %v10121_v47 = vadd.f32 %v2923_v13, %v2675_v16  ;;  %v7923_v16 = vld [vmem:[#allocation8 + $0x58] sm:$0xff]   ;;  %v7926_v45 = vld [vmem:[#allocation8 + $0x150] sm:$0xff]  }
 0x321   : > { %7325 = vmatprep.mubr.msk.bf16.mxu0 %vm8331_vm5, %v11765_v60  ;;  %6994 = vmatpush3.bf16.msra.mxu0 %v7920_v1 }
 0x322   : > { %6995 = vmatprep.subr.bf16.mxu0 %v7922_v28  ;;  %6775 = vmatprep.subr.bf16.mxu1 %v7923_v16  ;;  %v1301_v28 = vunpack.c.h.b16 %v10047_v39 }
 0x323   : > { %v2679_v56 = vpop.f32.mrb[152].mxu0 }
 0x324   : > { %v2680_v51 = vadd.f32 %v2679_v56, %v9842_v38  ;;  %v2681_v58 = vpop.f32.mrb[153].mxu0  ;;  %v2928_v37 = vpop.f32.mrb[152].mxu1  ;;  %v11862_v38 = vld [vmem:[#allocation78_spill] sm:$0xff] }
 0x325   : > { %v2682_v50 = vpop.f32.mrb[154].mxu0  ;;  %v2930_v5 = vpop.f32.mrb[153].mxu1  ;;  %6996 = vmatpush3.bf16.msra.mxu0 %v7924_v62  ;;  %v7934_v62 = vld [vmem:[#allocation8 + $0x160] sm:$0xff]  }
 0x326   : > { %v2683_v25 = vadd.f32 %v2682_v50, %v9844_v36  ;;  %v2684_v27 = vpop.f32.mrb[155].mxu0  ;;  %v2931_v21 = vpop.f32.mrb[154].mxu1  ;;  %v10127_v17 = vadd.f32 %v2928_v37, %v2680_v51  ;;  %v7925_v36 = vld [vmem:[#allocation8 + $0x18] sm:$0xff]   ;;  %v7928_v51 = vld [vmem:[#allocation8 + $0x110] sm:$0xff]   ;;  %6997 = vmatprep.subr.bf16.mxu0 %v7926_v45 }
 0x327   : > { %v2933_v46 = vpop.f32.mrb[155].mxu1  ;;  %6776 = vmatpush3.bf16.msra.mxu1 %v7925_v36  ;;  %v7930_v27 = vld [vmem:[#allocation8 + $0x158] sm:$0xff]  }
 0x328   : > { %7326 = vmatmul.mubr.bf16.gmra.mrb[4].mxu0 %v11862_v38  ;;  %v10130_v13 = vadd.f32 %v2931_v21, %v2683_v25  ;;  %6777 = vmatprep.subr.bf16.mxu1 %v7927_v32  ;;  %v7932_v21 = vld [vmem:[#allocation8 + $0x118] sm:$0xff]   ;;  %v1303_v38 = vunpack.c.l.b16 %v1182_v6 }
 0x329   : > { %7329 = vmatprep.mubr.msk.bf16.mxu0 %vm8331_vm5, %v11765_v60  ;;  %6998 = vmatpush3.bf16.msra.mxu0 %v7928_v51  ;;  %v7937_v51 = vld [vmem:[#allocation8 + $0x30] sm:$0xff]  }
 0x32a   : > { %6999 = vmatprep.subr.bf16.mxu0 %v7930_v27  ;;  %v1455_v45 = vpack.c.b16 %v1303_v38, %v1301_v28  ;;  %v11864_v27 = vmov 0  }
 0x32b   : > { %v2687_v24 = vpop.f32.mrb[156].mxu0  ;;  %6778 = vmatpush3.bf16.msra.mxu1 %v7929_v30  ;;  %v11863_v30 = vld [vmem:[#allocation87_spill] sm:$0xff] }
 0x32c   : > { %v2688_v7 = vadd.f32 %v2687_v24, %v9851_v26  ;;  %v2689_v35 = vpop.f32.mrb[157].mxu0  ;;  %v2936_v56 = vpop.f32.mrb[156].mxu1  ;;  %v7931_v26 = vld [vmem:[#allocation8 + $0x68] sm:$0xff]   ;;  %7386 = vmatmul.mubr.bf16.gmra.mrb[232].mxu1 %v1455_v45 }
 0x32d   : > { %v2690_v58 = vpop.f32.mrb[158].mxu0  ;;  %v2938_v37 = vpop.f32.mrb[157].mxu1  ;;  %6779 = vmatprep.subr.bf16.mxu1 %v7931_v26  ;;  %7000 = vmatpush3.bf16.msra.mxu0 %v7932_v21  ;;  %v7936_v35 = vld [vmem:[#allocation8 + $0x120] sm:$0xff]   ;;  %v10156_v26 = vrot.slane %v11864_v27, 1  ;;  %v7942_v21 = vld [vmem:[#allocation8 + $0x170] sm:$0xff]  }
 0x32e   : > { %v2691_v1 = vadd.f32 %v2690_v58, %v9853_v33  ;;  %v2692_v50 = vpop.f32.mrb[159].mxu0  ;;  %v2939_v5 = vpop.f32.mrb[158].mxu1  ;;  %v10136_v23 = vadd.f32 %v2936_v56, %v2688_v7  ;;  %v7933_v33 = vld [vmem:[#allocation8 + $0x28] sm:$0xff]   ;;  %v7935_v7 = vld [vmem:[#allocation8 + $0x70] sm:$0xff]   ;;  %7001 = vmatprep.subr.bf16.mxu0 %v7934_v62 }
 0x32f   : > { %v2941_v25 = vpop.f32.mrb[159].mxu1  ;;  %6780 = vmatpush3.bf16.msra.mxu1 %v7933_v33  ;;  %v7940_v50 = vld [vmem:[#allocation8 + $0x128] sm:$0xff]   ;;  %11865 = vst [vmem:[#allocation61_spill] sm:$0xff] %v10156_v26  ;;  %4757 = vmatprep.mubr.bf16.mxu1 %v10156_v26  ;;  %v11888_v26 = vld [vmem:[#allocation50_spill] sm:$0xff] }
 0x330   : > { %7330 = vmatmul.mubr.bf16.gmra.mrb[8].mxu0 %v9475_v34  ;;  %v10139_v46 = vadd.f32 %v2939_v5, %v2691_v1  ;;  %6781 = vmatprep.subr.bf16.mxu1 %v7935_v7  ;;  %v7939_v1 = vld [vmem:[#allocation8 + $0x78] sm:$0xff]   ;;  %v11610_v7 = vmov 0.0|0.0  }
 0x331   : > { %7333 = vmatprep.mubr.msk.bf16.mxu0 %vm8331_vm5, %v11765_v60  ;;  %7002 = vmatpush3.bf16.msra.mxu0 %v7936_v35 }
 0x333   : > { %v2695_v16 = vpop.f32.mrb[160].mxu0  ;;  %6782 = vmatpush3.bf16.msra.mxu1 %v7937_v51  ;;  %v7945_v51 = vld [vmem:[#allocation8 + $0x138] sm:$0xff]  }
 0x334   : > { %v2696_v34 = vadd.f32 %v2695_v16, %v9862_v53  ;;  %v2697_v36 = vpop.f32.mrb[161].mxu0  ;;  %v2944_v24 = vpop.f32.mrb[160].mxu1  ;;  %v7938_v53 = vld [vmem:[#allocation8 + $0x168] sm:$0xff]   ;;  %6783 = vmatprep.subr.bf16.mxu1 %v7939_v1  ;;  %v7943_v16 = vld [vmem:[#allocation8 + $0x130] sm:$0xff]  }
 0x335   : > { %v2698_v56 = vpop.f32.mrb[162].mxu0  ;;  %v2946_v32 = vpop.f32.mrb[161].mxu1  ;;  %7003 = vmatprep.subr.bf16.mxu0 %v7938_v53 }
 0x336   : > { %v2699_v58 = vadd.f32 %v2698_v56, %v9864_v4  ;;  %v2700_v39 = vpop.f32.mrb[163].mxu0  ;;  %v2947_v37 = vpop.f32.mrb[162].mxu1  ;;  %v10148_v19 = vadd.f32 %v2944_v24, %v2696_v34  ;;  %v7941_v4 = vld [vmem:[#allocation8 + $0x38] sm:$0xff]   ;;  %7004 = vmatpush3.bf16.msra.mxu0 %v7940_v50  ;;  %v11866_v32 = vld [vmem:[#allocation89_spill] sm:$0xff] }
 0x337   : > { %v2949_v6 = vpop.f32.mrb[163].mxu1  ;;  %6784 = vmatpush3.bf16.msra.mxu1 %v7941_v4  ;;  %7005 = vmatprep.subr.bf16.mxu0 %v7942_v21 }
 0x338   : > { %7334 = vmatmul.mubr.bf16.gmra.mrb[12].mxu0 %v11863_v30  ;;  %v10151_v5 = vadd.f32 %v2947_v37, %v2699_v58 }
 0x339   : > { %7337 = vmatprep.mubr.msk.bf16.mxu0 %vm8331_vm5, %v11765_v60 }
 0x33a   : > { %4758 = vmatmul.mubr.bf16.vlgmr.msra.gmra.mrb[236].mxu1 %v11610_v7  ;;  %7006 = vmatpush3.bf16.msra.mxu0 %v7943_v16 }
 0x33b   : > { %v2703_v25 = vpop.f32.mrb[164].mxu0 }
 0x33c   : > { %v2704_v33 = vadd.f32 %v2703_v25, %v9870_v2  ;;  %v2705_v28 = vpop.f32.mrb[165].mxu0  ;;  %v2952_v38 = vpop.f32.mrb[164].mxu1  ;;  %v7944_v2 = vld [vmem:[#allocation8 + $0x178] sm:$0xff]  }
 0x33d   : > { %v2706_v62 = vpop.f32.mrb[166].mxu0  ;;  %v2954_v34 = vpop.f32.mrb[165].mxu1  ;;  %7007 = vmatprep.subr.bf16.mxu0 %v7944_v2 }
 0x33e   : > { %v2707_v36 = vadd.f32 %v2706_v62, %v9872_v42  ;;  %v2708_v24 = vpop.f32.mrb[167].mxu0  ;;  %v2955_v45 = vpop.f32.mrb[166].mxu1  ;;  %v10162_v35 = vadd.f32 %v2952_v38, %v2704_v33  ;;  %7008 = vmatpush3.bf16.msra.mxu0 %v7945_v51 }
 0x33f   : > { %v2957_v56 = vpop.f32.mrb[167].mxu1 }
 0x340   : > { %7338 = vmatmul.mubr.bf16.gmra.mrb[16].mxu0 %v11866_v32  ;;  %v10165_v58 = vadd.f32 %v2955_v45, %v2707_v36  ;;  %v11867_v56 = vld [vmem:[#allocation100_spill] sm:$0xff] }
 0x341   : > { %7341 = vmatprep.mubr.msk.bf16.mxu0 %vm8331_vm5, %v11765_v60 }
 0x343   : > { %v2711_v42 = vpop.f32.mrb[168].mxu0 }
 0x344   : > { %v2712_v39 = vadd.f32 %v2711_v42, %v9879_v59  ;;  %v2713_v37 = vpop.f32.mrb[169].mxu0  ;;  %v2960_v6 = vpop.f32.mrb[168].mxu1 }
 0x345   : > { %v2714_v53 = vpop.f32.mrb[170].mxu0  ;;  %v2962_v30 = vpop.f32.mrb[169].mxu1 }
 0x346   : > { %v2715_v1 = vadd.f32 %v2714_v53, %v9881_v11  ;;  %v2716_v50 = vpop.f32.mrb[171].mxu0  ;;  %v2963_v4 = vpop.f32.mrb[170].mxu1  ;;  %v10171_v25 = vadd.f32 %v2960_v6, %v2712_v39 }
 0x347   : > { %v2965_v27 = vpop.f32.mrb[171].mxu1 }
 0x348   : > { %7342 = vmatmul.mubr.bf16.gmra.mrb[20].mxu0 %v11804_v61  ;;  %v10174_v21 = vadd.f32 %v2963_v4, %v2715_v1  ;;  %v11870_v27 = vld [vmem:[#allocation102_spill] sm:$0xff] }
 0x349   : > { %7345 = vmatprep.mubr.msk.bf16.mxu0 %vm8331_vm5, %v11765_v60 }
 0x34b   : > { %v2719_v33 = vpop.f32.mrb[172].mxu0 }
 0x34c   : > { %v2720_v59 = vadd.f32 %v2719_v33, %v9890_v20  ;;  %v2721_v28 = vpop.f32.mrb[173].mxu0  ;;  %v2968_v38 = vpop.f32.mrb[172].mxu1  ;;  %v11868_v20 = vld [vmem:[#allocation41_spill] sm:$0xff] }
 0x34d   : > { %v2722_v16 = vpop.f32.mrb[174].mxu0  ;;  %v2970_v62 = vpop.f32.mrb[173].mxu1 }
 0x34e   : > { %v2723_v11 = vadd.f32 %v2722_v16, %v9892_v9  ;;  %v10180_v34 = vadd.f32 %v2968_v38, %v2720_v59  ;;  %v2724_v36 = vpop.f32.mrb[175].mxu0  ;;  %v2971_v24 = vpop.f32.mrb[174].mxu1  ;;  %v11869_v9 = vld [vmem:[#allocation43_spill] sm:$0xff]  ;;  %v11871_v59 = vld [vmem:[#allocation46_spill] sm:$0xff] }
 0x34f   : > { %v2973_v45 = vpop.f32.mrb[175].mxu1  ;;  %v11872_v36 = vld [vmem:[#allocation40_spill] sm:$0xff] }
 0x350   : > { %v10182_v61 = vadd.f32 %v2971_v24, %v2723_v11  ;;  %7346 = vmatmul.mubr.bf16.gmra.mrb[24].mxu0 %v11867_v56 }
 0x351   : > { %7349 = vmatprep.mubr.msk.bf16.mxu0 %vm8331_vm5, %v11765_v60 }
 0x353   : > { %v2727_v2 = vpop.f32.mrb[176].mxu0 }
 0x354   : > { %v2728_v32 = vadd.f32 %v2727_v2, %v11868_v20  ;;  %v2729_v51 = vpop.f32.mrb[177].mxu0  ;;  %v2976_v42 = vpop.f32.mrb[176].mxu1 }
 0x355   : > { %v2730_v39 = vpop.f32.mrb[178].mxu0  ;;  %v2978_v37 = vpop.f32.mrb[177].mxu1  ;;  %v11873_v51 = vld [vmem:[#allocation106_spill] sm:$0xff] }
 0x356   : > { %v2731_v6 = vadd.f32 %v2730_v39, %v11869_v9  ;;  %v10189_v53 = vadd.f32 %v2976_v42, %v2728_v32  ;;  %v2732_v30 = vpop.f32.mrb[179].mxu0  ;;  %v2979_v1 = vpop.f32.mrb[178].mxu1  ;;  %v11874_v39 = vld [vmem:[#allocation48_spill] sm:$0xff] }
 0x357   : > { %v2981_v50 = vpop.f32.mrb[179].mxu1 }
 0x358   : > { %v10191_v4 = vadd.f32 %v2979_v1, %v2731_v6  ;;  %7350 = vmatmul.mubr.bf16.gmra.mrb[28].mxu0 %v11870_v27  ;;  %v11875_v50 = vld [vmem:[#allocation34_spill] sm:$0xff] }
 0x359   : > { %7353 = vmatprep.mubr.msk.bf16.mxu0 %vm8331_vm5, %v11765_v60 }
 0x35b   : > { %v2735_v33 = vpop.f32.mrb[180].mxu0 }
 0x35c   : > { %v2736_v28 = vadd.f32 %v2735_v33, %v11871_v59  ;;  %v2737_v38 = vpop.f32.mrb[181].mxu0  ;;  %v2984_v16 = vpop.f32.mrb[180].mxu1 }
 0x35d   : > { %v2738_v62 = vpop.f32.mrb[182].mxu0  ;;  %v2986_v11 = vpop.f32.mrb[181].mxu1 }
 0x35e   : > { %v2739_v24 = vadd.f32 %v2738_v62, %v11872_v36  ;;  %v10198_v45 = vadd.f32 %v2984_v16, %v2736_v28  ;;  %v2740_v56 = vpop.f32.mrb[183].mxu0  ;;  %v2987_v2 = vpop.f32.mrb[182].mxu1  ;;  %v11876_v62 = vld [vmem:[#allocation111_spill] sm:$0xff]  ;;  %v11877_v36 = vld [vmem:[#allocation33_spill] sm:$0xff] }
 0x35f   : > { %v2989_v20 = vpop.f32.mrb[183].mxu1 }
 0x360   : > { %v10200_v32 = vadd.f32 %v2987_v2, %v2739_v24  ;;  %7354 = vmatmul.mubr.bf16.gmra.mrb[32].mxu0 %v11873_v51 }
 0x361   : > { %7357 = vmatprep.mubr.msk.bf16.mxu0 %vm8331_vm5, %v11765_v60 }
 0x363   : > { %v2743_v42 = vpop.f32.mrb[184].mxu0 }
 0x364   : > { %v2744_v37 = vadd.f32 %v2743_v42, %v11874_v39  ;;  %v2745_v9 = vpop.f32.mrb[185].mxu0  ;;  %v2992_v6 = vpop.f32.mrb[184].mxu1  ;;  %v11878_v42 = vld [vmem:[#allocation31_spill] sm:$0xff] }
 0x365   : > { %v2746_v30 = vpop.f32.mrb[186].mxu0  ;;  %v2994_v1 = vpop.f32.mrb[185].mxu1 }
 0x366   : > { %v2747_v27 = vadd.f32 %v2746_v30, %v11875_v50  ;;  %v10207_v33 = vadd.f32 %v2992_v6, %v2744_v37  ;;  %v2748_v59 = vpop.f32.mrb[187].mxu0  ;;  %v2995_v28 = vpop.f32.mrb[186].mxu1  ;;  %v11881_v50 = vld [vmem:[#allocation113_spill] sm:$0xff] }
 0x367   : > { %v2997_v38 = vpop.f32.mrb[187].mxu1  ;;  %v11882_v59 = vld [vmem:[#allocation49_spill] sm:$0xff] }
 0x368   : > { %v10209_v16 = vadd.f32 %v2995_v28, %v2747_v27  ;;  %7358 = vmatmul.mubr.bf16.gmra.mrb[36].mxu0 %v11876_v62 }
 0x369   : > { %7361 = vmatprep.mubr.msk.bf16.mxu0 %vm8331_vm5, %v11765_v60 }
 0x36b   : > { %v2751_v11 = vpop.f32.mrb[188].mxu0 }
 0x36c   : > { %v2752_v24 = vadd.f32 %v2751_v11, %v11877_v36  ;;  %v2753_v56 = vpop.f32.mrb[189].mxu0  ;;  %v3000_v2 = vpop.f32.mrb[188].mxu1  ;;  %v7946_v11 = vld [vmem:[#allocation8 + $0xc0] sm:$0xff]  }
 0x36d   : > { %v2754_v20 = vpop.f32.mrb[190].mxu0  ;;  %v3002_v51 = vpop.f32.mrb[189].mxu1  ;;  %v7947_v36 = vld [vmem:[#allocation8 + $0x80] sm:$0xff]   ;;  %6881 = vmatprep.subr.bf16.mxu1 %v7946_v11 }
 0x36e   : > { %v2755_v39 = vadd.f32 %v2754_v20, %v11878_v42  ;;  %v10216_v37 = vadd.f32 %v3000_v2, %v2752_v24  ;;  %v2756_v9 = vpop.f32.mrb[191].mxu0  ;;  %v3003_v6 = vpop.f32.mrb[190].mxu1  ;;  %v11883_v2 = vld [vmem:[#allocation54_spill] sm:$0xff]  ;;  %6882 = vmatpush3.bf16.msra.mxu1 %v7947_v36 }
 0x36f   : > { %v3005_v30 = vpop.f32.mrb[191].mxu1 }
 0x370   : > { %11879 = vst [vmem:[#allocation63_spill] sm:$0xff] %v10216_v37  ;;  %v10218_v1 = vadd.f32 %v3003_v6, %v2755_v39  ;;  %7362 = vmatmul.mubr.bf16.gmra.mrb[40].mxu0 %v11881_v50  ;;  %v11887_v50 = vld [vmem:[#allocation37_spill] sm:$0xff] }
 0x371   : > { %7365 = vmatprep.mubr.msk.bf16.mxu0 %vm8331_vm5, %v11765_v60  ;;  %v11886_v60 = vld [vmem:[#allocation116_spill] sm:$0xff] }
 0x372   : > { %11880 = vst [vmem:[#allocation58_spill] sm:$0xff] %v10218_v1 }
 0x373   : > { %v2759_v27 = vpop.f32.mrb[192].mxu0 }
 0x374   : > { %v2760_v28 = vadd.f32 %v2759_v27, %v11882_v59  ;;  %v2761_v38 = vpop.f32.mrb[193].mxu0  ;;  %v3008_v62 = vpop.f32.mrb[192].mxu1 }
 0x375   : > { %v2762_v56 = vpop.f32.mrb[194].mxu0  ;;  %v3010_v24 = vpop.f32.mrb[193].mxu1 }
 0x376   : > { %v2763_v20 = vadd.f32 %v2762_v56, %v11883_v2  ;;  %v10225_v51 = vadd.f32 %v3008_v62, %v2760_v28  ;;  %v2764_v42 = vpop.f32.mrb[195].mxu0  ;;  %v3011_v39 = vpop.f32.mrb[194].mxu1 }
 0x377   : > { %v3013_v9 = vpop.f32.mrb[195].mxu1 }
 0x378   : > { %11884 = vst [vmem:[#allocation66_spill] sm:$0xff] %v10225_v51  ;;  %v10227_v6 = vadd.f32 %v3011_v39, %v2763_v20  ;;  %7366 = vmatmul.mubr.bf16.gmra.mrb[44].mxu0 %v11886_v60  ;;  %v7948_v51 = vld [vmem:[#allocation8 + $0xc8] sm:$0xff]  }
 0x379   : > { %6883 = vmatprep.subr.bf16.mxu1 %v7948_v51 }
 0x37a   : > { %11885 = vst [vmem:[#allocation55_spill] sm:$0xff] %v10227_v6 }
 0x37b   : > { %v2767_v30 = vpop.f32.mrb[196].mxu0 }
 0x37c   : > { %v2768_v27 = vadd.f32 %v2767_v30, %v11887_v50  ;;  %v2769_v59 = vpop.f32.mrb[197].mxu0  ;;  %v3016_v38 = vpop.f32.mrb[196].mxu1  ;;  %v7949_v30 = vld [vmem:[#allocation8 + $0x88] sm:$0xff]  }
 0x37d   : > { %v2770_v7 = vpop.f32.mrb[198].mxu0  ;;  %v3018_v24 = vpop.f32.mrb[197].mxu1  ;;  %6884 = vmatpush3.bf16.msra.mxu1 %v7949_v30 }
 0x37e   : > { %v2771_v56 = vadd.f32 %v2770_v7, %v11888_v26  ;;  %v3017_v28 = vadd.f32 %v3016_v38, %v2768_v27  ;;  %v2772_v62 = vpop.f32.mrb[199].mxu0  ;;  %v3019_v2 = vpop.f32.mrb[198].mxu1 }
 0x37f   : > { %v3021_v42 = vpop.f32.mrb[199].mxu1 }
 0x380   : > { %v3020_v11 = vadd.f32 %v3019_v2, %v2771_v56 }
 0x383   : > { %v2775_v9 = vpop.f32.mrb[200].mxu0 }
 0x384   : > { %v2776_v36 = vadd.f32 %v2775_v9, %v9978_v22  ;;  %v2777_v20 = vpop.f32.mrb[201].mxu0  ;;  %v3024_v39 = vpop.f32.mrb[200].mxu1 }
 0x385   : > { %v2778_v60 = vpop.f32.mrb[202].mxu0  ;;  %v3026_v6 = vpop.f32.mrb[201].mxu1 }
 0x386   : > { %v2779_v50 = vadd.f32 %v2778_v60, %v9984_v31  ;;  %v3025_v59 = vadd.f32 %v3024_v39, %v2776_v36  ;;  %v2780_v24 = vpop.f32.mrb[203].mxu0  ;;  %v3027_v1 = vpop.f32.mrb[202].mxu1  ;;  %v11889_v6 = vld [vmem:[#allocation59_spill] sm:$0xff] }
 0x387   : > { %v3029_v26 = vpop.f32.mrb[203].mxu1 }
 0x388   : > { %v10234_v7 = vadd.f32 %v3027_v1, %v2779_v50  ;;  %v7950_v50 = vld [vmem:[#allocation8 + $0xd0] sm:$0xff]  }
 0x389   : > { %6885 = vmatprep.subr.bf16.mxu1 %v7950_v50 }
 0x38b   : > { %v2783_v27 = vpop.f32.mrb[204].mxu0 }
 0x38c   : > { %v2784_v38 = vadd.f32 %v2783_v27, %v9996_v52  ;;  %v2785_v22 = vpop.f32.mrb[205].mxu0  ;;  %v3032_v56 = vpop.f32.mrb[204].mxu1  ;;  %v7951_v52 = vld [vmem:[#allocation8 + $0x90] sm:$0xff]  }
 0x38d   : > { %v2786_v62 = vpop.f32.mrb[206].mxu0  ;;  %v3034_v2 = vpop.f32.mrb[205].mxu1  ;;  %6886 = vmatpush3.bf16.msra.mxu1 %v7951_v52 }
 0x38e   : > { %v2787_v42 = vadd.f32 %v2786_v62, %v11889_v6  ;;  %v10238_v9 = vadd.f32 %v3032_v56, %v2784_v38  ;;  %v2788_v31 = vpop.f32.mrb[207].mxu0  ;;  %v3035_v36 = vpop.f32.mrb[206].mxu1 }
 0x38f   : > { %v3037_v20 = vpop.f32.mrb[207].mxu1 }
 0x390   : > { %v10240_v39 = vadd.f32 %v3035_v36, %v2787_v42 }
 0x393   : > { %v2791_v51 = vpop.f32.mrb[208].mxu0 }
 0x394   : > { %v2792_v1 = vadd.f32 %v2791_v51, %v10007_v12  ;;  %v2793_v60 = vpop.f32.mrb[209].mxu0  ;;  %v3040_v30 = vpop.f32.mrb[208].mxu1 }
 0x395   : > { %v2794_v24 = vpop.f32.mrb[210].mxu0  ;;  %v3042_v26 = vpop.f32.mrb[209].mxu1 }
 0x396   : > { %v10243_v27 = vadd.f32 %v3040_v30, %v2792_v1  ;;  %v2796_v22 = vpop.f32.mrb[211].mxu0  ;;  %v3043_v62 = vpop.f32.mrb[210].mxu1  ;;  %v7952_v24 = vld [vmem:[#allocation8 + $0xd8] sm:$0xff]  }
 0x397   : > { %v3045_v38 = vpop.f32.mrb[211].mxu1  ;;  %v7953_v26 = vld [vmem:[#allocation8 + $0x98] sm:$0xff]   ;;  %6887 = vmatprep.subr.bf16.mxu1 %v7952_v24 }
 0x398   : > { %6888 = vmatpush3.bf16.msra.mxu1 %v7953_v26 }
 0x39b   : > { %v2799_v56 = vpop.f32.mrb[212].mxu0 }
 0x39c   : > { %v2801_v2 = vpop.f32.mrb[213].mxu0  ;;  %v3048_v6 = vpop.f32.mrb[212].mxu1  ;;  %v3383_v56 = vlaneseq }
 0x39d   : > { %v2802_v42 = vpop.f32.mrb[214].mxu0  ;;  %v3050_v31 = vpop.f32.mrb[213].mxu1  ;;  %v10247_v2 = vld [vmem:[#allocation7] ss:$0 sm:$0xff] }
 0x39e   : > { %v2804_v36 = vpop.f32.mrb[215].mxu0  ;;  %v3051_v12 = vpop.f32.mrb[214].mxu1  ;;  %v10250_v31 = vshrl.u32 %v3383_v56, 7 }
 0x39f   : > { %v3053_v20 = vpop.f32.mrb[215].mxu1 }
 0x3a0   : > { %vm3441_vm6 = vcmp.ge.s32.totalorder %v10250_v31, 1 }
 0x3a1   : > { %vm10311_vm9 = vmpackc.low %vm8333_vm8, %vm3441_vm6 }
 0x3a3   : > { %v3089_v51 = vpop.f32.mrb[216].mxu0 }
 0x3a4   : > { %v3265_v60 = vpop.f32.mrb[216].mxu1  ;;  %v7283_v37 = vpop.f32.mrb[217].mxu0 }
 0x3a5   : > { %v10245_v1 = vadd.f32 %v3265_v60, %v3017_v28  ;;  %v7371_v30 = vpop.f32.mrb[217].mxu1  ;;  %v3092_v22 = vpop.f32.mrb[218].mxu0 }
 0x3a6   : > { %v3268_v50 = vpop.f32.mrb[218].mxu1  ;;  %v7284_v62 = vpop.f32.mrb[219].mxu0 }
 0x3a7   : > { %11890 = vst [vmem:[#allocation51_spill] sm:$0xff] %v10245_v1  ;;  %v3269_v52 = vadd.f32 %v3268_v50, %v3020_v11  ;;  %v7372_v38 = vpop.f32.mrb[219].mxu1  ;;  %v10257_v50 = vadd.s32 16, %v10250_v31  ;;  %v8017_v31 = vld [vmem:[%s8658_s16 + $0xc0] sm:$0xf] }
 0x3a9   : > { %v3356_v6 = vadd.f32 %v10247_v2, %v3269_v52  ;;  %vm3500_vm7 = vcmp.le.s32.totalorder %v10257_v50, 16  ;;  %v11914_v50 = vld [vmem:[#allocation55_spill] sm:$0xff] }
 0x3ab   : > { %v3097_v42 = vpop.f32.mrb[220].mxu0  ;;  %v3600_v51 = vmax.f32 %v3356_v6, 0.0 }
 0x3ac   : > { %v3273_v37 = vpop.f32.mrb[220].mxu1  ;;  %v7287_v36 = vpop.f32.mrb[221].mxu0 }
 0x3ad   : > { %v3274_v28 = vadd.f32 %v3273_v37, %v3025_v59  ;;  %v7375_v12 = vpop.f32.mrb[221].mxu1  ;;  %v3100_v20 = vpop.f32.mrb[222].mxu0 }
 0x3ae   : > { %v3101_v60 = vadd.f32 %v3100_v20, %v10023_v0  ;;  %v3276_v24 = vpop.f32.mrb[222].mxu1  ;;  %v7288_v11 = vpop.f32.mrb[223].mxu0  ;;  %v3762_v0 = vsel %vm3441_vm6, %v3600_v51, 0.0 }
 0x3af   : > { %v3357_v26 = vadd.f32 %v10247_v2, %v3274_v28  ;;  %v3277_v30 = vadd.f32 %v3276_v24, %v10234_v7  ;;  %v7376_v22 = vpop.f32.mrb[223].mxu1  ;;  %v7954_v11 = vld [vmem:[#allocation8 + $0xe0] sm:$0xff]  }
 0x3b0   : > { %v3314_v62 = vadd.f32 %v10247_v2, %v3101_v60  ;;  %6889 = vmatprep.subr.bf16.mxu1 %v7954_v11 }
 0x3b1   : > { %v3601_v59 = vmax.f32 %v3357_v26, 0.0  ;;  %v3358_v52 = vadd.f32 %v10247_v2, %v3277_v30  ;;  %v7955_v26 = vld [vmem:[#allocation8 + $0xa0] sm:$0xff]  }
 0x3b2   : > { %v3558_v38 = vmax.f32 %v3314_v62, 0.0  ;;  %6890 = vmatpush3.bf16.msra.mxu1 %v7955_v26 }
 0x3b3   : > { %v3801_v56 = vpack.c.bf16 %v3601_v59, %v3762_v0  ;;  %v10263_v6 = vpack.c.bf16 %v3601_v59, %v3600_v51  ;;  %v3602_v42 = vmax.f32 %v3358_v52, 0.0  ;;  %v3105_v37 = vpop.f32.mrb[224].mxu0 }
 0x3b4   : > { %v3106_v7 = vadd.f32 %v3105_v37, %v10033_v3  ;;  %v3281_v36 = vpop.f32.mrb[224].mxu1  ;;  %v7291_v28 = vpop.f32.mrb[225].mxu0  ;;  %v3720_v51 = vsel %vm3441_vm6, %v3558_v38, 0.0 }
 0x3b5   : > { %11891 = vst [vmem:[#allocation56_spill] sm:$0xff] %v10263_v6  ;;  %v3764_v12 = vsel %vm3500_vm7, %v3602_v42, 0.0  ;;  %v3282_v20 = vadd.f32 %v3281_v36, %v10238_v9  ;;  %v7379_v60 = vpop.f32.mrb[225].mxu1  ;;  %v3108_v24 = vpop.f32.mrb[226].mxu0  ;;  %v4236_v9 = vrot.slane %v3801_v56, 1  ;;  %v4134_v37 = vshll.u32 %v3801_v56, 16 }
 0x3b6   : > { %v3802_v30 = vpack.c.bf16 %v3764_v12, %v3764_v12  ;;  %v3315_v22 = vadd.f32 %v10247_v2, %v3106_v7  ;;  %v3109_v62 = vadd.f32 %v3108_v24, %v10037_v40  ;;  %v3284_v3 = vpop.f32.mrb[226].mxu1  ;;  %v7292_v59 = vpop.f32.mrb[227].mxu0  ;;  %v4132_v40 = vshrl.u32 %v3801_v56, 16 }
 0x3b7   : > { %v3359_v52 = vadd.f32 %v10247_v2, %v3282_v20  ;;  %v3285_v0 = vadd.f32 %v3284_v3, %v10240_v39  ;;  %v7380_v42 = vpop.f32.mrb[227].mxu1  ;;  %v4136_v24 = vrot.slane %v4134_v37, 1 }
 0x3b8   : > { %v3559_v36 = vmax.f32 %v3315_v22, 0.0  ;;  %v3316_v28 = vadd.f32 %v10247_v2, %v3109_v62  ;;  %v4237_v60 = vrot.slane %v3802_v30, 1  ;;  %v4139_v12 = vshll.u32 %v3802_v30, 16 }
 0x3b9   : > { %v3603_v6 = vmax.f32 %v3359_v52, 0.0  ;;  %v3360_v7 = vadd.f32 %v10247_v2, %v3285_v0  ;;  %v4137_v26 = vor.u32 %v4136_v24, %v4132_v40 }
 0x3ba   : > { %v3773_v59 = vpack.c.bf16 %v3559_v36, %v3720_v51  ;;  %v10278_v1 = vpack.c.bf16 %v3559_v36, %v3558_v38  ;;  %v3560_v20 = vmax.f32 %v3316_v28, 0.0  ;;  %v10281_v39 = vsel %vm1073_vm4, %v4236_v9, %v4237_v60 }
 0x3bb   : > { %v3765_v11 = vsel %vm3441_vm6, %v3603_v6, 0.0  ;;  %v3604_v22 = vmax.f32 %v3360_v7, 0.0  ;;  %v3113_v62 = vpop.f32.mrb[228].mxu0  ;;  %v4141_v3 = vrot.slane %v4139_v12, 1 }
 0x3bc   : > { %v3722_v30 = vsel %vm3500_vm7, %v3560_v20, 0.0  ;;  %v3114_v56 = vadd.f32 %v3113_v62, %v10052_v14  ;;  %v3289_v52 = vpop.f32.mrb[228].mxu1  ;;  %v7295_v51 = vpop.f32.mrb[229].mxu0  ;;  %v4194_v38 = vrot.slane %v3773_v59, 1  ;;  %v3966_v40 = vshll.u32 %v3773_v59, 16 }
 0x3bd   : > { %v3774_v0 = vpack.c.bf16 %v3722_v30, %v3722_v30  ;;  %v3803_v42 = vpack.c.bf16 %v3604_v22, %v3765_v11  ;;  %v10288_v37 = vpack.c.bf16 %v3604_v22, %v3603_v6  ;;  %v3290_v9 = vadd.f32 %v3289_v52, %v10243_v27  ;;  %v3116_v36 = vpop.f32.mrb[230].mxu0  ;;  %v7383_v28 = vpop.f32.mrb[229].mxu1 }
 0x3be   : > { %v3317_v60 = vadd.f32 %v10247_v2, %v3114_v56  ;;  %v3117_v12 = vadd.f32 %v3116_v36, %v10056_v18  ;;  %v7296_v7 = vpop.f32.mrb[231].mxu0  ;;  %v10294_v24 = vsel %vm802_vm0, %v4137_v26, %v4141_v3  ;;  %v3292_v14 = vpop.f32.mrb[230].mxu1  ;;  %v3964_v6 = vshrl.u32 %v3773_v59, 16 }
 0x3bf   : > { %11892 = vst [vmem:[#allocation67_spill] sm:$0xff] %v10288_v37  ;;  %v4258_v20 = vshll.u32 %v3803_v42, 16  ;;  %v3361_v62 = vadd.f32 %v10247_v2, %v3290_v9  ;;  %v4195_v11 = vrot.slane %v3774_v0, 1  ;;  %v7384_v22 = vpop.f32.mrb[231].mxu1  ;;  %v3968_v52 = vrot.slane %v3966_v40, 1 }
 0x3c0   : > { %v3561_v30 = vmax.f32 %v3317_v60, 0.0  ;;  %v3318_v27 = vadd.f32 %v10247_v2, %v3117_v12  ;;  %v3971_v51 = vshll.u32 %v3774_v0, 16  ;;  %v4256_v22 = vshrl.u32 %v3803_v42, 16 }
 0x3c1   : > { %v3605_v56 = vmax.f32 %v3361_v62, 0.0  ;;  %v10299_v18 = vsel %vm1073_vm4, %v4194_v38, %v4195_v11  ;;  %v3969_v36 = vor.u32 %v3968_v52, %v3964_v6  ;;  %v4260_v28 = vrot.slane %v4258_v20, 1  ;;  %v7956_v62 = vld [vmem:[#allocation8 + $0xe8] sm:$0xff]  }
 0x3c2   : > { %v3723_v26 = vsel %vm3441_vm6, %v3561_v30, 0.0  ;;  %v3562_v3 = vmax.f32 %v3318_v27, 0.0  ;;  %5079 = vmatprep.mubr.bf16.mxu0 %v10299_v18  ;;  %v3973_v9 = vrot.slane %v3971_v51, 1  ;;  %v7957_v20 = vld [vmem:[#allocation8 + $0xa8] sm:$0xff]   ;;  %6891 = vmatprep.subr.bf16.mxu1 %v7956_v62 }
 0x3c3   : > { %v3767_v59 = vsel %vm3500_vm7, %v3605_v56, 0.0  ;;  %v3121_v60 = vpop.f32.mrb[232].mxu0  ;;  %v4270_v56 = vrot.slane %v3803_v42, 1  ;;  %6892 = vmatpush3.bf16.msra.mxu1 %v7957_v20 }
 0x3c4   : > { %v3804_v12 = vpack.c.bf16 %v3767_v59, %v3767_v59  ;;  %v3775_v7 = vpack.c.bf16 %v3562_v3, %v3723_v26  ;;  %v10306_v0 = vpack.c.bf16 %v3562_v3, %v3561_v30  ;;  %v3122_v38 = vadd.f32 %v3121_v60, %v10063_v48  ;;  %v7299_v40 = vpop.f32.mrb[233].mxu0 }
 0x3c5   : > { %v3974_v11 = vsel %vm802_vm0, %v3969_v36, %v3973_v9  ;;  %v3124_v6 = vpop.f32.mrb[234].mxu0  ;;  %v4261_v3 = vor.u32 %v4260_v28, %v4256_v22 }
 0x3c6   : > { %v4263_v27 = vshll.u32 %v3804_v12, 16  ;;  %v3319_v30 = vadd.f32 %v10247_v2, %v3122_v38  ;;  %4765 = vmatprep.mubr.bf16.mxu1 %v3974_v11  ;;  %5080 = vmatmul.mubr.bf16.vlgmr.msra.gmra.mrb[48].mxu0 %v3974_v11  ;;  %v3125_v48 = vadd.f32 %v3124_v6, %v10067_v63  ;;  %v7300_v52 = vpop.f32.mrb[235].mxu0  ;;  %v3978_v51 = vshll.u32 %v3775_v7, 16 }
 0x3c7   : > { %6550 = vmatmul.mubr.msk.bf16.gmra.mrb[240].mxu1 %vm10311_vm9, %v10278_v1  ;;  %v4271_v26 = vrot.slane %v3804_v12, 1  ;;  %v4197_v12 = vrot.slane %v3775_v7, 1 }
 0x3c8   : > { %v4265_v36 = vrot.slane %v4263_v27, 1  ;;  %v3563_v9 = vmax.f32 %v3319_v30, 0.0  ;;  %v3320_v59 = vadd.f32 %v10247_v2, %v3125_v48  ;;  %v3980_v62 = vrot.slane %v3978_v51, 1 }
 0x3c9   : > { %v10323_v60 = vsel %vm1073_vm4, %v4270_v56, %v4271_v26  ;;  %v3976_v27 = vshrl.u32 %v3775_v7, 16 }
 0x3ca   : > { %v3725_v63 = vsel %vm3500_vm7, %v3563_v9, 0.0  ;;  %v10328_v38 = vsel %vm802_vm0, %v4261_v3, %v4265_v36  ;;  %v3564_v6 = vmax.f32 %v3320_v59, 0.0 }
 0x3cb   : > { %v3776_v40 = vpack.c.bf16 %v3725_v63, %v3725_v63  ;;  %v3129_v11 = vpop.f32.mrb[236].mxu0  ;;  %v3981_v3 = vor.u32 %v3980_v62, %v3976_v27  ;;  %v7960_v27 = vld [vmem:[#allocation8 + $0x200] sm:$0xff]  }
 0x3cc   : > { %v3130_v42 = vadd.f32 %v3129_v11, %v10072_v54  ;;  %v7303_v28 = vpop.f32.mrb[237].mxu0  ;;  %v3726_v9 = vsel %vm3441_vm6, %v3564_v6, 0.0  ;;  %7389 = vmatprep.subr.bf16.mxu0 %v7960_v27 }
 0x3cd   : > { %v3132_v20 = vpop.f32.mrb[238].mxu0  ;;  %v4198_v22 = vrot.slane %v3776_v40, 1  ;;  %v3983_v30 = vshll.u32 %v3776_v40, 16  ;;  %v7958_v28 = vld [vmem:[#allocation8 + $0xf0] sm:$0xff]   ;;  %7390 = vmatpush3.bf16.msra.mxu0 %v7960_v27 }
 0x3ce   : > { %v3321_v48 = vadd.f32 %v10247_v2, %v3130_v42  ;;  %v3133_v52 = vadd.f32 %v3132_v20, %v10076_v29  ;;  %v7304_v56 = vpop.f32.mrb[239].mxu0  ;;  %6893 = vmatprep.subr.bf16.mxu1 %v7958_v28 }
 0x3cf   : > { %v10334_v26 = vsel %vm1073_vm4, %v4197_v12, %v4198_v22  ;;  %v3985_v36 = vrot.slane %v3983_v30, 1  ;;  %v7959_v12 = vld [vmem:[#allocation8 + $0xb0] sm:$0xff]  }
 0x3d0   : > { %v3565_v51 = vmax.f32 %v3321_v48, 0.0  ;;  %v3322_v54 = vadd.f32 %v10247_v2, %v3133_v52  ;;  %5087 = vmatprep.mubr.bf16.mxu0 %v10334_v26  ;;  %6894 = vmatpush3.bf16.msra.mxu1 %v7959_v12 }
 0x3d1   : > { %v10341_v7 = vsel %vm802_vm0, %v3981_v3, %v3985_v36 }
 0x3d2   : > { %11895 = vst [vmem:[#allocation68_spill] sm:$0xff] %v10341_v7  ;;  %v3777_v59 = vpack.c.bf16 %v3565_v51, %v3726_v9  ;;  %v10343_v63 = vpack.c.bf16 %v3565_v51, %v3564_v6  ;;  %v3566_v29 = vmax.f32 %v3322_v54, 0.0  ;;  %4773 = vmatprep.mubr.bf16.mxu1 %v10341_v7  ;;  %5088 = vmatmul.mubr.bf16.gmra.mrb[52].mxu0 %v10341_v7 }
 0x3d3   : > { %v3137_v40 = vpop.f32.mrb[240].mxu0  ;;  %6553 = vmatmul.mubr.msk.bf16.gmra.mrb[244].mxu1 %vm10311_vm9, %v10306_v0 }
 0x3d4   : > { %v3728_v11 = vsel %vm3500_vm7, %v3566_v29, 0.0  ;;  %v3138_v62 = vadd.f32 %v3137_v40, %v10081_v44  ;;  %v7307_v42 = vpop.f32.mrb[241].mxu0  ;;  %v3990_v22 = vshll.u32 %v3777_v59, 16  ;;  %v4200_v56 = vrot.slane %v3777_v59, 1 }
 0x3d5   : > { %v3778_v6 = vpack.c.bf16 %v3728_v11, %v3728_v11  ;;  %v3140_v20 = vpop.f32.mrb[242].mxu0  ;;  %v3988_v36 = vshrl.u32 %v3777_v59, 16 }
 0x3d6   : > { %v3323_v30 = vadd.f32 %v10247_v2, %v3138_v62  ;;  %v3141_v48 = vadd.f32 %v3140_v20, %v10085_v57  ;;  %v7308_v52 = vpop.f32.mrb[243].mxu0  ;;  %v3992_v51 = vrot.slane %v3990_v22, 1  ;;  %v7961_v62 = vld [vmem:[#allocation8 + $0x208] sm:$0xff]  }
 0x3d7   : > { %v4201_v3 = vrot.slane %v3778_v6, 1  ;;  %v3995_v54 = vshll.u32 %v3778_v6, 16  ;;  %7391 = vmatprep.subr.bf16.mxu0 %v7961_v62 }
 0x3d8   : > { %v3567_v44 = vmax.f32 %v3323_v30, 0.0  ;;  %v3324_v9 = vadd.f32 %v10247_v2, %v3141_v48  ;;  %v3993_v40 = vor.u32 %v3992_v51, %v3988_v36  ;;  %7392 = vmatpush3.bf16.msra.mxu0 %v7961_v62  ;;  %v7962_v30 = vld [vmem:[#allocation8 + $0x210] sm:$0xff]   ;;  %v7965_v51 = vld [vmem:[#allocation8 + $0x218] sm:$0xff]  }
 0x3d9   : > { %v10357_v29 = vsel %vm1073_vm4, %v4200_v56, %v4201_v3  ;;  %v3997_v11 = vrot.slane %v3995_v54, 1  ;;  %v7963_v3 = vld [vmem:[#allocation8 + $0xf8] sm:$0xff]   ;;  %7393 = vmatprep.subr.bf16.mxu0 %v7962_v30 }
 0x3da   : > { %v3729_v57 = vsel %vm3441_vm6, %v3567_v44, 0.0  ;;  %v3568_v42 = vmax.f32 %v3324_v9, 0.0  ;;  %5095 = vmatprep.mubr.bf16.mxu0 %v10357_v29  ;;  %6895 = vmatprep.subr.bf16.mxu1 %v7963_v3 }
 0x3db   : > { %v3145_v59 = vpop.f32.mrb[244].mxu0  ;;  %v10363_v28 = vsel %vm802_vm0, %v3993_v40, %v3997_v11 }
 0x3dc   : > { %11896 = vst [vmem:[#allocation70_spill] sm:$0xff] %v10363_v28  ;;  %v3779_v12 = vpack.c.bf16 %v3568_v42, %v3729_v57  ;;  %v10365_v6 = vpack.c.bf16 %v3568_v42, %v3567_v44  ;;  %v3146_v20 = vadd.f32 %v3145_v59, %v10090_v8  ;;  %v7311_v22 = vpop.f32.mrb[245].mxu0  ;;  %4781 = vmatprep.mubr.bf16.mxu1 %v10363_v28  ;;  %v7964_v8 = vld [vmem:[#allocation8 + $0xb8] sm:$0xff]  }
 0x3dd   : > { %5096 = vmatmul.mubr.bf16.gmra.mrb[56].mxu0 %v10363_v28  ;;  %v3148_v27 = vpop.f32.mrb[246].mxu0  ;;  %6556 = vmatmul.mubr.msk.bf16.gmra.mrb[248].mxu1 %vm10311_vm9, %v10343_v63 }
 0x3de   : > { %v3325_v48 = vadd.f32 %v10247_v2, %v3146_v20  ;;  %v3149_v52 = vadd.f32 %v3148_v27, %v10094_v41  ;;  %v7312_v56 = vpop.f32.mrb[247].mxu0  ;;  %v4002_v36 = vshll.u32 %v3779_v12, 16  ;;  %7394 = vmatpush3.bf16.msra.mxu0 %v7962_v30  ;;  %6896 = vmatpush3.bf16.msra.mxu1 %v7964_v8  ;;  %v4203_v42 = vrot.slane %v3779_v12, 1 }
 0x3df   : > { %7395 = vmatprep.subr.bf16.mxu0 %v7965_v51  ;;  %v4000_v27 = vshrl.u32 %v3779_v12, 16 }
 0x3e0   : > { %v3569_v54 = vmax.f32 %v3325_v48, 0.0  ;;  %v3326_v44 = vadd.f32 %v10247_v2, %v3149_v52  ;;  %v4004_v62 = vrot.slane %v4002_v36, 1  ;;  %v7966_v52 = vld [vmem:[#allocation8 + $0x220] sm:$0xff]  }
 0x3e2   : > { %v3731_v9 = vsel %vm3500_vm7, %v3569_v54, 0.0  ;;  %v3570_v59 = vmax.f32 %v3326_v44, 0.0  ;;  %7396 = vmatpush3.bf16.msra.mxu0 %v7965_v51  ;;  %v4005_v36 = vor.u32 %v4004_v62, %v4000_v27  ;;  %v7968_v27 = vld [vmem:[#allocation8 + $0x230] sm:$0xff]  }
 0x3e3   : > { %v3780_v40 = vpack.c.bf16 %v3731_v9, %v3731_v9  ;;  %v3153_v11 = vpop.f32.mrb[248].mxu0  ;;  %7397 = vmatprep.subr.bf16.mxu0 %v7966_v52 }
 0x3e4   : > { %v3154_v41 = vadd.f32 %v3153_v11, %v10099_v55  ;;  %v7315_v57 = vpop.f32.mrb[249].mxu0  ;;  %v7967_v55 = vld [vmem:[#allocation8 + $0x228] sm:$0xff]   ;;  %v3732_v12 = vsel %vm3441_vm6, %v3570_v59, 0.0 }
 0x3e5   : > { %v3156_v20 = vpop.f32.mrb[250].mxu0  ;;  %v4204_v22 = vrot.slane %v3780_v40, 1  ;;  %v4007_v48 = vshll.u32 %v3780_v40, 16 }
 0x3e6   : > { %v3327_v30 = vadd.f32 %v10247_v2, %v3154_v41  ;;  %v3157_v56 = vadd.f32 %v3156_v20, %v10103_v15  ;;  %v7316_v3 = vpop.f32.mrb[251].mxu0  ;;  %7398 = vmatpush3.bf16.msra.mxu0 %v7966_v52 }
 0x3e7   : > { %v10382_v8 = vsel %vm1073_vm4, %v4203_v42, %v4204_v22  ;;  %v4009_v54 = vrot.slane %v4007_v48, 1  ;;  %7399 = vmatprep.subr.bf16.mxu0 %v7967_v55  ;;  %v7969_v3 = vld [vmem:[#allocation8 + $0x1c0] sm:$0xff]  }
 0x3e8   : > { %v3571_v9 = vmax.f32 %v3327_v30, 0.0  ;;  %v3328_v44 = vadd.f32 %v10247_v2, %v3157_v56  ;;  %5103 = vmatprep.mubr.bf16.mxu0 %v10382_v8  ;;  %7105 = vmatprep.subr.bf16.mxu1 %v7969_v3 }
 0x3e9   : > { %v10389_v51 = vsel %vm802_vm0, %v4005_v36, %v4009_v54 }
 0x3ea   : > { %11897 = vst [vmem:[#allocation81_spill] sm:$0xff] %v10389_v51  ;;  %v3781_v15 = vpack.c.bf16 %v3571_v9, %v3732_v12  ;;  %v10391_v40 = vpack.c.bf16 %v3571_v9, %v3570_v59  ;;  %v3572_v11 = vmax.f32 %v3328_v44, 0.0  ;;  %4789 = vmatprep.mubr.bf16.mxu1 %v10389_v51  ;;  %5104 = vmatmul.mubr.bf16.gmra.mrb[60].mxu0 %v10389_v51  ;;  %v7971_v12 = vld [vmem:[#allocation8 + $0x238] sm:$0xff]  }
 0x3eb   : > { %v3161_v62 = vpop.f32.mrb[252].mxu0  ;;  %6559 = vmatmul.mubr.msk.bf16.gmra.mrb[252].mxu1 %vm10311_vm9, %v10365_v6  ;;  %7400 = vmatpush3.bf16.msra.mxu0 %v7967_v55  ;;  %v11911_v51 = vld [vmem:[#allocation58_spill] sm:$0xff] }
 0x3ec   : > { %v3734_v41 = vsel %vm3500_vm7, %v3572_v11, 0.0  ;;  %v3162_v57 = vadd.f32 %v3161_v62, %v10109_v10  ;;  %v7319_v42 = vpop.f32.mrb[253].mxu0  ;;  %v4014_v22 = vshll.u32 %v3781_v15, 16  ;;  %v4206_v56 = vrot.slane %v3781_v15, 1  ;;  %7401 = vmatprep.subr.bf16.mxu0 %v7968_v27 }
 0x3ed   : > { %v3782_v20 = vpack.c.bf16 %v3734_v41, %v3734_v41  ;;  %v3164_v59 = vpop.f32.mrb[254].mxu0  ;;  %v4012_v54 = vshrl.u32 %v3781_v15, 16 }
 0x3ee   : > { %v3329_v48 = vadd.f32 %v10247_v2, %v3162_v57  ;;  %v3165_v52 = vadd.f32 %v3164_v59, %v10112_v49  ;;  %v7320_v30 = vpop.f32.mrb[255].mxu0  ;;  %v4016_v9 = vrot.slane %v4014_v22, 1 }
 0x3ef   : > { %v4207_v36 = vrot.slane %v3782_v20, 1  ;;  %v4019_v44 = vshll.u32 %v3782_v20, 16  ;;  %7402 = vmatpush3.bf16.msra.mxu0 %v7968_v27 }
 0x3f0   : > { %v3573_v10 = vmax.f32 %v3329_v48, 0.0  ;;  %v3330_v11 = vadd.f32 %v10247_v2, %v3165_v52  ;;  %v4017_v62 = vor.u32 %v4016_v9, %v4012_v54  ;;  %7403 = vmatprep.subr.bf16.mxu0 %v7971_v12 }
 0x3f1   : > { %v10405_v55 = vsel %vm1073_vm4, %v4206_v56, %v4207_v36  ;;  %v4021_v41 = vrot.slane %v4019_v44, 1 }
 0x3f2   : > { %v3735_v49 = vsel %vm3441_vm6, %v3573_v10, 0.0  ;;  %v3574_v57 = vmax.f32 %v3330_v11, 0.0  ;;  %5111 = vmatprep.mubr.bf16.mxu0 %v10405_v55 }
 0x3f3   : > { %v3169_v15 = vpop.f32.mrb[0].mxu0  ;;  %v10411_v42 = vsel %vm802_vm0, %v4017_v62, %v4021_v41  ;;  %7404 = vmatpush3.bf16.msra.mxu0 %v7971_v12 }
 0x3f4   : > { %11898 = vst [vmem:[#allocation76_spill] sm:$0xff] %v10411_v42  ;;  %v3783_v20 = vpack.c.bf16 %v3574_v57, %v3735_v49  ;;  %v10413_v59 = vpack.c.bf16 %v3574_v57, %v3573_v10  ;;  %v3170_v22 = vadd.f32 %v3169_v15, %v10118_v43  ;;  %v7323_v48 = vpop.f32.mrb[1].mxu0  ;;  %4797 = vmatprep.mubr.bf16.mxu1 %v10411_v42 }
 0x3f5   : > { %5112 = vmatmul.mubr.bf16.gmra.mrb[64].mxu0 %v10411_v42  ;;  %v3172_v27 = vpop.f32.mrb[2].mxu0  ;;  %6562 = vmatmul.mubr.msk.bf16.gmra.mrb[0].mxu1 %vm10311_vm9, %v10391_v40 }
 0x3f6   : > { %v3331_v52 = vadd.f32 %v10247_v2, %v3170_v22  ;;  %v3173_v30 = vadd.f32 %v3172_v27, %v10121_v47  ;;  %v7324_v56 = vpop.f32.mrb[3].mxu0  ;;  %v4026_v3 = vshll.u32 %v3783_v20, 16  ;;  %v4209_v41 = vrot.slane %v3783_v20, 1 }
 0x3f7   : > { %v4024_v15 = vshrl.u32 %v3783_v20, 16 }
 0x3f8   : > { %v3575_v36 = vmax.f32 %v3331_v52, 0.0  ;;  %v3332_v43 = vadd.f32 %v10247_v2, %v3173_v30  ;;  %v4028_v10 = vrot.slane %v4026_v3, 1 }
 0x3fa   : > { %v3737_v54 = vsel %vm3500_vm7, %v3575_v36, 0.0  ;;  %v3576_v12 = vmax.f32 %v3332_v43, 0.0  ;;  %v4029_v30 = vor.u32 %v4028_v10, %v4024_v15 }
 0x3fb   : > { %v3784_v9 = vpack.c.bf16 %v3737_v54, %v3737_v54  ;;  %v3177_v44 = vpop.f32.mrb[4].mxu0 }
 0x3fc   : > { %v3178_v11 = vadd.f32 %v3177_v44, %v10127_v17  ;;  %v7327_v62 = vpop.f32.mrb[5].mxu0  ;;  %v3738_v36 = vsel %vm3441_vm6, %v3576_v12, 0.0 }
 0x3fd   : > { %v3180_v49 = vpop.f32.mrb[6].mxu0  ;;  %v4210_v57 = vrot.slane %v3784_v9, 1  ;;  %v4031_v47 = vshll.u32 %v3784_v9, 16 }
 0x3fe   : > { %v3333_v22 = vadd.f32 %v10247_v2, %v3178_v11  ;;  %v3181_v48 = vadd.f32 %v3180_v49, %v10130_v13  ;;  %v7328_v27 = vpop.f32.mrb[7].mxu0 }
 0x3ff   : > { %v10430_v52 = vsel %vm1073_vm4, %v4209_v41, %v4210_v57  ;;  %v4033_v56 = vrot.slane %v4031_v47, 1 }
 0x400   : > { %v3577_v3 = vmax.f32 %v3333_v22, 0.0  ;;  %v3334_v17 = vadd.f32 %v10247_v2, %v3181_v48  ;;  %5119 = vmatprep.mubr.bf16.mxu0 %v10430_v52 }
 0x401   : > { %v10437_v20 = vsel %vm802_vm0, %v4029_v30, %v4033_v56 }
 0x402   : > { %11899 = vst [vmem:[#allocation79_spill] sm:$0xff] %v10437_v20  ;;  %v3785_v43 = vpack.c.bf16 %v3577_v3, %v3738_v36  ;;  %v10439_v54 = vpack.c.bf16 %v3577_v3, %v3576_v12  ;;  %v3578_v13 = vmax.f32 %v3334_v17, 0.0  ;;  %4805 = vmatprep.mubr.bf16.mxu1 %v10437_v20  ;;  %5120 = vmatmul.mubr.bf16.gmra.mrb[68].mxu0 %v10437_v20 }
 0x403   : > { %v3185_v9 = vpop.f32.mrb[8].mxu0  ;;  %6565 = vmatmul.mubr.msk.bf16.gmra.mrb[4].mxu1 %vm10311_vm9, %v10413_v59 }
 0x404   : > { %v3740_v44 = vsel %vm3500_vm7, %v3578_v13, 0.0  ;;  %v3186_v10 = vadd.f32 %v3185_v9, %v10136_v23  ;;  %v7331_v11 = vpop.f32.mrb[9].mxu0  ;;  %v4038_v12 = vshll.u32 %v3785_v43, 16  ;;  %v4212_v47 = vrot.slane %v3785_v43, 1  ;;  %v3297_v13 = vpop.f32.mrb[232].mxu1 }
 0x405   : > { %v3786_v62 = vpack.c.bf16 %v3740_v44, %v3740_v44  ;;  %v3188_v41 = vpop.f32.mrb[10].mxu0  ;;  %v4036_v48 = vshrl.u32 %v3785_v43, 16 }
 0x406   : > { %v3335_v49 = vadd.f32 %v10247_v2, %v3186_v10  ;;  %v3189_v57 = vadd.f32 %v3188_v41, %v10139_v46  ;;  %v7332_v15 = vpop.f32.mrb[11].mxu0  ;;  %v4040_v27 = vrot.slane %v4038_v12, 1  ;;  %v7387_v46 = vpop.f32.mrb[233].mxu1 }
 0x407   : > { %v4213_v22 = vrot.slane %v3786_v62, 1  ;;  %v4043_v30 = vshll.u32 %v3786_v62, 16  ;;  %v3300_v11 = vpop.f32.mrb[234].mxu1 }
 0x408   : > { %v3579_v56 = vmax.f32 %v3335_v49, 0.0  ;;  %v3336_v3 = vadd.f32 %v10247_v2, %v3189_v57  ;;  %v4041_v23 = vor.u32 %v4040_v27, %v4036_v48  ;;  %v7388_v57 = vpop.f32.mrb[235].mxu1 }
 0x409   : > { %v10453_v17 = vsel %vm1073_vm4, %v4212_v47, %v4213_v22  ;;  %v4045_v36 = vrot.slane %v4043_v30, 1 }
 0x40a   : > { %v3741_v9 = vsel %vm3441_vm6, %v3579_v56, 0.0  ;;  %v3580_v44 = vmax.f32 %v3336_v3, 0.0  ;;  %5127 = vmatprep.mubr.bf16.mxu0 %v10453_v17 }
 0x40b   : > { %v3193_v10 = vpop.f32.mrb[12].mxu0  ;;  %v10459_v43 = vsel %vm802_vm0, %v4041_v23, %v4045_v36 }
 0x40c   : > { %11900 = vst [vmem:[#allocation86_spill] sm:$0xff] %v10459_v43  ;;  %v3787_v62 = vpack.c.bf16 %v3580_v44, %v3741_v9  ;;  %v10461_v41 = vpack.c.bf16 %v3580_v44, %v3579_v56  ;;  %v3194_v12 = vadd.f32 %v3193_v10, %v10148_v19  ;;  %v7335_v49 = vpop.f32.mrb[13].mxu0  ;;  %4813 = vmatprep.mubr.bf16.mxu1 %v10459_v43 }
 0x40d   : > { %5128 = vmatmul.mubr.bf16.gmra.mrb[72].mxu0 %v10459_v43  ;;  %v3196_v15 = vpop.f32.mrb[14].mxu0  ;;  %6568 = vmatmul.mubr.msk.bf16.gmra.mrb[8].mxu1 %vm10311_vm9, %v10439_v54  ;;  %v6785_v56 = vpop.f32.mrb[236].mxu1 }
 0x40e   : > { %v3337_v47 = vadd.f32 %v10247_v2, %v3194_v12  ;;  %v3197_v22 = vadd.f32 %v3196_v15, %v10151_v5  ;;  %v7336_v48 = vpop.f32.mrb[15].mxu0  ;;  %v4050_v27 = vshll.u32 %v3787_v62, 16  ;;  %v6786_v23 = vpop.f32.mrb[237].mxu1  ;;  %v4215_v11 = vrot.slane %v3787_v62, 1 }
 0x40f   : > { %v10474_v44 = vadd.f32 %v6786_v23, %v6785_v56  ;;  %v4048_v5 = vshrl.u32 %v3787_v62, 16 }
 0x410   : > { %v3581_v30 = vmax.f32 %v3337_v47, 0.0  ;;  %v3338_v19 = vadd.f32 %v10247_v2, %v3197_v22  ;;  %v4052_v9 = vrot.slane %v4050_v27, 1  ;;  %v10477_v47 = vld [vmem:[#allocation11] sm:$0xff]   ;;  %v6788_v22 = vpop.f32.mrb[238].mxu1 }
 0x411   : > { %11901 = vst [vmem:[#allocation88_spill] sm:$0xff] %v10474_v44  ;;  %v6789_v27 = vpop.f32.mrb[239].mxu1  ;;  %7437 = vmatprep.subr.bf16.mxu0 %v10477_v47 }
 0x412   : > { %v3743_v3 = vsel %vm3500_vm7, %v3581_v30, 0.0  ;;  %v3582_v12 = vmax.f32 %v3338_v19, 0.0  ;;  %v10485_v62 = vadd.f32 %v6789_v27, %v6788_v22 }
 0x413   : > { %v3788_v36 = vpack.c.bf16 %v3743_v3, %v3743_v3  ;;  %v3201_v13 = vpop.f32.mrb[16].mxu0 }
 0x414   : > { %v3202_v46 = vadd.f32 %v3201_v13, %v10162_v35  ;;  %v7339_v10 = vpop.f32.mrb[17].mxu0  ;;  %v4053_v35 = vor.u32 %v4052_v9, %v4048_v5  ;;  %11902 = vst [vmem:[#allocation85_spill] sm:$0xff] %v10485_v62  ;;  %v3744_v13 = vsel %vm3441_vm6, %v3582_v12, 0.0 }
 0x415   : > { %v3204_v49 = vpop.f32.mrb[18].mxu0  ;;  %v4216_v57 = vrot.slane %v3788_v36, 1  ;;  %v4055_v15 = vshll.u32 %v3788_v36, 16 }
 0x416   : > { %v3339_v48 = vadd.f32 %v10247_v2, %v3202_v46  ;;  %v3205_v30 = vadd.f32 %v3204_v49, %v10165_v58  ;;  %v7340_v3 = vpop.f32.mrb[19].mxu0 }
 0x417   : > { %v10482_v56 = vsel %vm1073_vm4, %v4215_v11, %v4216_v57  ;;  %v4057_v23 = vrot.slane %v4055_v15, 1 }
 0x418   : > { %v3583_v19 = vmax.f32 %v3339_v48, 0.0  ;;  %v3340_v36 = vadd.f32 %v10247_v2, %v3205_v30  ;;  %5135 = vmatprep.mubr.bf16.mxu0 %v10482_v56 }
 0x419   : > { %v10492_v58 = vsel %vm802_vm0, %v4053_v35, %v4057_v23 }
 0x41a   : > { %11903 = vst [vmem:[#allocation93_spill] sm:$0xff] %v10492_v58  ;;  %v3789_v46 = vpack.c.bf16 %v3583_v19, %v3744_v13  ;;  %v10494_v10 = vpack.c.bf16 %v3583_v19, %v3582_v12  ;;  %v3584_v9 = vmax.f32 %v3340_v36, 0.0  ;;  %4821 = vmatprep.mubr.bf16.mxu1 %v10492_v58  ;;  %5136 = vmatmul.mubr.bf16.gmra.mrb[76].mxu0 %v10492_v58  ;;  %v8006_v58 = vld [vmem:[%s8658_s16 + $0x48] sm:$0xf] }
 0x41b   : > { %v3209_v11 = vpop.f32.mrb[20].mxu0  ;;  %6571 = vmatmul.mubr.msk.bf16.gmra.mrb[12].mxu1 %vm10311_vm9, %v10461_v41 }
 0x41c   : > { %v3746_v5 = vsel %vm3500_vm7, %v3584_v9, 0.0  ;;  %v3210_v49 = vadd.f32 %v3209_v11, %v10171_v25  ;;  %v7343_v57 = vpop.f32.mrb[21].mxu0  ;;  %v4062_v12 = vshll.u32 %v3789_v46, 16  ;;  %v4218_v27 = vrot.slane %v3789_v46, 1 }
 0x41d   : > { %v3790_v15 = vpack.c.bf16 %v3746_v5, %v3746_v5  ;;  %v3212_v22 = vpop.f32.mrb[22].mxu0  ;;  %v4060_v23 = vshrl.u32 %v3789_v46, 16 }
 0x41e   : > { %v3341_v48 = vadd.f32 %v10247_v2, %v3210_v49  ;;  %v3213_v30 = vadd.f32 %v3212_v22, %v10174_v21  ;;  %v7344_v3 = vpop.f32.mrb[23].mxu0  ;;  %v4064_v19 = vrot.slane %v4062_v12, 1 }
 0x41f   : > { %v4219_v35 = vrot.slane %v3790_v15, 1  ;;  %v4067_v36 = vshll.u32 %v3790_v15, 16 }
 0x420   : > { %v3585_v13 = vmax.f32 %v3341_v48, 0.0  ;;  %v3342_v62 = vadd.f32 %v10247_v2, %v3213_v30  ;;  %v4065_v25 = vor.u32 %v4064_v19, %v4060_v23 }
 0x421   : > { %v10508_v9 = vsel %vm1073_vm4, %v4218_v27, %v4219_v35  ;;  %v4069_v11 = vrot.slane %v4067_v36, 1 }
 0x422   : > { %v3747_v5 = vsel %vm3441_vm6, %v3585_v13, 0.0  ;;  %v3586_v49 = vmax.f32 %v3342_v62, 0.0  ;;  %5143 = vmatprep.mubr.bf16.mxu0 %v10508_v9 }
 0x423   : > { %v3217_v21 = vpop.f32.mrb[24].mxu0  ;;  %v10514_v57 = vsel %vm802_vm0, %v4065_v25, %v4069_v11 }
 0x424   : > { %11904 = vst [vmem:[#allocation82_spill] sm:$0xff] %v10514_v57  ;;  %v3791_v46 = vpack.c.bf16 %v3586_v49, %v3747_v5  ;;  %v10516_v15 = vpack.c.bf16 %v3586_v49, %v3585_v13  ;;  %v3218_v22 = vadd.f32 %v3217_v21, %v10180_v34  ;;  %v7347_v12 = vpop.f32.mrb[25].mxu0  ;;  %4829 = vmatprep.mubr.bf16.mxu1 %v10514_v57 }
 0x425   : > { %5144 = vmatmul.mubr.bf16.gmra.mrb[80].mxu0 %v10514_v57  ;;  %v3220_v48 = vpop.f32.mrb[26].mxu0  ;;  %6574 = vmatmul.mubr.msk.bf16.gmra.mrb[16].mxu1 %vm10311_vm9, %v10494_v10 }
 0x426   : > { %v3343_v62 = vadd.f32 %v10247_v2, %v3218_v22  ;;  %v3221_v30 = vadd.f32 %v3220_v48, %v10182_v61  ;;  %v7348_v3 = vpop.f32.mrb[27].mxu0  ;;  %v4074_v27 = vshll.u32 %v3791_v46, 16  ;;  %v4221_v5 = vrot.slane %v3791_v46, 1  ;;  %v8001_v48 = vld [vmem:[%s8658_s16 + $0x24] sm:$0xf] }
 0x427   : > { %v4072_v22 = vshrl.u32 %v3791_v46, 16  ;;  %v8002_v46 = vld [vmem:[%s8658_s16 + $0x20] sm:$0xf] }
 0x428   : > { %v3587_v35 = vmax.f32 %v3343_v62, 0.0  ;;  %v3344_v34 = vadd.f32 %v10247_v2, %v3221_v30  ;;  %v4076_v13 = vrot.slane %v4074_v27, 1  ;;  %v5574_v62 = vrot.slane %v8001_v48, 5  ;;  %v8004_v48 = vld [vmem:[%s8658_s16 + $0x28] sm:$0xf] }
 0x42a   : > { %v3749_v23 = vsel %vm3500_vm7, %v3587_v35, 0.0  ;;  %v3588_v49 = vmax.f32 %v3344_v34, 0.0 }
 0x42b   : > { %v3792_v19 = vpack.c.bf16 %v3749_v23, %v3749_v23  ;;  %v3225_v36 = vpop.f32.mrb[28].mxu0 }
 0x42c   : > { %v3226_v25 = vadd.f32 %v3225_v36, %v10189_v53  ;;  %v7351_v11 = vpop.f32.mrb[29].mxu0  ;;  %v4077_v53 = vor.u32 %v4076_v13, %v4072_v22 }
 0x42d   : > { %v3228_v21 = vpop.f32.mrb[30].mxu0  ;;  %v4222_v61 = vrot.slane %v3792_v19, 1  ;;  %v4079_v12 = vshll.u32 %v3792_v19, 16  ;;  %v6687_v19 = vrot.slane %v8002_v46, 9 }
 0x42e   : > { %v3345_v30 = vadd.f32 %v10247_v2, %v3226_v25  ;;  %v3229_v3 = vadd.f32 %v3228_v21, %v10191_v4  ;;  %v7352_v35 = vpop.f32.mrb[31].mxu0  ;;  %v3750_v25 = vsel %vm3441_vm6, %v3588_v49, 0.0  ;;  %v5576_v21 = vrot.slane %v5574_v62, 4 }
 0x42f   : > { %v10534_v23 = vsel %vm1073_vm4, %v4221_v5, %v4222_v61  ;;  %v4081_v27 = vrot.slane %v4079_v12, 1  ;;  %v8003_v61 = vld [vmem:[%s8658_s16 + $0x40] sm:$0xf]  ;;  %v10559_v44 = vsel %vm8727_vm3, %v6687_v19, %v5574_v62 }
 0x430   : > { %v3589_v36 = vmax.f32 %v3345_v30, 0.0  ;;  %v3346_v34 = vadd.f32 %v10247_v2, %v3229_v3  ;;  %5151 = vmatprep.mubr.bf16.mxu0 %v10534_v23  ;;  %v6689_v22 = vrot.slane %v8003_v61, 9  ;;  %v5577_v30 = vrot.slane %v8004_v48, 5  ;;  %v8005_v3 = vld [vmem:[%s8658_s16 + $0x44] sm:$0xf] }
 0x431   : > { %v10542_v4 = vsel %vm802_vm0, %v4077_v53, %v4081_v27  ;;  %v5588_v35 = vrot.slane %v8005_v3, 5 }
 0x432   : > { %11905 = vst [vmem:[#allocation80_spill] sm:$0xff] %v10542_v4  ;;  %v3793_v11 = vpack.c.bf16 %v3589_v36, %v3750_v25  ;;  %v10544_v5 = vpack.c.bf16 %v3589_v36, %v3588_v49  ;;  %v3590_v13 = vmax.f32 %v3346_v34, 0.0  ;;  %4837 = vmatprep.mubr.bf16.mxu1 %v10542_v4  ;;  %5152 = vmatmul.mubr.bf16.gmra.mrb[84].mxu0 %v10542_v4 }
 0x433   : > { %v3233_v12 = vpop.f32.mrb[32].mxu0  ;;  %6577 = vmatmul.mubr.msk.bf16.gmra.mrb[20].mxu1 %vm10311_vm9, %v10516_v15  ;;  %v10563_v48 = vsel %vm8727_vm3, %v5576_v21, %v5577_v30  ;;  %v10571_v62 = vsel %vm8727_vm3, %v6689_v22, %v5588_v35  ;;  %v5590_v30 = vrot.slane %v5588_v35, 4 }
 0x434   : > { %v3752_v49 = vsel %vm3500_vm7, %v3590_v13, 0.0  ;;  %v3234_v53 = vadd.f32 %v3233_v12, %v10198_v45  ;;  %v7355_v27 = vpop.f32.mrb[33].mxu0  ;;  %v4224_v36 = vrot.slane %v3793_v11, 1  ;;  %v4086_v25 = vshll.u32 %v3793_v11, 16 }
 0x435   : > { %v3794_v34 = vpack.c.bf16 %v3752_v49, %v3752_v49  ;;  %v3236_v46 = vpop.f32.mrb[34].mxu0  ;;  %v4084_v45 = vshrl.u32 %v3793_v11, 16 }
 0x436   : > { %v3347_v3 = vadd.f32 %v10247_v2, %v3234_v53  ;;  %v3237_v13 = vadd.f32 %v3236_v46, %v10200_v32  ;;  %v7356_v4 = vpop.f32.mrb[35].mxu0  ;;  %v4088_v27 = vrot.slane %v4086_v25, 1  ;;  %v5591_v53 = vrot.slane %v8006_v58, 5 }
 0x437   : > { %v4225_v49 = vrot.slane %v3794_v34, 1  ;;  %v4091_v57 = vshll.u32 %v3794_v34, 16 }
 0x438   : > { %v3591_v19 = vmax.f32 %v3347_v3, 0.0  ;;  %v3348_v21 = vadd.f32 %v10247_v2, %v3237_v13  ;;  %v4089_v4 = vor.u32 %v4088_v27, %v4084_v45  ;;  %v10583_v22 = vsel %vm8727_vm3, %v5590_v30, %v5591_v53  ;;  %v8007_v45 = vld [vmem:[%s8658_s16 + $0x60] sm:$0xf]  ;;  %v8008_v27 = vld [vmem:[%s8658_s16 + $0x64] sm:$0xf] }
 0x439   : > { %v10576_v32 = vsel %vm1073_vm4, %v4224_v36, %v4225_v49  ;;  %v4093_v11 = vrot.slane %v4091_v57, 1  ;;  %v6691_v49 = vrot.slane %v8007_v45, 9  ;;  %v10600_v30 = vld [vmem:[#allocation7] ss:$0 sm:$0xff] }
 0x43a   : > { %v3753_v46 = vsel %vm3441_vm6, %v3591_v19, 0.0  ;;  %v3592_v34 = vmax.f32 %v3348_v21, 0.0  ;;  %5159 = vmatprep.mubr.bf16.mxu0 %v10576_v32  ;;  %v5602_v21 = vrot.slane %v8008_v27, 5 }
 0x43b   : > { %v3241_v2 = vpop.f32.mrb[36].mxu0  ;;  %v10586_v58 = vsel %vm802_vm0, %v4089_v4, %v4093_v11 }
 0x43c   : > { %11907 = vst [vmem:[#allocation84_spill] sm:$0xff] %v10586_v58  ;;  %v3795_v57 = vpack.c.bf16 %v3592_v34, %v3753_v46  ;;  %v10590_v36 = vpack.c.bf16 %v3592_v34, %v3591_v19  ;;  %v3242_v25 = vadd.f32 %v3241_v2, %v10207_v33  ;;  %v7359_v3 = vpop.f32.mrb[37].mxu0  ;;  %4845 = vmatprep.mubr.bf16.mxu1 %v10586_v58 }
 0x43d   : > { %5160 = vmatmul.mubr.bf16.gmra.mrb[88].mxu0 %v10586_v58  ;;  %v3244_v13 = vpop.f32.mrb[38].mxu0  ;;  %6580 = vmatmul.mubr.msk.bf16.gmra.mrb[24].mxu1 %vm10311_vm9, %v10544_v5  ;;  %v10609_v2 = vsel %vm8727_vm3, %v6691_v49, %v5602_v21  ;;  %v5604_v3 = vrot.slane %v5602_v21, 4 }
 0x43e   : > { %11908 = vst [vmem:[#allocation90_spill] sm:$0xff] %v10590_v36  ;;  %v3349_v19 = vadd.f32 %v10600_v30, %v3242_v25  ;;  %v3245_v33 = vadd.f32 %v3244_v13, %v10209_v16  ;;  %v7360_v53 = vpop.f32.mrb[39].mxu0  ;;  %v4098_v4 = vshll.u32 %v3795_v57, 16  ;;  %v8010_v25 = vld [vmem:[%s8658_s16 + $0x68] sm:$0xf]  ;;  %v11909_v16 = vld [vmem:[#allocation51_spill] sm:$0xff] }
 0x43f   : > { %v5605_v12 = vrot.slane %v8010_v25, 5  ;;  %v3355_v13 = vadd.f32 %v10600_v30, %v11909_v16  ;;  %v4227_v58 = vrot.slane %v3795_v57, 1  ;;  %v4096_v43 = vshrl.u32 %v3795_v57, 16 }
 0x440   : > { %v3593_v11 = vmax.f32 %v3349_v19, 0.0  ;;  %v3350_v46 = vadd.f32 %v10600_v30, %v3245_v33  ;;  %v4100_v35 = vrot.slane %v4098_v4, 1  ;;  %v11910_v19 = vld [vmem:[#allocation63_spill] sm:$0xff] }
 0x441   : > { %v10617_v21 = vsel %vm8727_vm3, %v5604_v3, %v5605_v12  ;;  %v8011_v4 = vld [vmem:[%s8658_s16 + $0x84] sm:$0xf] }
 0x442   : > { %v3755_v34 = vsel %vm3500_vm7, %v3593_v11, 0.0  ;;  %v3594_v11 = vmax.f32 %v3350_v46, 0.0  ;;  %v4101_v46 = vor.u32 %v4100_v35, %v4096_v43 }
 0x443   : > { %v3796_v45 = vpack.c.bf16 %v3755_v34, %v3755_v34  ;;  %v3249_v27 = vpop.f32.mrb[40].mxu0  ;;  %v5616_v34 = vrot.slane %v8011_v4, 5 }
 0x444   : > { %v3250_v53 = vadd.f32 %v3249_v27, %v11910_v19  ;;  %v7363_v33 = vpop.f32.mrb[41].mxu0  ;;  %v3599_v19 = vmax.f32 %v3355_v13, 0.0  ;;  %v8013_v13 = vld [vmem:[%s8658_s16 + $0xa0] sm:$0xf] }
 0x445   : > { %v3252_v20 = vpop.f32.mrb[42].mxu0  ;;  %v4228_v42 = vrot.slane %v3796_v45, 1  ;;  %v4103_v49 = vshll.u32 %v3796_v45, 16  ;;  %v5618_v35 = vrot.slane %v5616_v34, 4  ;;  %v6695_v33 = vrot.slane %v8013_v13, 9 }
 0x446   : > { %v3351_v25 = vadd.f32 %v10600_v30, %v3250_v53  ;;  %v3253_v16 = vadd.f32 %v3252_v20, %v11911_v51  ;;  %v7364_v28 = vpop.f32.mrb[43].mxu0  ;;  %v8012_v53 = vld [vmem:[%s8658_s16 + $0x80] sm:$0xf] }
 0x447   : > { %v10625_v57 = vsel %vm1073_vm4, %v4227_v58, %v4228_v42  ;;  %v4105_v45 = vrot.slane %v4103_v49, 1  ;;  %v6693_v51 = vrot.slane %v8012_v53, 9  ;;  %v3756_v28 = vsel %vm3441_vm6, %v3594_v11, 0.0  ;;  %v8014_v49 = vld [vmem:[%s8658_s16 + $0xa4] sm:$0xf] }
 0x448   : > { %v3595_v12 = vmax.f32 %v3351_v25, 0.0  ;;  %v3352_v3 = vadd.f32 %v10600_v30, %v3253_v16  ;;  %5167 = vmatprep.mubr.bf16.mxu0 %v10625_v57  ;;  %v5630_v4 = vrot.slane %v8014_v49, 5  ;;  %v8015_v16 = vld [vmem:[%s8658_s16 + $0x88] sm:$0xf] }
 0x449   : > { %v10633_v20 = vsel %vm802_vm0, %v4101_v46, %v4105_v45  ;;  %v5619_v46 = vrot.slane %v8015_v16, 5 }
 0x44a   : > { %11912 = vst [vmem:[#allocation94_spill] sm:$0xff] %v10633_v20  ;;  %v3797_v42 = vpack.c.bf16 %v3595_v12, %v3756_v28  ;;  %v10635_v43 = vpack.c.bf16 %v3595_v12, %v3594_v11  ;;  %v3596_v58 = vmax.f32 %v3352_v3, 0.0  ;;  %4853 = vmatprep.mubr.bf16.mxu1 %v10633_v20  ;;  %5168 = vmatmul.mubr.bf16.gmra.mrb[92].mxu0 %v10633_v20  ;;  %v3761_v11 = vsel %vm3500_vm7, %v3599_v19, 0.0  ;;  %v11913_v12 = vld [vmem:[#allocation66_spill] sm:$0xff] }
 0x44b   : > { %v3257_v25 = vpop.f32.mrb[44].mxu0  ;;  %6583 = vmatmul.mubr.msk.bf16.gmra.mrb[28].mxu1 %vm10311_vm9, %v10590_v36  ;;  %v10652_v20 = vsel %vm8727_vm3, %v6693_v51, %v5616_v34  ;;  %v10656_v16 = vsel %vm8727_vm3, %v5618_v35, %v5619_v46  ;;  %v10664_v34 = vsel %vm8727_vm3, %v6695_v33, %v5630_v4  ;;  %v5632_v46 = vrot.slane %v5630_v4, 4  ;;  %v8016_v36 = vld [vmem:[%s8658_s16 + $0xa8] sm:$0xf] }
 0x44c   : > { %v3758_v45 = vsel %vm3500_vm7, %v3596_v58, 0.0  ;;  %v3258_v3 = vadd.f32 %v3257_v25, %v11913_v12  ;;  %v7367_v53 = vpop.f32.mrb[45].mxu0  ;;  %v4230_v28 = vrot.slane %v3797_v42, 1  ;;  %v4110_v49 = vshll.u32 %v3797_v42, 16 }
 0x44d   : > { %v3798_v13 = vpack.c.bf16 %v3758_v45, %v3758_v45  ;;  %v3260_v27 = vpop.f32.mrb[46].mxu0  ;;  %v4108_v25 = vshrl.u32 %v3797_v42, 16 }
 0x44e   : > { %v3353_v19 = vadd.f32 %v10600_v30, %v3258_v3  ;;  %v3261_v58 = vadd.f32 %v3260_v27, %v11914_v50  ;;  %v7368_v7 = vpop.f32.mrb[47].mxu0  ;;  %v4112_v53 = vrot.slane %v4110_v49, 1  ;;  %v5633_v3 = vrot.slane %v8016_v36, 5 }
 0x44f   : > { %v4231_v12 = vrot.slane %v3798_v13, 1  ;;  %v4115_v37 = vshll.u32 %v3798_v13, 16  ;;  %v3800_v27 = vpack.c.bf16 %v3761_v11, %v3761_v11 }
 0x450   : > { %v3597_v51 = vmax.f32 %v3353_v19, 0.0  ;;  %v3354_v35 = vadd.f32 %v10600_v30, %v3261_v58  ;;  %v4113_v42 = vor.u32 %v4112_v53, %v4108_v25  ;;  %v10676_v30 = vsel %vm8727_vm3, %v5632_v46, %v5633_v3  ;;  %v8018_v19 = vld [vmem:[%s8658_s16 + $0xc4] sm:$0xf] }
 0x451   : > { %v10669_v7 = vsel %vm1073_vm4, %v4230_v28, %v4231_v12  ;;  %v4117_v50 = vrot.slane %v4115_v37, 1  ;;  %v6697_v37 = vrot.slane %v8017_v31, 9  ;;  %v4127_v28 = vshll.u32 %v3800_v27, 16 }
 0x452   : > { %v3759_v13 = vsel %vm3441_vm6, %v3597_v51, 0.0  ;;  %v3598_v49 = vmax.f32 %v3354_v35, 0.0  ;;  %5175 = vmatprep.mubr.bf16.mxu0 %v10669_v7  ;;  %v5644_v58 = vrot.slane %v8018_v19, 5  ;;  %v4234_v12 = vrot.slane %v3800_v27, 1 }
 0x453   : > { %v10679_v33 = vsel %vm802_vm0, %v4113_v42, %v4117_v50  ;;  %v4129_v3 = vrot.slane %v4127_v28, 1 }
 0x454   : > { %v3799_v4 = vpack.c.bf16 %v3598_v49, %v3759_v13  ;;  %v10683_v11 = vpack.c.bf16 %v3598_v49, %v3597_v51  ;;  %4861 = vmatprep.mubr.bf16.mxu1 %v10679_v33  ;;  %5176 = vmatmul.mubr.bf16.gmra.mrb[96].mxu0 %v10679_v33  ;;  %v10698_v50 = vsel %vm8727_vm3, %v6697_v37, %v5644_v58  ;;  %v5646_v13 = vrot.slane %v5644_v58, 4  ;;  %v8019_v49 = vld [vmem:[%s8658_s16 + $0xc8] sm:$0xf]  ;;  %v8020_v37 = vld [vmem:[%s8658_s16 + $0xe4] sm:$0xf] }
 0x455   : > { %6586 = vmatmul.mubr.msk.bf16.gmra.mrb[32].mxu1 %vm10311_vm9, %v10635_v43  ;;  %v5647_v27 = vrot.slane %v8019_v49, 5  ;;  %v5658_v19 = vrot.slane %v8020_v37, 5  ;;  %v8021_v58 = vld [vmem:[%s8658_s16 + $0xe0] sm:$0xf]  ;;  %v11916_v49 = vmov 0.0|0.0  }
 0x456   : > { %v4233_v25 = vrot.slane %v3799_v4, 1  ;;  %v4122_v53 = vshll.u32 %v3799_v4, 16  ;;  %v4120_v35 = vshrl.u32 %v3799_v4, 16  ;;  %v7970_v37 = vld [vmem:[#allocation8 + $0x180] sm:$0xff]  }
 0x457   : > { %v10706_v4 = vsel %vm8727_vm3, %v5646_v13, %v5647_v27  ;;  %v11915_v13 = vld [vmem:[#allocation56_spill] sm:$0xff]  ;;  %v10739_v27 = vrot.slane %v11916_v49, 1 }
 0x458   : > { %v10693_v51 = vsel %vm1073_vm4, %v4233_v25, %v4234_v12  ;;  %v4124_v46 = vrot.slane %v4122_v53, 1  ;;  %v6699_v25 = vrot.slane %v8021_v58, 9  ;;  %v5660_v12 = vrot.slane %v5658_v19, 4  ;;  %v8022_v53 = vld [vmem:[%s8658_s16 + $0xe8] sm:$0xf] }
 0x459   : > { %5183 = vmatprep.mubr.bf16.mxu0 %v10693_v51  ;;  %v7973_v58 = vld [vmem:[#allocation8 + $0x188] sm:$0xff]  }
 0x45a   : > { %v4125_v42 = vor.u32 %v4124_v46, %v4120_v35  ;;  %v5661_v35 = vrot.slane %v8022_v53, 5  ;;  %v10722_v46 = vsel %vm8727_vm3, %v6699_v25, %v5658_v19  ;;  %v7972_v19 = vld [vmem:[#allocation8 + $0x1c8] sm:$0xff]   ;;  %v7974_v25 = vld [vmem:[#allocation8 + $0x1d0] sm:$0xff]  }
 0x45b   : > { %v7977_v53 = vld [vmem:[#allocation11 + $0x8] sm:$0xff]  }
 0x45c   : > { %v10702_v31 = vsel %vm802_vm0, %v4125_v42, %v4129_v3  ;;  %v10726_v3 = vsel %vm8727_vm3, %v5660_v12, %v5661_v35  ;;  %v7979_v12 = vld [vmem:[#allocation8 + $0x1d8] sm:$0xff]  }
 0x45d   : > { %4869 = vmatprep.mubr.bf16.mxu1 %v10702_v31  ;;  %5184 = vmatmul.mubr.bf16.gmra.mrb[100].mxu0 %v10702_v31  ;;  %v7980_v35 = vld [vmem:[#allocation8 + $0x198] sm:$0xff]  }
 0x45e   : > { %6589 = vmatmul.mubr.msk.bf16.gmra.mrb[36].mxu1 %vm10311_vm9, %v10683_v11  ;;  %5191 = vmatprep.mubr.bf16.mxu0 %v10281_v39 }
 0x45f   : > { %4877 = vmatprep.mubr.bf16.mxu1 %v10294_v24 }
 0x465   : > { %5192 = vmatmul.mubr.bf16.gmra.mrb[104].mxu0 %v10294_v24 }
 0x466   : > { %6592 = vmatmul.mubr.msk.bf16.gmra.mrb[40].mxu1 %vm10311_vm9, %v11915_v13  ;;  %5199 = vmatprep.mubr.bf16.mxu0 %v10323_v60 }
 0x467   : > { %6595 = vmatprep.mubr.msk.bf16.mxu1 %vm10311_vm9, %v10278_v1  ;;  %v7975_v1 = vld [vmem:[#allocation8 + $0x190] sm:$0xff]  }
 0x46d   : > { %5200 = vmatmul.mubr.bf16.gmra.mrb[108].mxu0 %v10328_v38 }
 0x46e   : > { %4919 = vmatmul.mubr.bf16.vlgmr.msra.gmra.mrb[44].mxu1 %v10739_v27  ;;  %7405 = vmatprep.mubr.bf16.mxu0 %v10334_v26 }
 0x46f   : > { %6598 = vmatprep.mubr.msk.bf16.mxu1 %vm10311_vm9, %v10306_v0  ;;  %7106 = vmatpush3.bf16.msra.mxu1 %v7970_v37  ;;  %v7985_v37 = vld [vmem:[#allocation8 + $0x1e0] sm:$0xff]  }
 0x470   : > { %7107 = vmatprep.subr.bf16.mxu1 %v7972_v19  ;;  %v7978_v19 = vld [vmem:[#allocation11 + $0x10] sm:$0xff]  }
 0x473   : > { %7108 = vmatpush3.bf16.msra.mxu1 %v7973_v58  ;;  %v7986_v58 = vld [vmem:[#allocation8 + $0x1a0] sm:$0xff]  }
 0x474   : > { %7109 = vmatprep.subr.bf16.mxu1 %v7974_v25  ;;  %v7988_v25 = vld [vmem:[#allocation8 + $0x1e8] sm:$0xff]  }
 0x475   : > { %7406 = vmatmul.mubr.bf16.vlgmr.msra.gmra.mrb[112].mxu0 %v10357_v29 }
 0x476   : > { %4927 = vmatmul.mubr.bf16.gmra.mrb[48].mxu1 %v10299_v18  ;;  %7409 = vmatprep.mubr.bf16.mxu0 %v10382_v8  ;;  %v7981_v18 = vld [vmem:[#allocation11 + $0x18] sm:$0xff]  }
 0x477   : > { %6601 = vmatprep.mubr.msk.bf16.mxu1 %vm10311_vm9, %v10343_v63  ;;  %7110 = vmatpush3.bf16.msra.mxu1 %v7975_v1  ;;  %v7990_v1 = vld [vmem:[#allocation8 + $0x1f0] sm:$0xff]  }
 0x478   : > { %7438 = vmatpush3.bf16.msra.mxu0 %v10477_v47  ;;  %7111 = vmatprep.subr.bf16.mxu1 %v7979_v12  ;;  %v7989_v47 = vld [vmem:[#allocation8 + $0x1a8] sm:$0xff]  }
 0x479   : > { %7439 = vmatprep.subr.bf16.mxu0 %v7977_v53  ;;  %v7982_v12 = vld [vmem:[#allocation11 + $0x20] sm:$0xff]  }
 0x47b   : > { %7112 = vmatpush3.bf16.msra.mxu1 %v7980_v35  ;;  %v7992_v35 = vld [vmem:[#allocation8 + $0x1f8] sm:$0xff]  }
 0x47c   : > { %7440 = vmatpush3.bf16.msra.mxu0 %v7977_v53  ;;  %7113 = vmatprep.subr.bf16.mxu1 %v7985_v37  ;;  %v7991_v53 = vld [vmem:[#allocation8 + $0x1b0] sm:$0xff]   ;;  %v7993_v37 = vld [vmem:[#allocation8 + $0x1b8] sm:$0xff]  }
 0x47d   : > { %7410 = vmatmul.mubr.bf16.gmra.mrb[116].mxu0 %v10405_v55  ;;  %7441 = vmatprep.subr.bf16.mxu0 %v7978_v19 }
 0x47e   : > { %4935 = vmatmul.mubr.bf16.gmra.mrb[52].mxu1 %v10334_v26  ;;  %7413 = vmatprep.mubr.bf16.mxu0 %v10430_v52  ;;  %v7983_v26 = vld [vmem:[#allocation11 + $0x28] sm:$0xff]  }
 0x47f   : > { %6604 = vmatprep.mubr.msk.bf16.mxu1 %vm10311_vm9, %v10365_v6  ;;  %7114 = vmatpush3.bf16.msra.mxu1 %v7986_v58  ;;  %v7987_v58 = vld [vmem:[#allocation11 + $0x38] sm:$0xff]  }
 0x480   : > { %7442 = vmatpush3.bf16.msra.mxu0 %v7978_v19  ;;  %7115 = vmatprep.subr.bf16.mxu1 %v7988_v25  ;;  %v7984_v19 = vld [vmem:[#allocation11 + $0x30] sm:$0xff]  }
 0x481   : > { %7443 = vmatprep.subr.bf16.mxu0 %v7981_v18 }
 0x483   : > { %7116 = vmatpush3.bf16.msra.mxu1 %v7989_v47 }
 0x484   : > { %7444 = vmatpush3.bf16.msra.mxu0 %v7981_v18  ;;  %7117 = vmatprep.subr.bf16.mxu1 %v7990_v1 }
 0x485   : > { %7414 = vmatmul.mubr.bf16.gmra.mrb[120].mxu0 %v10453_v17  ;;  %7445 = vmatprep.subr.bf16.mxu0 %v7982_v12 }
 0x486   : > { %4943 = vmatmul.mubr.bf16.gmra.mrb[56].mxu1 %v10357_v29  ;;  %7417 = vmatprep.mubr.bf16.mxu0 %v10482_v56 }
 0x487   : > { %6607 = vmatprep.mubr.msk.bf16.mxu1 %vm10311_vm9, %v10391_v40  ;;  %7118 = vmatpush3.bf16.msra.mxu1 %v7991_v53 }
 0x488   : > { %7446 = vmatpush3.bf16.msra.mxu0 %v7982_v12  ;;  %7119 = vmatprep.subr.bf16.mxu1 %v7992_v35 }
 0x489   : > { %7447 = vmatprep.subr.bf16.mxu0 %v7983_v26 }
 0x48b   : > { %7120 = vmatpush3.bf16.msra.mxu1 %v7993_v37 }
 0x48c   : > { %7448 = vmatpush3.bf16.msra.mxu0 %v7983_v26 }
 0x48d   : > { %7418 = vmatmul.mubr.bf16.gmra.mrb[124].mxu0 %v10508_v9  ;;  %7449 = vmatprep.subr.bf16.mxu0 %v7984_v19 }
 0x48e   : > { %4951 = vmatmul.mubr.bf16.gmra.mrb[60].mxu1 %v10382_v8  ;;  %7421 = vmatprep.mubr.bf16.mxu0 %v10534_v23 }
 0x48f   : > { %6610 = vmatprep.mubr.msk.bf16.mxu1 %vm10311_vm9, %v10413_v59 }
 0x490   : > { %7450 = vmatpush3.bf16.msra.mxu0 %v7984_v19  ;;  %v8023_v19 = vld [vmem:[%s8658_s16 + $0x104] sm:$0xf] }
 0x491   : > { %7451 = vmatprep.subr.bf16.mxu0 %v7987_v58 }
 0x494   : > { %7452 = vmatpush3.bf16.msra.mxu0 %v7987_v58  ;;  %v5672_v58 = vrot.slane %v8023_v19, 5 }
 0x495   : > { %7422 = vmatmul.mubr.bf16.gmra.mrb[128].mxu0 %v10576_v32 }
 0x496   : > { %4959 = vmatmul.mubr.bf16.gmra.mrb[64].mxu1 %v10405_v55  ;;  %7425 = vmatprep.mubr.bf16.mxu0 %v10625_v57 }
 0x497   : > { %6613 = vmatprep.mubr.msk.bf16.mxu1 %vm10311_vm9, %v10439_v54 }
 0x499   : > { %v7009_v29 = vpop.f32.mrb[48].mxu0 }
 0x49a   : > { %v6791_v8 = vpop.f32.mrb[240].mxu1  ;;  %v7010_v25 = vpop.f32.mrb[49].mxu0 }
 0x49b   : > { %v10778_v18 = vadd.f32 %v7010_v25, %v7009_v29  ;;  %v6792_v47 = vpop.f32.mrb[241].mxu1  ;;  %v7012_v1 = vpop.f32.mrb[50].mxu0  ;;  %v8024_v29 = vld [vmem:[%s8658_s16 + $0x100] sm:$0xf] }
 0x49c   : > { %v10780_v12 = vadd.f32 %v6792_v47, %v6791_v8  ;;  %v6794_v53 = vpop.f32.mrb[242].mxu1  ;;  %v7013_v35 = vpop.f32.mrb[51].mxu0  ;;  %v6701_v8 = vrot.slane %v8024_v29, 9 }
 0x49d   : > { %v10782_v55 = vadd.f32 %v7013_v35, %v7012_v1  ;;  %v6795_v26 = vpop.f32.mrb[243].mxu1  ;;  %7426 = vmatmul.mubr.bf16.gmra.mrb[132].mxu0 %v10669_v7 }
 0x49e   : > { %v10785_v37 = vadd.f32 %v6795_v26, %v6794_v53  ;;  %4967 = vmatmul.mubr.bf16.gmra.mrb[68].mxu1 %v10430_v52  ;;  %7429 = vmatprep.mubr.bf16.mxu0 %v10693_v51  ;;  %v5674_v52 = vrot.slane %v5672_v58, 4  ;;  %v8025_v53 = vld [vmem:[%s8658_s16 + $0x108] sm:$0xf] }
 0x49f   : > { %6616 = vmatprep.mubr.msk.bf16.mxu1 %vm10311_vm9, %v10461_v41  ;;  %v5675_v35 = vrot.slane %v8025_v53, 5 }
 0x4a5   : > { %v7015_v25 = vpop.f32.mrb[52].mxu0  ;;  %7430 = vmatmul.mubr.bf16.gmra.mrb[136].mxu0 %v10281_v39 }
 0x4a6   : > { %v6797_v47 = vpop.f32.mrb[244].mxu1  ;;  %4975 = vmatmul.mubr.bf16.gmra.mrb[72].mxu1 %v10453_v17  ;;  %v7016_v1 = vpop.f32.mrb[53].mxu0  ;;  %7433 = vmatprep.mubr.bf16.mxu0 %v10323_v60  ;;  %v10807_v17 = vsel %vm8727_vm3, %v6701_v8, %v5672_v58  ;;  %v10811_v60 = vsel %vm8727_vm3, %v5674_v52, %v5675_v35 }
 0x4a7   : > { %v10798_v26 = vadd.f32 %v7016_v1, %v7015_v25  ;;  %v6798_v42 = vpop.f32.mrb[245].mxu1  ;;  %6619 = vmatprep.mubr.msk.bf16.mxu1 %vm10311_vm9, %v10494_v10  ;;  %v7018_v19 = vpop.f32.mrb[54].mxu0  ;;  %v6717_v53 = vcombine.low %v10807_v17, %v10811_v60 }
 0x4a8   : > { %v10803_v29 = vadd.f32 %v6798_v42, %v6797_v47  ;;  %v6800_v28 = vpop.f32.mrb[246].mxu1  ;;  %v7019_v36 = vpop.f32.mrb[55].mxu0  ;;  %v11917_v42 = vcombine.low %v10559_v44, %v10563_v48  ;;  %v11918_v48 = vld [vmem:[#allocation21_spill] sm:$0xff] }
 0x4a9   : > { %v10813_v25 = vadd.f32 %v7019_v36, %v7018_v19  ;;  %v6801_v1 = vpop.f32.mrb[247].mxu1 }
 0x4aa   : > { %v10817_v45 = vadd.f32 %v6801_v1, %v6800_v28  ;;  %v11919_v1 = vld [vmem:[#allocation22_spill] sm:$0xff] }
 0x4ad   : > { %7434 = vmatmul.mubr.bf16.gmra.mrb[140].mxu0 %v10739_v27 }
 0x4ae   : > { %4983 = vmatmul.mubr.bf16.gmra.mrb[76].mxu1 %v10482_v56  ;;  %7453 = vmatprep.mubr.bf16.mxu0 %v11917_v42  ;;  %v11920_v42 = vcombine.low %v11918_v48, %v11919_v1 }
 0x4af   : > { %6622 = vmatprep.mubr.msk.bf16.mxu1 %vm10311_vm9, %v10516_v15 }
 0x4b0   : > { %v7021_v61 = vpop.f32.mrb[56].mxu0  ;;  %v6803_v36 = vpop.f32.mrb[248].mxu1 }
 0x4b1   : > { %v7022_v58 = vpop.f32.mrb[57].mxu0  ;;  %v6804_v47 = vpop.f32.mrb[249].mxu1 }
 0x4b2   : > { %v10827_v8 = vadd.f32 %v7022_v58, %v7021_v61  ;;  %v7024_v28 = vpop.f32.mrb[58].mxu0  ;;  %v10829_v52 = vadd.f32 %v6804_v47, %v6803_v36  ;;  %v6806_v27 = vpop.f32.mrb[250].mxu1  ;;  %v11921_v61 = vcombine.low %v10571_v62, %v10583_v22  ;;  %v11922_v58 = vld [vmem:[#allocation24_spill] sm:$0xff]  ;;  %v11923_v47 = vld [vmem:[#allocation27_spill] sm:$0xff]  ;;  %v11926_v22 = vld [vmem:[#allocation90_spill] sm:$0xff] }
 0x4b3   : > { %v7025_v35 = vpop.f32.mrb[59].mxu0  ;;  %v6807_v19 = vpop.f32.mrb[251].mxu1 }
 0x4b4   : > { %v10831_v56 = vadd.f32 %v7025_v35, %v7024_v28  ;;  %v10833_v44 = vadd.f32 %v6807_v19, %v6806_v27  ;;  %v11924_v28 = vcombine.low %v11922_v58, %v11923_v47 }
 0x4b5   : > { %7454 = vmatmul.mubr.bf16.vlgmr.msra.gmra.mrb[112].mxu0 %v11920_v42 }
 0x4b6   : > { %4991 = vmatmul.mubr.bf16.gmra.mrb[80].mxu1 %v10508_v9  ;;  %7457 = vmatprep.mubr.bf16.mxu0 %v11921_v61  ;;  %v11925_v9 = vcombine.low %v10609_v2, %v10617_v21  ;;  %v11928_v2 = vld [vmem:[#allocation29_spill] sm:$0xff] }
 0x4b7   : > { %6625 = vmatprep.mubr.msk.bf16.mxu1 %vm10311_vm9, %v10544_v5 }
 0x4bd   : > { %v7027_v36 = vpop.f32.mrb[60].mxu0  ;;  %7458 = vmatmul.mubr.bf16.gmra.mrb[116].mxu0 %v11924_v28  ;;  %v11927_v28 = vld [vmem:[#allocation28_spill] sm:$0xff] }
 0x4be   : > { %v6809_v27 = vpop.f32.mrb[252].mxu1  ;;  %4999 = vmatmul.mubr.bf16.gmra.mrb[84].mxu1 %v10534_v23  ;;  %v7028_v35 = vpop.f32.mrb[61].mxu0  ;;  %7461 = vmatprep.mubr.bf16.mxu0 %v11925_v9  ;;  %v11929_v21 = vcombine.low %v11927_v28, %v11928_v2 }
 0x4bf   : > { %v10852_v19 = vadd.f32 %v7028_v35, %v7027_v36  ;;  %v6810_v62 = vpop.f32.mrb[253].mxu1  ;;  %6628 = vmatprep.mubr.msk.bf16.mxu1 %vm10311_vm9, %v11926_v22  ;;  %v7030_v48 = vpop.f32.mrb[62].mxu0  ;;  %v11930_v36 = vcombine.low %v10652_v20, %v10656_v16  ;;  %v11931_v16 = vld [vmem:[#allocation35_spill] sm:$0xff] }
 0x4c0   : > { %v10857_v1 = vadd.f32 %v6810_v62, %v6809_v27  ;;  %v6812_v42 = vpop.f32.mrb[254].mxu1  ;;  %v7031_v61 = vpop.f32.mrb[63].mxu0 }
 0x4c1   : > { %v10859_v58 = vadd.f32 %v7031_v61, %v7030_v48  ;;  %v6813_v23 = vpop.f32.mrb[255].mxu1 }
 0x4c2   : > { %v10861_v47 = vadd.f32 %v6813_v23, %v6812_v42 }
 0x4c5   : > { %7462 = vmatmul.mubr.bf16.gmra.mrb[120].mxu0 %v11929_v21  ;;  %v11932_v21 = vld [vmem:[#allocation39_spill] sm:$0xff] }
 0x4c6   : > { %5007 = vmatmul.mubr.bf16.gmra.mrb[88].mxu1 %v10576_v32  ;;  %7465 = vmatprep.mubr.bf16.mxu0 %v11930_v36  ;;  %v11933_v36 = vcombine.low %v11931_v16, %v11932_v21 }
 0x4c7   : > { %6631 = vmatprep.mubr.msk.bf16.mxu1 %vm10311_vm9, %v10635_v43 }
 0x4c8   : > { %v7033_v27 = vpop.f32.mrb[64].mxu0  ;;  %v6815_v35 = vpop.f32.mrb[0].mxu1 }
 0x4c9   : > { %v7034_v9 = vpop.f32.mrb[65].mxu0  ;;  %v6816_v48 = vpop.f32.mrb[1].mxu1 }
 0x4ca   : > { %v10873_v62 = vadd.f32 %v7034_v9, %v7033_v27  ;;  %v7036_v42 = vpop.f32.mrb[66].mxu0  ;;  %v10875_v61 = vadd.f32 %v6816_v48, %v6815_v35  ;;  %v6818_v23 = vpop.f32.mrb[2].mxu1  ;;  %v11934_v27 = vcombine.low %v10664_v34, %v10676_v30  ;;  %v11935_v9 = vld [vmem:[#allocation44_spill] sm:$0xff]  ;;  %v11936_v48 = vld [vmem:[#allocation45_spill] sm:$0xff] }
 0x4cb   : > { %v7037_v28 = vpop.f32.mrb[67].mxu0  ;;  %v6819_v2 = vpop.f32.mrb[3].mxu1 }
 0x4cc   : > { %v10877_v32 = vadd.f32 %v7037_v28, %v7036_v42  ;;  %v10879_v20 = vadd.f32 %v6819_v2, %v6818_v23  ;;  %v11937_v42 = vcombine.low %v11935_v9, %v11936_v48  ;;  %v11939_v48 = vld [vmem:[#allocation53_spill] sm:$0xff] }
 0x4cd   : > { %7466 = vmatmul.mubr.bf16.gmra.mrb[124].mxu0 %v11933_v36 }
 0x4ce   : > { %5015 = vmatmul.mubr.bf16.gmra.mrb[92].mxu1 %v10625_v57  ;;  %7469 = vmatprep.mubr.bf16.mxu0 %v11934_v27  ;;  %v11938_v57 = vcombine.low %v10698_v50, %v10706_v4  ;;  %v11940_v50 = vld [vmem:[#allocation57_spill] sm:$0xff] }
 0x4cf   : > { %6634 = vmatprep.mubr.msk.bf16.mxu1 %vm10311_vm9, %v10683_v11  ;;  %v11941_v4 = vcombine.low %v11939_v48, %v11940_v50 }
 0x4d5   : > { %v7039_v35 = vpop.f32.mrb[68].mxu0  ;;  %7470 = vmatmul.mubr.bf16.gmra.mrb[128].mxu0 %v11937_v42  ;;  %v11943_v42 = vld [vmem:[#allocation67_spill] sm:$0xff] }
 0x4d6   : > { %v6821_v23 = vpop.f32.mrb[4].mxu1  ;;  %5023 = vmatmul.mubr.bf16.gmra.mrb[96].mxu1 %v10669_v7  ;;  %v7040_v28 = vpop.f32.mrb[69].mxu0  ;;  %7473 = vmatprep.mubr.bf16.mxu0 %v11938_v57 }
 0x4d7   : > { %v10898_v2 = vadd.f32 %v7040_v28, %v7039_v35  ;;  %v6822_v34 = vpop.f32.mrb[5].mxu1  ;;  %6637 = vmatprep.mubr.msk.bf16.mxu1 %vm10311_vm9, %v11915_v13  ;;  %v7042_v30 = vpop.f32.mrb[70].mxu0  ;;  %v11942_v35 = vcombine.low %v10722_v46, %v10726_v3  ;;  %v11944_v3 = vld [vmem:[#allocation62_spill] sm:$0xff] }
 0x4d8   : > { %v10903_v16 = vadd.f32 %v6822_v34, %v6821_v23  ;;  %v6824_v21 = vpop.f32.mrb[6].mxu1  ;;  %v7043_v36 = vpop.f32.mrb[71].mxu0 }
 0x4d9   : > { %v10905_v27 = vadd.f32 %v7043_v36, %v7042_v30  ;;  %v6825_v7 = vpop.f32.mrb[7].mxu1 }
 0x4da   : > { %v10907_v9 = vadd.f32 %v6825_v7, %v6824_v21 }
 0x4dd   : > { %7474 = vmatmul.mubr.bf16.gmra.mrb[132].mxu0 %v11941_v4  ;;  %v11945_v4 = vld [vmem:[#allocation64_spill] sm:$0xff] }
 0x4de   : > { %5031 = vmatmul.mubr.bf16.gmra.mrb[100].mxu1 %v10693_v51  ;;  %7477 = vmatprep.mubr.bf16.mxu0 %v11942_v35  ;;  %v11946_v35 = vcombine.low %v11944_v3, %v11945_v4  ;;  %v11951_v4 = vld [vmem:[#allocation70_spill] sm:$0xff] }
 0x4df   : > { %6640 = vmatprep.mubr.msk.bf16.mxu1 %vm10311_vm9, %v11943_v42 }
 0x4e0   : > { %v7045_v23 = vpop.f32.mrb[72].mxu0  ;;  %v6827_v28 = vpop.f32.mrb[8].mxu1 }
 0x4e1   : > { %v7046_v57 = vpop.f32.mrb[73].mxu0  ;;  %v6828_v30 = vpop.f32.mrb[9].mxu1 }
 0x4e2   : > { %v10919_v34 = vadd.f32 %v7046_v57, %v7045_v23  ;;  %v7048_v21 = vpop.f32.mrb[74].mxu0  ;;  %v10921_v36 = vadd.f32 %v6828_v30, %v6827_v28  ;;  %v6830_v7 = vpop.f32.mrb[10].mxu1  ;;  %v11947_v23 = vld [vmem:[#allocation68_spill] sm:$0xff]  ;;  %v11948_v57 = vld [vmem:[#allocation71_spill] sm:$0xff] }
 0x4e3   : > { %v7049_v48 = vpop.f32.mrb[75].mxu0  ;;  %v6831_v50 = vpop.f32.mrb[11].mxu1  ;;  %v11949_v30 = vld [vmem:[#allocation72_spill] sm:$0xff] }
 0x4e4   : > { %v10923_v51 = vadd.f32 %v7049_v48, %v7048_v21  ;;  %v10925_v46 = vadd.f32 %v6831_v50, %v6830_v7  ;;  %v11950_v21 = vcombine.low %v11948_v57, %v11949_v30 }
 0x4e5   : > { %7478 = vmatmul.mubr.bf16.gmra.mrb[136].mxu0 %v11946_v35 }
 0x4e6   : > { %5039 = vmatmul.mubr.bf16.gmra.mrb[104].mxu1 %v10281_v39  ;;  %7481 = vmatprep.mubr.bf16.mxu0 %v6717_v53 }
 0x4e7   : > { %5240 = vmatprep.mubr.bf16.mxu1 %v11947_v23 }
 0x4ed   : > { %v7051_v28 = vpop.f32.mrb[76].mxu0  ;;  %7482 = vmatmul.mubr.bf16.gmra.mrb[140].mxu0 %v11950_v21 }
 0x4ee   : > { %v6833_v48 = vpop.f32.mrb[12].mxu1  ;;  %v7052_v7 = vpop.f32.mrb[77].mxu0  ;;  %6643 = vmatmul.mubr.msk.bf16.vlgmr.msra.gmra.mrb[108].mxu1 %vm10311_vm9, %v10306_v0 }
 0x4ef   : > { %v10941_v50 = vadd.f32 %v7052_v7, %v7051_v28  ;;  %v6834_v39 = vpop.f32.mrb[13].mxu1  ;;  %v7054_v3 = vpop.f32.mrb[78].mxu0  ;;  %5248 = vmatprep.mubr.bf16.mxu1 %v11951_v4  ;;  %v11953_v28 = vld [vmem:[#allocation81_spill] sm:$0xff] }
 0x4f0   : > { %v10944_v17 = vadd.f32 %v6834_v39, %v6833_v48  ;;  %v6836_v60 = vpop.f32.mrb[14].mxu1  ;;  %v7055_v53 = vpop.f32.mrb[79].mxu0 }
 0x4f1   : > { %v10946_v35 = vadd.f32 %v7055_v53, %v7054_v3  ;;  %v6837_v23 = vpop.f32.mrb[15].mxu1 }
 0x4f2   : > { %11952 = vst [vmem:[#allocation83_spill] sm:$0xff] %v10944_v17  ;;  %v10948_v57 = vadd.f32 %v6837_v23, %v6836_v60 }
 0x4f6   : > { %6646 = vmatmul.mubr.msk.bf16.gmra.mrb[112].mxu1 %vm10311_vm9, %v10343_v63  ;;  %v11957_v63 = vld [vmem:[#allocation76_spill] sm:$0xff] }
 0x4f7   : > { %5256 = vmatprep.mubr.bf16.mxu1 %v11953_v28 }
 0x4f8   : > { %v7057_v0 = vpop.f32.mrb[80].mxu0  ;;  %v6839_v30 = vpop.f32.mrb[16].mxu1 }
 0x4f9   : > { %v7058_v21 = vpop.f32.mrb[81].mxu0  ;;  %v6840_v48 = vpop.f32.mrb[17].mxu1 }
 0x4fa   : > { %v10954_v7 = vadd.f32 %v7058_v21, %v7057_v0  ;;  %v7060_v39 = vpop.f32.mrb[82].mxu0  ;;  %v10956_v4 = vadd.f32 %v6840_v48, %v6839_v30  ;;  %v6842_v3 = vpop.f32.mrb[18].mxu1 }
 0x4fb   : > { %v7061_v53 = vpop.f32.mrb[83].mxu0  ;;  %v6843_v60 = vpop.f32.mrb[19].mxu1 }
 0x4fc   : > { %11954 = vst [vmem:[#allocation91_spill] sm:$0xff] %v10956_v4  ;;  %v10958_v17 = vadd.f32 %v7061_v53, %v7060_v39  ;;  %v10960_v23 = vadd.f32 %v6843_v60, %v6842_v3  ;;  %v11959_v53 = vld [vmem:[#allocation79_spill] sm:$0xff] }
 0x4fe   : > { %11955 = vst [vmem:[#allocation99_spill] sm:$0xff] %v10958_v17  ;;  %11956 = vst [vmem:[#allocation101_spill] sm:$0xff] %v10960_v23  ;;  %6649 = vmatmul.mubr.msk.bf16.gmra.mrb[116].mxu1 %vm10311_vm9, %v10365_v6 }
 0x4ff   : > { %5264 = vmatprep.mubr.bf16.mxu1 %v11957_v63 }
 0x505   : > { %v7063_v28 = vpop.f32.mrb[84].mxu0 }
 0x506   : > { %v6845_v0 = vpop.f32.mrb[20].mxu1  ;;  %v7064_v21 = vpop.f32.mrb[85].mxu0  ;;  %6652 = vmatmul.mubr.msk.bf16.gmra.mrb[120].mxu1 %vm10311_vm9, %v10391_v40 }
 0x507   : > { %v10969_v30 = vadd.f32 %v7064_v21, %v7063_v28  ;;  %v6846_v48 = vpop.f32.mrb[21].mxu1  ;;  %v7066_v39 = vpop.f32.mrb[86].mxu0  ;;  %5272 = vmatprep.mubr.bf16.mxu1 %v11959_v53  ;;  %v11961_v28 = vld [vmem:[#allocation86_spill] sm:$0xff] }
 0x508   : > { %v10972_v3 = vadd.f32 %v6846_v48, %v6845_v0  ;;  %v6848_v60 = vpop.f32.mrb[22].mxu1  ;;  %v7067_v23 = vpop.f32.mrb[87].mxu0 }
 0x509   : > { %11958 = vst [vmem:[#allocation98_spill] sm:$0xff] %v10969_v30  ;;  %v10974_v6 = vadd.f32 %v7067_v23, %v7066_v39  ;;  %v6849_v63 = vpop.f32.mrb[23].mxu1 }
 0x50a   : > { %11960 = vst [vmem:[#allocation96_spill] sm:$0xff] %v10972_v3  ;;  %v10976_v4 = vadd.f32 %v6849_v63, %v6848_v60 }
 0x50e   : > { %6655 = vmatmul.mubr.msk.bf16.gmra.mrb[124].mxu1 %vm10311_vm9, %v10413_v59  ;;  %v11965_v59 = vld [vmem:[#allocation93_spill] sm:$0xff] }
 0x50f   : > { %5280 = vmatprep.mubr.bf16.mxu1 %v11961_v28 }
 0x510   : > { %v7069_v40 = vpop.f32.mrb[88].mxu0  ;;  %v6851_v21 = vpop.f32.mrb[24].mxu1 }
 0x511   : > { %v7070_v30 = vpop.f32.mrb[89].mxu0  ;;  %v6852_v0 = vpop.f32.mrb[25].mxu1 }
 0x512   : > { %v10982_v17 = vadd.f32 %v7070_v30, %v7069_v40  ;;  %v7072_v48 = vpop.f32.mrb[90].mxu0  ;;  %v10984_v53 = vadd.f32 %v6852_v0, %v6851_v21  ;;  %v6854_v23 = vpop.f32.mrb[26].mxu1 }
 0x513   : > { %v7073_v39 = vpop.f32.mrb[91].mxu0  ;;  %v6855_v60 = vpop.f32.mrb[27].mxu1 }
 0x514   : > { %11962 = vst [vmem:[#allocation92_spill] sm:$0xff] %v10984_v53  ;;  %v10986_v3 = vadd.f32 %v7073_v39, %v7072_v48  ;;  %v10988_v63 = vadd.f32 %v6855_v60, %v6854_v23  ;;  %v11967_v39 = vld [vmem:[#allocation82_spill] sm:$0xff] }
 0x516   : > { %11963 = vst [vmem:[#allocation97_spill] sm:$0xff] %v10986_v3  ;;  %11964 = vst [vmem:[#allocation103_spill] sm:$0xff] %v10988_v63  ;;  %6658 = vmatmul.mubr.msk.bf16.gmra.mrb[128].mxu1 %vm10311_vm9, %v10439_v54 }
 0x517   : > { %5288 = vmatprep.mubr.bf16.mxu1 %v11965_v59 }
 0x51d   : > { %v7075_v28 = vpop.f32.mrb[92].mxu0 }
 0x51e   : > { %v6857_v30 = vpop.f32.mrb[28].mxu1  ;;  %v7076_v40 = vpop.f32.mrb[93].mxu0  ;;  %6661 = vmatmul.mubr.msk.bf16.gmra.mrb[132].mxu1 %vm10311_vm9, %v10461_v41 }
 0x51f   : > { %v10997_v21 = vadd.f32 %v7076_v40, %v7075_v28  ;;  %v6858_v0 = vpop.f32.mrb[29].mxu1  ;;  %v7078_v48 = vpop.f32.mrb[94].mxu0  ;;  %5296 = vmatprep.mubr.bf16.mxu1 %v11967_v39  ;;  %v11969_v28 = vld [vmem:[#allocation80_spill] sm:$0xff] }
 0x520   : > { %v11000_v23 = vadd.f32 %v6858_v0, %v6857_v30  ;;  %v6860_v60 = vpop.f32.mrb[30].mxu1  ;;  %v7079_v63 = vpop.f32.mrb[95].mxu0 }
 0x521   : > { %11966 = vst [vmem:[#allocation107_spill] sm:$0xff] %v10997_v21  ;;  %v11002_v54 = vadd.f32 %v7079_v63, %v7078_v48  ;;  %v6861_v59 = vpop.f32.mrb[31].mxu1 }
 0x522   : > { %11968 = vst [vmem:[#allocation95_spill] sm:$0xff] %v11000_v23  ;;  %v11004_v53 = vadd.f32 %v6861_v59, %v6860_v60 }
 0x526   : > { %6664 = vmatmul.mubr.msk.bf16.gmra.mrb[136].mxu1 %vm10311_vm9, %v10494_v10  ;;  %v11973_v10 = vld [vmem:[#allocation84_spill] sm:$0xff] }
 0x527   : > { %v7081_v41 = vpop.f32.mrb[96].mxu0  ;;  %5304 = vmatprep.mubr.bf16.mxu1 %v11969_v28 }
 0x528   : > { %v6863_v40 = vpop.f32.mrb[32].mxu1  ;;  %v7082_v21 = vpop.f32.mrb[97].mxu0 }
 0x529   : > { %v11010_v3 = vadd.f32 %v7082_v21, %v7081_v41  ;;  %v6864_v30 = vpop.f32.mrb[33].mxu1  ;;  %v7084_v0 = vpop.f32.mrb[98].mxu0 }
 0x52a   : > { %v11012_v39 = vadd.f32 %v6864_v30, %v6863_v40  ;;  %v6866_v63 = vpop.f32.mrb[34].mxu1  ;;  %v7085_v48 = vpop.f32.mrb[99].mxu0 }
 0x52b   : > { %11970 = vst [vmem:[#allocation104_spill] sm:$0xff] %v11010_v3  ;;  %v11014_v23 = vadd.f32 %v7085_v48, %v7084_v0  ;;  %v6867_v60 = vpop.f32.mrb[35].mxu1 }
 0x52c   : > { %11971 = vst [vmem:[#allocation110_spill] sm:$0xff] %v11012_v39  ;;  %v11016_v59 = vadd.f32 %v6867_v60, %v6866_v63 }
 0x52d   : > { %11972 = vst [vmem:[#allocation112_spill] sm:$0xff] %v11014_v23 }
 0x52e   : > { %6667 = vmatmul.mubr.msk.bf16.gmra.mrb[140].mxu1 %vm10311_vm9, %v10516_v15  ;;  %v11977_v15 = vld [vmem:[#allocation94_spill] sm:$0xff] }
 0x52f   : > { %5312 = vmatprep.mubr.bf16.mxu1 %v11973_v10 }
 0x530   : > { %v7087_v28 = vpop.f32.mrb[100].mxu0 }
 0x531   : > { %v6869_v21 = vpop.f32.mrb[36].mxu1  ;;  %v7088_v41 = vpop.f32.mrb[101].mxu0 }
 0x532   : > { %v11022_v3 = vadd.f32 %v7088_v41, %v7087_v28  ;;  %v6870_v40 = vpop.f32.mrb[37].mxu1  ;;  %v7090_v30 = vpop.f32.mrb[102].mxu0 }
 0x533   : > { %v11024_v39 = vadd.f32 %v6870_v40, %v6869_v21  ;;  %v6872_v0 = vpop.f32.mrb[38].mxu1  ;;  %v7091_v48 = vpop.f32.mrb[103].mxu0 }
 0x534   : > { %11974 = vst [vmem:[#allocation109_spill] sm:$0xff] %v11022_v3  ;;  %v11026_v23 = vadd.f32 %v7091_v48, %v7090_v30  ;;  %v6873_v63 = vpop.f32.mrb[39].mxu1 }
 0x535   : > { %11975 = vst [vmem:[#allocation105_spill] sm:$0xff] %v11024_v39  ;;  %v11028_v60 = vadd.f32 %v6873_v63, %v6872_v0 }
 0x536   : > { %11976 = vst [vmem:[#allocation73_spill] sm:$0xff] %v11026_v23  ;;  %6670 = vmatmul.mubr.msk.bf16.gmra.mrb[144].mxu1 %vm10311_vm9, %v10544_v5 }
 0x537   : > { %5320 = vmatprep.mubr.bf16.mxu1 %v11977_v15 }
 0x538   : > { %v7093_v10 = vpop.f32.mrb[104].mxu0 }
 0x539   : > { %v6875_v28 = vpop.f32.mrb[40].mxu1  ;;  %v7094_v41 = vpop.f32.mrb[105].mxu0 }
 0x53a   : > { %v11034_v3 = vadd.f32 %v7094_v41, %v7093_v10  ;;  %v6876_v21 = vpop.f32.mrb[41].mxu1  ;;  %v7096_v40 = vpop.f32.mrb[106].mxu0 }
 0x53b   : > { %v11036_v39 = vadd.f32 %v6876_v21, %v6875_v28  ;;  %v6878_v30 = vpop.f32.mrb[42].mxu1  ;;  %v7097_v48 = vpop.f32.mrb[107].mxu0 }
 0x53c   : > { %11978 = vst [vmem:[#allocation108_spill] sm:$0xff] %v11034_v3  ;;  %v11038_v23 = vadd.f32 %v7097_v48, %v7096_v40  ;;  %v6879_v0 = vpop.f32.mrb[43].mxu1 }
 0x53d   : > { %11979 = vst [vmem:[#allocation114_spill] sm:$0xff] %v11036_v39  ;;  %v11040_v63 = vadd.f32 %v6879_v0, %v6878_v30  ;;  %v11982_v0 = vld [vmem:[#allocation88_spill] sm:$0xff] }
 0x53e   : > { %11980 = vst [vmem:[#allocation115_spill] sm:$0xff] %v11038_v23  ;;  %6673 = vmatmul.mubr.msk.bf16.gmra.mrb[148].mxu1 %vm10311_vm9, %v11926_v22 }
 0x53f   : > { %11981 = vst [vmem:[#allocation38_spill] sm:$0xff] %v11040_v63  ;;  %5328 = vmatprep.mubr.bf16.mxu1 %v10679_v33  ;;  %v11983_v33 = vld [vmem:[#allocation85_spill] sm:$0xff] }
 0x540   : > { %v7099_v5 = vpop.f32.mrb[108].mxu0 }
 0x541   : > { %v6897_v15 = vpop.f32.mrb[44].mxu1  ;;  %v7100_v10 = vpop.f32.mrb[109].mxu0 }
 0x542   : > { %v11046_v41 = vadd.f32 %v7100_v10, %v7099_v5  ;;  %v6898_v28 = vpop.f32.mrb[45].mxu1  ;;  %v7102_v21 = vpop.f32.mrb[110].mxu0 }
 0x543   : > { %v6899_v39 = vadd.f32 %v6898_v28, %v6897_v15  ;;  %v6900_v3 = vpop.f32.mrb[46].mxu1  ;;  %v7103_v40 = vpop.f32.mrb[111].mxu0 }
 0x544   : > { %v11048_v48 = vadd.f32 %v7103_v40, %v7102_v21  ;;  %v6901_v30 = vpop.f32.mrb[47].mxu1 }
 0x545   : > { %v4921_v63 = vadd.f32 %v6899_v39, %v11982_v0  ;;  %v6902_v23 = vadd.f32 %v6901_v30, %v6900_v3 }
 0x546   : > { %6676 = vmatmul.mubr.msk.bf16.gmra.mrb[152].mxu1 %vm10311_vm9, %v10635_v43 }
 0x547   : > { %v4924_v22 = vadd.f32 %v6902_v23, %v11983_v33  ;;  %5336 = vmatprep.mubr.bf16.mxu1 %v10702_v31  ;;  %v11057_v5 = vadd.f32 %v10778_v18, %v4921_v63 }
 0x549   : > { %v6903_v15 = vpop.f32.mrb[48].mxu1  ;;  %v11060_v10 = vadd.f32 %v10782_v55, %v4924_v22 }
 0x54a   : > { %v6904_v28 = vpop.f32.mrb[49].mxu1 }
 0x54b   : > { %v6905_v21 = vadd.f32 %v6904_v28, %v6903_v15  ;;  %v6906_v40 = vpop.f32.mrb[50].mxu1 }
 0x54c   : > { %v6907_v39 = vpop.f32.mrb[51].mxu1 }
 0x54d   : > { %v4929_v3 = vadd.f32 %v6905_v21, %v10780_v12  ;;  %v6908_v30 = vadd.f32 %v6907_v39, %v6906_v40 }
 0x54e   : > { %6679 = vmatmul.mubr.msk.bf16.gmra.mrb[156].mxu1 %vm10311_vm9, %v10683_v11 }
 0x54f   : > { %v4932_v43 = vadd.f32 %v6908_v30, %v10785_v37  ;;  %5344 = vmatprep.mubr.bf16.mxu1 %v10294_v24  ;;  %v11069_v31 = vadd.f32 %v10798_v26, %v4929_v3 }
 0x551   : > { %v6909_v18 = vpop.f32.mrb[52].mxu1  ;;  %v11072_v55 = vadd.f32 %v10813_v25, %v4932_v43 }
 0x552   : > { %v6910_v23 = vpop.f32.mrb[53].mxu1 }
 0x553   : > { %v6911_v63 = vadd.f32 %v6910_v23, %v6909_v18  ;;  %v6912_v0 = vpop.f32.mrb[54].mxu1 }
 0x554   : > { %v6913_v12 = vpop.f32.mrb[55].mxu1 }
 0x555   : > { %v4937_v33 = vadd.f32 %v6911_v63, %v10803_v29  ;;  %v6914_v22 = vadd.f32 %v6913_v12, %v6912_v0 }
 0x556   : > { %6682 = vmatmul.mubr.msk.bf16.gmra.mrb[160].mxu1 %vm10311_vm9, %v11915_v13 }
 0x557   : > { %v4940_v24 = vadd.f32 %v6914_v22, %v10817_v45  ;;  %5352 = vmatprep.mubr.bf16.mxu1 %v10328_v38  ;;  %v11081_v11 = vadd.f32 %v10827_v8, %v4937_v33  ;;  %v11984_v45 = vld [vmem:[#allocation61_spill] sm:$0xff] }
 0x559   : > { %v6915_v37 = vpop.f32.mrb[56].mxu1  ;;  %v11084_v26 = vadd.f32 %v10831_v56, %v4940_v24 }
 0x55a   : > { %v6916_v25 = vpop.f32.mrb[57].mxu1 }
 0x55b   : > { %v6917_v15 = vadd.f32 %v6916_v25, %v6915_v37  ;;  %v6918_v28 = vpop.f32.mrb[58].mxu1 }
 0x55c   : > { %v6919_v29 = vpop.f32.mrb[59].mxu1 }
 0x55d   : > { %v4945_v21 = vadd.f32 %v6917_v15, %v10829_v52  ;;  %v6920_v40 = vadd.f32 %v6919_v29, %v6918_v28 }
 0x55e   : > { %6685 = vmatmul.mubr.msk.bf16.gmra.mrb[164].mxu1 %vm10311_vm9, %v11943_v42 }
 0x55f   : > { %v4948_v38 = vadd.f32 %v6920_v40, %v10833_v44  ;;  %5360 = vmatprep.mubr.bf16.mxu1 %v11984_v45  ;;  %v11093_v13 = vadd.f32 %v10852_v19, %v4945_v21 }
 0x561   : > { %v6921_v8 = vpop.f32.mrb[60].mxu1  ;;  %v11096_v56 = vadd.f32 %v10859_v58, %v4948_v38 }
 0x562   : > { %v6922_v39 = vpop.f32.mrb[61].mxu1 }
 0x563   : > { %v6923_v3 = vadd.f32 %v6922_v39, %v6921_v8  ;;  %v6924_v30 = vpop.f32.mrb[62].mxu1 }
 0x564   : > { %v6925_v52 = vpop.f32.mrb[63].mxu1 }
 0x565   : > { %v4953_v43 = vadd.f32 %v6923_v3, %v10857_v1  ;;  %v6926_v18 = vadd.f32 %v6925_v52, %v6924_v30  ;;  %v11985_v52 = vld [vmem:[#allocation83_spill] sm:$0xff] }
 0x566   : > { %5361 = vmatmul.mubr.bf16.gmra.mrb[168].mxu1 %v11916_v49 }
 0x567   : > { %v4956_v14 = vadd.f32 %v6926_v18, %v10861_v47  ;;  %v11102_v44 = vadd.f32 %v10873_v62, %v4953_v43 }
 0x569   : > { %v6927_v19 = vpop.f32.mrb[64].mxu1  ;;  %v11105_v42 = vadd.f32 %v10877_v32, %v4956_v14 }
 0x56a   : > { %v6928_v58 = vpop.f32.mrb[65].mxu1 }
 0x56b   : > { %v6929_v23 = vadd.f32 %v6928_v58, %v6927_v19  ;;  %v6930_v63 = vpop.f32.mrb[66].mxu1  ;;  %v11986_v58 = vld [vmem:[#allocation99_spill] sm:$0xff] }
 0x56c   : > { %v6931_v0 = vpop.f32.mrb[67].mxu1 }
 0x56d   : > { %v4961_v12 = vadd.f32 %v6929_v23, %v10875_v61  ;;  %v6932_v33 = vadd.f32 %v6931_v0, %v6930_v63 }
 0x56f   : > { %v4964_v1 = vadd.f32 %v6932_v33, %v10879_v20  ;;  %v11110_v49 = vadd.f32 %v10898_v2, %v4961_v12 }
 0x571   : > { %v6933_v47 = vpop.f32.mrb[68].mxu1  ;;  %v11113_v62 = vadd.f32 %v10905_v27, %v4964_v1 }
 0x572   : > { %v6934_v22 = vpop.f32.mrb[69].mxu1 }
 0x573   : > { %v6935_v24 = vadd.f32 %v6934_v22, %v6933_v47  ;;  %v6936_v32 = vpop.f32.mrb[70].mxu1  ;;  %v11988_v22 = vld [vmem:[#allocation101_spill] sm:$0xff] }
 0x574   : > { %v6937_v37 = vpop.f32.mrb[71].mxu1 }
 0x575   : > { %v4969_v25 = vadd.f32 %v6935_v24, %v10903_v16  ;;  %v6938_v15 = vadd.f32 %v6937_v37, %v6936_v32  ;;  %v11989_v32 = vld [vmem:[#allocation98_spill] sm:$0xff] }
 0x577   : > { %v4972_v28 = vadd.f32 %v6938_v15, %v10907_v9  ;;  %v11118_v61 = vadd.f32 %v10919_v34, %v4969_v25 }
 0x579   : > { %v6939_v20 = vpop.f32.mrb[72].mxu1  ;;  %v11121_v2 = vadd.f32 %v10923_v51, %v4972_v28 }
 0x57a   : > { %v6940_v29 = vpop.f32.mrb[73].mxu1 }
 0x57b   : > { %v6941_v21 = vadd.f32 %v6940_v29, %v6939_v20  ;;  %v6942_v27 = vpop.f32.mrb[74].mxu1 }
 0x57c   : > { %v6943_v40 = vpop.f32.mrb[75].mxu1 }
 0x57d   : > { %v4977_v38 = vadd.f32 %v6941_v21, %v10921_v36  ;;  %v6944_v45 = vadd.f32 %v6943_v40, %v6942_v27 }
 0x57f   : > { %v4980_v8 = vadd.f32 %v6944_v45, %v10925_v46  ;;  %v11126_v16 = vadd.f32 %v10941_v50, %v4977_v38 }
 0x581   : > { %v6945_v9 = vpop.f32.mrb[76].mxu1  ;;  %v11129_v34 = vadd.f32 %v10946_v35, %v4980_v8  ;;  %v11990_v8 = vld [vmem:[#allocation96_spill] sm:$0xff] }
 0x582   : > { %v6946_v39 = vpop.f32.mrb[77].mxu1 }
 0x583   : > { %v6947_v3 = vadd.f32 %v6946_v39, %v6945_v9  ;;  %v6948_v51 = vpop.f32.mrb[78].mxu1 }
 0x584   : > { %v6949_v30 = vpop.f32.mrb[79].mxu1 }
 0x585   : > { %v4985_v43 = vadd.f32 %v6947_v3, %v11985_v52  ;;  %v6950_v18 = vadd.f32 %v6949_v30, %v6948_v51 }
 0x587   : > { %v4988_v14 = vadd.f32 %v6950_v18, %v10948_v57  ;;  %v11134_v36 = vadd.f32 %v10954_v7, %v4985_v43  ;;  %v11987_v57 = vld [vmem:[#allocation91_spill] sm:$0xff]  ;;  %v11991_v43 = vld [vmem:[#allocation97_spill] sm:$0xff] }
 0x588   : > { %v11136_v46 = vpop.f32.mrb[112].mxu0 }
 0x589   : > { %v6951_v50 = vpop.f32.mrb[80].mxu1  ;;  %v11138_v19 = vpop.f32.mrb[113].mxu0  ;;  %v11141_v35 = vadd.f32 %v11986_v58, %v4988_v14 }
 0x58a   : > { %v6952_v23 = vpop.f32.mrb[81].mxu1  ;;  %v11143_v63 = vpop.f32.mrb[114].mxu0 }
 0x58b   : > { %v6953_v0 = vadd.f32 %v6952_v23, %v6951_v50  ;;  %v6954_v12 = vpop.f32.mrb[82].mxu1  ;;  %v11145_v33 = vpop.f32.mrb[115].mxu0 }
 0x58c   : > { %v6955_v1 = vpop.f32.mrb[83].mxu1 }
 0x58d   : > { %v4993_v47 = vadd.f32 %v6953_v0, %v11987_v57  ;;  %v6956_v7 = vadd.f32 %v6955_v1, %v6954_v12  ;;  %v11993_v57 = vld [vmem:[#allocation103_spill] sm:$0xff] }
 0x58f   : > { %v4996_v24 = vadd.f32 %v6956_v7, %v11988_v22  ;;  %v11150_v37 = vadd.f32 %v11989_v32, %v4993_v47  ;;  %v11994_v7 = vld [vmem:[#allocation107_spill] sm:$0xff] }
 0x590   : > { %v11152_v25 = vpop.f32.mrb[116].mxu0 }
 0x591   : > { %v6957_v15 = vpop.f32.mrb[84].mxu1  ;;  %v11154_v28 = vpop.f32.mrb[117].mxu0  ;;  %v11157_v20 = vadd.f32 %v10974_v6, %v4996_v24 }
 0x592   : > { %v6958_v29 = vpop.f32.mrb[85].mxu1  ;;  %v11159_v21 = vpop.f32.mrb[118].mxu0 }
 0x593   : > { %v6959_v27 = vadd.f32 %v6958_v29, %v6957_v15  ;;  %v6960_v40 = vpop.f32.mrb[86].mxu1  ;;  %v11161_v38 = vpop.f32.mrb[119].mxu0 }
 0x594   : > { %v6961_v45 = vpop.f32.mrb[87].mxu1 }
 0x595   : > { %v5001_v9 = vadd.f32 %v6959_v27, %v11990_v8  ;;  %v6962_v39 = vadd.f32 %v6961_v45, %v6960_v40 }
 0x597   : > { %v5004_v3 = vadd.f32 %v6962_v39, %v10976_v4  ;;  %v11166_v51 = vadd.f32 %v10982_v17, %v5001_v9  ;;  %v11992_v4 = vld [vmem:[#allocation92_spill] sm:$0xff] }
 0x598   : > { %v11168_v30 = vpop.f32.mrb[120].mxu0 }
 0x599   : > { %v6963_v6 = vpop.f32.mrb[88].mxu1  ;;  %v11170_v52 = vpop.f32.mrb[121].mxu0  ;;  %v11173_v18 = vadd.f32 %v11991_v43, %v5004_v3  ;;  %v11997_v3 = vld [vmem:[#allocation95_spill] sm:$0xff] }
 0x59a   : > { %v6964_v14 = vpop.f32.mrb[89].mxu1  ;;  %v11175_v50 = vpop.f32.mrb[122].mxu0 }
 0x59b   : > { %v6965_v58 = vadd.f32 %v6964_v14, %v6963_v6  ;;  %v6966_v23 = vpop.f32.mrb[90].mxu1  ;;  %v11177_v0 = vpop.f32.mrb[123].mxu0 }
 0x59c   : > { %v6967_v12 = vpop.f32.mrb[91].mxu1 }
 0x59d   : > { %v5009_v1 = vadd.f32 %v6965_v58, %v11992_v4  ;;  %v6968_v17 = vadd.f32 %v6967_v12, %v6966_v23  ;;  %v11998_v58 = vld [vmem:[#allocation104_spill] sm:$0xff] }
 0x59f   : > { %v5012_v47 = vadd.f32 %v6968_v17, %v11993_v57  ;;  %v11182_v22 = vadd.f32 %v11994_v7, %v5009_v1  ;;  %v12000_v1 = vld [vmem:[#allocation112_spill] sm:$0xff] }
 0x5a0   : > { %v11184_v24 = vpop.f32.mrb[124].mxu0 }
 0x5a1   : > { %11995 = vst [vmem:[#allocation117_spill] sm:$0xff] %v11182_v22  ;;  %v6969_v32 = vpop.f32.mrb[92].mxu1  ;;  %v11186_v15 = vpop.f32.mrb[125].mxu0  ;;  %v11189_v29 = vadd.f32 %v11002_v54, %v5012_v47 }
 0x5a2   : > { %v6970_v27 = vpop.f32.mrb[93].mxu1  ;;  %v11191_v40 = vpop.f32.mrb[126].mxu0 }
 0x5a3   : > { %11996 = vst [vmem:[#allocation23_spill] sm:$0xff] %v11189_v29  ;;  %v6971_v45 = vadd.f32 %v6970_v27, %v6969_v32  ;;  %v6972_v8 = vpop.f32.mrb[94].mxu1  ;;  %v11193_v9 = vpop.f32.mrb[127].mxu0 }
 0x5a4   : > { %v6973_v39 = vpop.f32.mrb[95].mxu1 }
 0x5a5   : > { %v5017_v6 = vadd.f32 %v6971_v45, %v11997_v3  ;;  %v6974_v43 = vadd.f32 %v6973_v39, %v6972_v8 }
 0x5a7   : > { %v5020_v14 = vadd.f32 %v6974_v43, %v11004_v53  ;;  %v11198_v23 = vadd.f32 %v11998_v58, %v5017_v6  ;;  %v12002_v53 = vld [vmem:[#allocation110_spill] sm:$0xff]  ;;  %v12003_v6 = vld [vmem:[#allocation109_spill] sm:$0xff] }
 0x5a8   : > { %v11200_v12 = vpop.f32.mrb[128].mxu0 }
 0x5a9   : > { %11999 = vst [vmem:[#allocation42_spill] sm:$0xff] %v11198_v23  ;;  %v6975_v54 = vpop.f32.mrb[96].mxu1  ;;  %v11202_v4 = vpop.f32.mrb[129].mxu0  ;;  %v11205_v17 = vadd.f32 %v12000_v1, %v5020_v14 }
 0x5aa   : > { %v6976_v57 = vpop.f32.mrb[97].mxu1  ;;  %v11207_v47 = vpop.f32.mrb[130].mxu0 }
 0x5ab   : > { %12001 = vst [vmem:[#allocation118_spill] sm:$0xff] %v11205_v17  ;;  %v6977_v7 = vadd.f32 %v6976_v57, %v6975_v54  ;;  %v6978_v32 = vpop.f32.mrb[98].mxu1  ;;  %v11209_v27 = vpop.f32.mrb[131].mxu0  ;;  %v12006_v17 = vld [vmem:[#allocation73_spill] sm:$0xff] }
 0x5ac   : > { %v6979_v45 = vpop.f32.mrb[99].mxu1 }
 0x5ad   : > { %v5025_v8 = vadd.f32 %v6977_v7, %v12002_v53  ;;  %v6980_v39 = vadd.f32 %v6979_v45, %v6978_v32 }
 0x5af   : > { %v5028_v3 = vadd.f32 %v6980_v39, %v11016_v59  ;;  %v11214_v43 = vadd.f32 %v12003_v6, %v5025_v8  ;;  %v12010_v59 = vld [vmem:[#allocation105_spill] sm:$0xff]  ;;  %v12011_v39 = vld [vmem:[#allocation108_spill] sm:$0xff] }
 0x5b0   : > { %v11216_v58 = vpop.f32.mrb[132].mxu0 }
 0x5b1   : > { %12004 = vst [vmem:[#allocation26_spill] sm:$0xff] %v11214_v43  ;;  %12005 = vst [vmem:[#allocation32_spill] sm:$0xff] %v11216_v58  ;;  %v6981_v14 = vpop.f32.mrb[100].mxu1  ;;  %v11218_v1 = vpop.f32.mrb[133].mxu0  ;;  %v11221_v23 = vadd.f32 %v12006_v17, %v5028_v3 }
 0x5b2   : > { %v6982_v54 = vpop.f32.mrb[101].mxu1  ;;  %v11223_v57 = vpop.f32.mrb[134].mxu0 }
 0x5b3   : > { %12007 = vst [vmem:[#allocation47_spill] sm:$0xff] %v11221_v23  ;;  %12008 = vst [vmem:[#allocation36_spill] sm:$0xff] %v11223_v57  ;;  %v6983_v29 = vadd.f32 %v6982_v54, %v6981_v14  ;;  %v6984_v22 = vpop.f32.mrb[102].mxu1  ;;  %v11225_v7 = vpop.f32.mrb[135].mxu0  ;;  %v12013_v23 = vld [vmem:[#allocation115_spill] sm:$0xff] }
 0x5b4   : > { %12009 = vst [vmem:[#allocation25_spill] sm:$0xff] %v11225_v7  ;;  %v6985_v32 = vpop.f32.mrb[103].mxu1 }
 0x5b5   : > { %v5033_v45 = vadd.f32 %v6983_v29, %v12010_v59  ;;  %v6986_v53 = vadd.f32 %v6985_v32, %v6984_v22 }
 0x5b7   : > { %v5036_v8 = vadd.f32 %v6986_v53, %v11028_v60  ;;  %v11230_v6 = vadd.f32 %v12011_v39, %v5033_v45  ;;  %v12016_v60 = vld [vmem:[#allocation114_spill] sm:$0xff] }
 0x5b8   : > { %v11232_v43 = vpop.f32.mrb[136].mxu0  ;;  %v12017_v45 = vld [vmem:[#allocation38_spill] sm:$0xff] }
 0x5b9   : > { %12012 = vst [vmem:[#allocation52_spill] sm:$0xff] %v11230_v6  ;;  %v6987_v17 = vpop.f32.mrb[104].mxu1  ;;  %v11234_v3 = vpop.f32.mrb[137].mxu0  ;;  %v11237_v57 = vadd.f32 %v12013_v23, %v5036_v8 }
 0x5ba   : > { %v6988_v14 = vpop.f32.mrb[105].mxu1  ;;  %v11239_v54 = vpop.f32.mrb[138].mxu0 }
 0x5bb   : > { %12014 = vst [vmem:[#allocation60_spill] sm:$0xff] %v11237_v57  ;;  %12015 = vst [vmem:[#allocation65_spill] sm:$0xff] %v11239_v54  ;;  %v6989_v58 = vadd.f32 %v6988_v14, %v6987_v17  ;;  %v6990_v7 = vpop.f32.mrb[106].mxu1  ;;  %v11241_v29 = vpop.f32.mrb[139].mxu0 }
 0x5bc   : > { %v6991_v22 = vpop.f32.mrb[107].mxu1 }
 0x5bd   : > { %v5041_v32 = vadd.f32 %v6989_v58, %v12016_v60  ;;  %v6992_v59 = vadd.f32 %v6991_v22, %v6990_v7  ;;  %v11259_v22 = vld [vmem:[#allocation10] ss:$0 sm:$0xff] }
 0x5bf   : > { %v5044_v53 = vadd.f32 %v6992_v59, %v12017_v45  ;;  %v11246_v39 = vadd.f32 %v11046_v41, %v5041_v32 }
 0x5c0   : > { %v11248_v6 = vpop.f32.mrb[140].mxu0 }
 0x5c1   : > { %12018 = vst [vmem:[#allocation30_spill] sm:$0xff] %v11246_v39  ;;  %12019 = vst [vmem:[#allocation69_spill] sm:$0xff] %v11248_v6  ;;  %v7121_v23 = vpop.f32.mrb[108].mxu1  ;;  %v11250_v8 = vpop.f32.mrb[141].mxu0  ;;  %v11253_v17 = vadd.f32 %v11048_v48, %v5044_v53  ;;  %v11264_v6 = vld [vmem:[#allocation13] ss:$0 sm:$0xff] }
 0x5c2   : > { %v7122_v14 = vpop.f32.mrb[109].mxu1  ;;  %v11255_v57 = vpop.f32.mrb[142].mxu0 }
 0x5c3   : > { %12020 = vst [vmem:[#allocation74_spill] sm:$0xff] %v11253_v17  ;;  %12021 = vst [vmem:[#allocation75_spill] sm:$0xff] %v11255_v57  ;;  %v7123_v54 = vadd.f32 %v7122_v14, %v7121_v23  ;;  %v7124_v58 = vpop.f32.mrb[110].mxu1  ;;  %v11257_v7 = vpop.f32.mrb[143].mxu0 }
 0x5c4   : > { %v7125_v41 = vpop.f32.mrb[111].mxu1 }
 0x5c5   : > { %v5243_v60 = vadd.f32 %v7123_v54, %v11057_v5  ;;  %v7126_v32 = vadd.f32 %v7125_v41, %v7124_v58 }
 0x5c7   : > { %v7504_v59 = vadd.f32 %v11259_v22, %v5243_v60  ;;  %v5246_v45 = vadd.f32 %v7126_v32, %v11060_v10 }
 0x5c9   : > { %v7505_v48 = vadd.f32 %v7504_v59, %v11138_v19  ;;  %v7510_v53 = vadd.f32 %v11259_v22, %v5246_v45  ;;  %v7127_v23 = vpop.f32.mrb[112].mxu1 }
 0x5ca   : > { %v7128_v14 = vpop.f32.mrb[113].mxu1 }
 0x5cb   : > { %v7506_v57 = vadd.f32 %v7505_v48, %v11264_v6  ;;  %v7511_v17 = vadd.f32 %v7510_v53, %v11145_v33  ;;  %v7129_v39 = vadd.f32 %v7128_v14, %v7127_v23  ;;  %v7130_v5 = vpop.f32.mrb[114].mxu1 }
 0x5cc   : > { %v7131_v54 = vpop.f32.mrb[115].mxu1 }
 0x5cd   : > { %v6044_v58 = vmax.f32 %v7506_v57, 0.0  ;;  %v7512_v41 = vadd.f32 %v7511_v17, %v11264_v6  ;;  %v5251_v10 = vadd.f32 %v7129_v39, %v11069_v31  ;;  %v7132_v60 = vadd.f32 %v7131_v54, %v7130_v5 }
 0x5cf   : > { %6076 = vst [vmem:[%s11273_s9] sm:$0xff] %v6044_v58  ;;  %v6045_v19 = vmax.f32 %v7512_v41, 0.0  ;;  %v7501_v32 = vadd.f32 %v11259_v22, %v5251_v10  ;;  %v5254_v33 = vadd.f32 %v7132_v60, %v11072_v55 }
 0x5d1   : > { %6077 = vst [vmem:[%s11273_s9 + $0x8] sm:$0xff] %v6045_v19  ;;  %v7502_v59 = vadd.f32 %v7501_v32, %v11136_v46  ;;  %v7507_v57 = vadd.f32 %v11259_v22, %v5254_v33  ;;  %v7133_v17 = vpop.f32.mrb[116].mxu1 }
 0x5d2   : > { %v7134_v31 = vpop.f32.mrb[117].mxu1 }
 0x5d3   : > { %v7503_v39 = vadd.f32 %v7502_v59, %v11264_v6  ;;  %v7508_v45 = vadd.f32 %v7507_v57, %v11143_v63  ;;  %v7135_v48 = vadd.f32 %v7134_v31, %v7133_v17  ;;  %v7136_v53 = vpop.f32.mrb[118].mxu1 }
 0x5d4   : > { %v7137_v23 = vpop.f32.mrb[119].mxu1 }
 0x5d5   : > { %v6046_v14 = vmax.f32 %v7503_v39, 0.0  ;;  %v7509_v5 = vadd.f32 %v7508_v45, %v11264_v6  ;;  %v5259_v55 = vadd.f32 %v7135_v48, %v11081_v11  ;;  %v7138_v54 = vadd.f32 %v7137_v23, %v7136_v53 }
 0x5d7   : > { %6078 = vst [vmem:[%s11273_s9 + $0x10] sm:$0xff] %v6046_v14  ;;  %v6047_v46 = vmax.f32 %v7509_v5, 0.0  ;;  %v7516_v58 = vadd.f32 %v11259_v22, %v5259_v55  ;;  %v5262_v41 = vadd.f32 %v7138_v54, %v11084_v26 }
 0x5d9   : > { %6079 = vst [vmem:[%s11273_s9 + $0x18] sm:$0xff] %v6047_v46  ;;  %v7517_v10 = vadd.f32 %v7516_v58, %v11154_v28  ;;  %v7522_v63 = vadd.f32 %v11259_v22, %v5262_v41  ;;  %v7139_v60 = vpop.f32.mrb[120].mxu1 }
 0x5da   : > { %v7140_v19 = vpop.f32.mrb[121].mxu1 }
 0x5db   : > { %v7518_v32 = vadd.f32 %v7517_v10, %v11264_v6  ;;  %v7523_v11 = vadd.f32 %v7522_v63, %v11161_v38  ;;  %v7141_v33 = vadd.f32 %v7140_v19, %v7139_v60  ;;  %v7142_v59 = vpop.f32.mrb[122].mxu1 }
 0x5dc   : > { %v7143_v57 = vpop.f32.mrb[123].mxu1 }
 0x5dd   : > { %v6048_v17 = vmax.f32 %v7518_v32, 0.0  ;;  %v7524_v31 = vadd.f32 %v7523_v11, %v11264_v6  ;;  %v5267_v26 = vadd.f32 %v7141_v33, %v11093_v13  ;;  %v7144_v39 = vadd.f32 %v7143_v57, %v7142_v59 }
 0x5df   : > { %6080 = vst [vmem:[%s11273_s9 + $0x20] sm:$0xff] %v6048_v17  ;;  %v6049_v28 = vmax.f32 %v7524_v31, 0.0  ;;  %v7513_v45 = vadd.f32 %v11259_v22, %v5267_v26  ;;  %v5270_v48 = vadd.f32 %v7144_v39, %v11096_v56 }
 0x5e1   : > { %6081 = vst [vmem:[%s11273_s9 + $0x28] sm:$0xff] %v6049_v28  ;;  %v7514_v53 = vadd.f32 %v7513_v45, %v11152_v25  ;;  %v7519_v38 = vadd.f32 %v11259_v22, %v5270_v48  ;;  %v7145_v23 = vpop.f32.mrb[124].mxu1 }
 0x5e2   : > { %v7146_v14 = vpop.f32.mrb[125].mxu1 }
 0x5e3   : > { %v7515_v5 = vadd.f32 %v7514_v53, %v11264_v6  ;;  %v7520_v13 = vadd.f32 %v7519_v38, %v11159_v21  ;;  %v7147_v55 = vadd.f32 %v7146_v14, %v7145_v23  ;;  %v7148_v54 = vpop.f32.mrb[126].mxu1 }
 0x5e4   : > { %v7149_v46 = vpop.f32.mrb[127].mxu1 }
 0x5e5   : > { %v6050_v58 = vmax.f32 %v7515_v5, 0.0  ;;  %v7521_v41 = vadd.f32 %v7520_v13, %v11264_v6  ;;  %v5275_v56 = vadd.f32 %v7147_v55, %v11102_v44  ;;  %v7150_v10 = vadd.f32 %v7149_v46, %v7148_v54 }
 0x5e7   : > { %6082 = vst [vmem:[%s11273_s9 + $0x30] sm:$0xff] %v6050_v58  ;;  %v6051_v25 = vmax.f32 %v7521_v41, 0.0  ;;  %v7528_v63 = vadd.f32 %v11259_v22, %v5275_v56  ;;  %v5278_v60 = vadd.f32 %v7150_v10, %v11105_v42 }
 0x5e9   : > { %6083 = vst [vmem:[%s11273_s9 + $0x38] sm:$0xff] %v6051_v25  ;;  %v7529_v19 = vadd.f32 %v7528_v63, %v11170_v52  ;;  %v7534_v21 = vadd.f32 %v11259_v22, %v5278_v60  ;;  %v7151_v32 = vpop.f32.mrb[128].mxu1 }
 0x5ea   : > { %v7152_v11 = vpop.f32.mrb[129].mxu1 }
 0x5eb   : > { %v7530_v33 = vadd.f32 %v7529_v19, %v11264_v6  ;;  %v7535_v44 = vadd.f32 %v7534_v21, %v11177_v0  ;;  %v7153_v59 = vadd.f32 %v7152_v11, %v7151_v32  ;;  %v7154_v57 = vpop.f32.mrb[130].mxu1 }
 0x5ec   : > { %v7155_v17 = vpop.f32.mrb[131].mxu1 }
 0x5ed   : > { %v6052_v31 = vmax.f32 %v7530_v33, 0.0  ;;  %v7536_v26 = vadd.f32 %v7535_v44, %v11264_v6  ;;  %v5283_v42 = vadd.f32 %v7153_v59, %v11110_v49  ;;  %v7156_v39 = vadd.f32 %v7155_v17, %v7154_v57 }
 0x5ef   : > { %6084 = vst [vmem:[%s11273_s9 + $0x40] sm:$0xff] %v6052_v31  ;;  %v6053_v52 = vmax.f32 %v7536_v26, 0.0  ;;  %v7525_v28 = vadd.f32 %v11259_v22, %v5283_v42  ;;  %v5286_v45 = vadd.f32 %v7156_v39, %v11113_v62 }
 0x5f1   : > { %6085 = vst [vmem:[%s11273_s9 + $0x48] sm:$0xff] %v6053_v52  ;;  %v7526_v48 = vadd.f32 %v7525_v28, %v11168_v30  ;;  %v7531_v0 = vadd.f32 %v11259_v22, %v5286_v45  ;;  %v7157_v53 = vpop.f32.mrb[132].mxu1 }
 0x5f2   : > { %v7158_v38 = vpop.f32.mrb[133].mxu1 }
 0x5f3   : > { %v7527_v23 = vadd.f32 %v7526_v48, %v11264_v6  ;;  %v7532_v49 = vadd.f32 %v7531_v0, %v11175_v50  ;;  %v7159_v14 = vadd.f32 %v7158_v38, %v7157_v53  ;;  %v7160_v5 = vpop.f32.mrb[134].mxu1 }
 0x5f4   : > { %v7161_v13 = vpop.f32.mrb[135].mxu1 }
 0x5f5   : > { %v6054_v55 = vmax.f32 %v7527_v23, 0.0  ;;  %v7533_v54 = vadd.f32 %v7532_v49, %v11264_v6  ;;  %v5291_v62 = vadd.f32 %v7159_v14, %v11118_v61  ;;  %v7162_v46 = vadd.f32 %v7161_v13, %v7160_v5 }
 0x5f7   : > { %6086 = vst [vmem:[%s11273_s9 + $0x50] sm:$0xff] %v6054_v55  ;;  %v6055_v30 = vmax.f32 %v7533_v54, 0.0  ;;  %v7540_v58 = vadd.f32 %v11259_v22, %v5291_v62  ;;  %v5294_v41 = vadd.f32 %v7162_v46, %v11121_v2 }
 0x5f9   : > { %6087 = vst [vmem:[%s11273_s9 + $0x58] sm:$0xff] %v6055_v30  ;;  %v7541_v56 = vadd.f32 %v7540_v58, %v11186_v15  ;;  %v7546_v50 = vadd.f32 %v11259_v22, %v5294_v41  ;;  %v7163_v10 = vpop.f32.mrb[136].mxu1 }
 0x5fa   : > { %v7164_v25 = vpop.f32.mrb[137].mxu1 }
 0x5fb   : > { %v7542_v63 = vadd.f32 %v7541_v56, %v11264_v6  ;;  %v7547_v61 = vadd.f32 %v7546_v50, %v11193_v9  ;;  %v7165_v60 = vadd.f32 %v7164_v25, %v7163_v10  ;;  %v7166_v19 = vpop.f32.mrb[138].mxu1 }
 0x5fc   : > { %v7167_v21 = vpop.f32.mrb[139].mxu1 }
 0x5fd   : > { %v6056_v32 = vmax.f32 %v7542_v63, 0.0  ;;  %v7548_v11 = vadd.f32 %v7547_v61, %v11264_v6  ;;  %v5299_v2 = vadd.f32 %v7165_v60, %v11126_v16  ;;  %v7168_v33 = vadd.f32 %v7167_v21, %v7166_v19 }
 0x5ff   : > { %6088 = vst [vmem:[%s11273_s9 + $0x60] sm:$0xff] %v6056_v32  ;;  %v6057_v15 = vmax.f32 %v7548_v11, 0.0  ;;  %v7537_v44 = vadd.f32 %v11259_v22, %v5299_v2  ;;  %v5302_v59 = vadd.f32 %v7168_v33, %v11129_v34 }
 0x601   : > { %6089 = vst [vmem:[%s11273_s9 + $0x68] sm:$0xff] %v6057_v15  ;;  %v7538_v57 = vadd.f32 %v7537_v44, %v11184_v24  ;;  %v7543_v9 = vadd.f32 %v11259_v22, %v5302_v59  ;;  %v7169_v17 = vpop.f32.mrb[140].mxu1  ;;  %v12022_v59 = vld [vmem:[#allocation25_spill] sm:$0xff] }
 0x602   : > { %v7170_v31 = vpop.f32.mrb[141].mxu1 }
 0x603   : > { %v7539_v26 = vadd.f32 %v7538_v57, %v11264_v6  ;;  %v7544_v16 = vadd.f32 %v7543_v9, %v11191_v40  ;;  %v7171_v42 = vadd.f32 %v7170_v31, %v7169_v17  ;;  %v7172_v39 = vpop.f32.mrb[142].mxu1 }
 0x604   : > { %v7173_v52 = vpop.f32.mrb[143].mxu1 }
 0x605   : > { %v6058_v28 = vmax.f32 %v7539_v26, 0.0  ;;  %v7545_v45 = vadd.f32 %v7544_v16, %v11264_v6  ;;  %v5307_v34 = vadd.f32 %v7171_v42, %v11134_v36  ;;  %v7174_v48 = vadd.f32 %v7173_v52, %v7172_v39  ;;  %v12023_v16 = vld [vmem:[#allocation117_spill] sm:$0xff]  ;;  %v12024_v52 = vld [vmem:[#allocation23_spill] sm:$0xff] }
 0x607   : > { %6090 = vst [vmem:[%s11273_s9 + $0x70] sm:$0xff] %v6058_v28  ;;  %v6059_v24 = vmax.f32 %v7545_v45, 0.0  ;;  %v7552_v0 = vadd.f32 %v11259_v22, %v5307_v34  ;;  %v5310_v53 = vadd.f32 %v7174_v48, %v11141_v35  ;;  %v12025_v45 = vld [vmem:[#allocation32_spill] sm:$0xff] }
 0x609   : > { %6091 = vst [vmem:[%s11273_s9 + $0x78] sm:$0xff] %v6059_v24  ;;  %v7553_v38 = vadd.f32 %v7552_v0, %v11202_v4  ;;  %v7558_v40 = vadd.f32 %v11259_v22, %v5310_v53  ;;  %v7175_v23 = vpop.f32.mrb[144].mxu1 }
 0x60a   : > { %v7176_v49 = vpop.f32.mrb[145].mxu1 }
 0x60b   : > { %v7554_v14 = vadd.f32 %v7553_v38, %v11264_v6  ;;  %v7559_v36 = vadd.f32 %v7558_v40, %v11209_v27  ;;  %v7177_v5 = vadd.f32 %v7176_v49, %v7175_v23  ;;  %v7178_v13 = vpop.f32.mrb[146].mxu1  ;;  %v12026_v38 = vld [vmem:[#allocation36_spill] sm:$0xff] }
 0x60c   : > { %v7179_v55 = vpop.f32.mrb[147].mxu1 }
 0x60d   : > { %v6060_v54 = vmax.f32 %v7554_v14, 0.0  ;;  %v7560_v62 = vadd.f32 %v7559_v36, %v11264_v6  ;;  %v5315_v35 = vadd.f32 %v7177_v5, %v11150_v37  ;;  %v7180_v46 = vadd.f32 %v7179_v55, %v7178_v13  ;;  %v12027_v13 = vld [vmem:[#allocation42_spill] sm:$0xff] }
 0x60f   : > { %6092 = vst [vmem:[%s11273_s9 + $0x80] sm:$0xff] %v6060_v54  ;;  %v6061_v4 = vmax.f32 %v7560_v62, 0.0  ;;  %v7549_v30 = vadd.f32 %v11259_v22, %v5315_v35  ;;  %v5318_v58 = vadd.f32 %v7180_v46, %v11157_v20  ;;  %v12028_v46 = vld [vmem:[#allocation118_spill] sm:$0xff] }
 0x611   : > { %6093 = vst [vmem:[%s11273_s9 + $0x88] sm:$0xff] %v6061_v4  ;;  %v7550_v41 = vadd.f32 %v7549_v30, %v11200_v12  ;;  %v7555_v27 = vadd.f32 %v11259_v22, %v5318_v58  ;;  %v7181_v56 = vpop.f32.mrb[148].mxu1 }
 0x612   : > { %v7182_v50 = vpop.f32.mrb[149].mxu1 }
 0x613   : > { %v7551_v10 = vadd.f32 %v7550_v41, %v11264_v6  ;;  %v7556_v37 = vadd.f32 %v7555_v27, %v11207_v47  ;;  %v7183_v25 = vadd.f32 %v7182_v50, %v7181_v56  ;;  %v7184_v63 = vpop.f32.mrb[150].mxu1 }
 0x614   : > { %v7185_v61 = vpop.f32.mrb[151].mxu1 }
 0x615   : > { %v6062_v60 = vmax.f32 %v7551_v10, 0.0  ;;  %v7557_v19 = vadd.f32 %v7556_v37, %v11264_v6  ;;  %v5323_v20 = vadd.f32 %v7183_v25, %v11166_v51  ;;  %v7186_v21 = vadd.f32 %v7185_v61, %v7184_v63 }
 0x617   : > { %6094 = vst [vmem:[%s11273_s9 + $0x90] sm:$0xff] %v6062_v60  ;;  %v6063_v12 = vmax.f32 %v7557_v19, 0.0  ;;  %v7564_v32 = vadd.f32 %v11259_v22, %v5323_v20  ;;  %v5326_v11 = vadd.f32 %v7186_v21, %v11173_v18  ;;  %v12029_v60 = vld [vmem:[#allocation26_spill] sm:$0xff] }
 0x619   : > { %6095 = vst [vmem:[%s11273_s9 + $0x98] sm:$0xff] %v6063_v12  ;;  %v7565_v2 = vadd.f32 %v7564_v32, %v11218_v1  ;;  %v7570_v47 = vadd.f32 %v11259_v22, %v5326_v11  ;;  %v7187_v33 = vpop.f32.mrb[152].mxu1  ;;  %v12030_v12 = vld [vmem:[#allocation47_spill] sm:$0xff] }
 0x61a   : > { %v7188_v15 = vpop.f32.mrb[153].mxu1 }
 0x61b   : > { %v7566_v44 = vadd.f32 %v7565_v2, %v11264_v6  ;;  %v7571_v51 = vadd.f32 %v7570_v47, %v12022_v59  ;;  %v7189_v57 = vadd.f32 %v7188_v15, %v7187_v33  ;;  %v7190_v9 = vpop.f32.mrb[154].mxu1  ;;  %v12031_v15 = vld [vmem:[#allocation65_spill] sm:$0xff] }
 0x61c   : > { %v7191_v17 = vpop.f32.mrb[155].mxu1 }
 0x61d   : > { %v6064_v31 = vmax.f32 %v7566_v44, 0.0  ;;  %v7572_v26 = vadd.f32 %v7571_v51, %v11264_v6  ;;  %v5331_v18 = vadd.f32 %v7189_v57, %v12023_v16  ;;  %v7192_v42 = vadd.f32 %v7191_v17, %v7190_v9 }
 0x61f   : > { %6096 = vst [vmem:[%s11273_s9 + $0xa0] sm:$0xff] %v6064_v31  ;;  %v6065_v1 = vmax.f32 %v7572_v26, 0.0  ;;  %v7561_v39 = vadd.f32 %v11259_v22, %v5331_v18  ;;  %v5334_v28 = vadd.f32 %v7192_v42, %v12024_v52  ;;  %v12032_v31 = vld [vmem:[#allocation52_spill] sm:$0xff] }
 0x620   : > { %v12033_v42 = vld [vmem:[#allocation60_spill] sm:$0xff] }
 0x621   : > { %6097 = vst [vmem:[%s11273_s9 + $0xa8] sm:$0xff] %v6065_v1  ;;  %v7562_v34 = vadd.f32 %v7561_v39, %v12025_v45  ;;  %v7567_v48 = vadd.f32 %v11259_v22, %v5334_v28  ;;  %v7193_v24 = vpop.f32.mrb[156].mxu1 }
 0x622   : > { %v7194_v0 = vpop.f32.mrb[157].mxu1 }
 0x623   : > { %v7563_v53 = vadd.f32 %v7562_v34, %v11264_v6  ;;  %v7568_v40 = vadd.f32 %v7567_v48, %v12026_v38  ;;  %v7195_v23 = vadd.f32 %v7194_v0, %v7193_v24  ;;  %v7196_v49 = vpop.f32.mrb[158].mxu1 }
 0x624   : > { %v7197_v14 = vpop.f32.mrb[159].mxu1 }
 0x625   : > { %v6066_v36 = vmax.f32 %v7563_v53, 0.0  ;;  %v7569_v5 = vadd.f32 %v7568_v40, %v11264_v6  ;;  %v5339_v55 = vadd.f32 %v7195_v23, %v12027_v13  ;;  %v7198_v54 = vadd.f32 %v7197_v14, %v7196_v49  ;;  %v12034_v23 = vld [vmem:[#allocation30_spill] sm:$0xff]  ;;  %v12036_v13 = vld [vmem:[#allocation69_spill] sm:$0xff] }
 0x627   : > { %6098 = vst [vmem:[%s11273_s9 + $0xb0] sm:$0xff] %v6066_v36  ;;  %v6067_v62 = vmax.f32 %v7569_v5, 0.0  ;;  %v7576_v35 = vadd.f32 %v11259_v22, %v5339_v55  ;;  %v5342_v4 = vadd.f32 %v7198_v54, %v12028_v46  ;;  %v12035_v5 = vld [vmem:[#allocation74_spill] sm:$0xff] }
 0x629   : > { %6099 = vst [vmem:[%s11273_s9 + $0xb8] sm:$0xff] %v6067_v62  ;;  %v7577_v30 = vadd.f32 %v7576_v35, %v11234_v3  ;;  %v7582_v58 = vadd.f32 %v11259_v22, %v5342_v4  ;;  %v7199_v41 = vpop.f32.mrb[160].mxu1  ;;  %v12037_v35 = vld [vmem:[#allocation75_spill] sm:$0xff] }
 0x62a   : > { %v7200_v27 = vpop.f32.mrb[161].mxu1 }
 0x62b   : > { %v7578_v56 = vadd.f32 %v7577_v30, %v11264_v6  ;;  %v7583_v50 = vadd.f32 %v7582_v58, %v11241_v29  ;;  %v7201_v10 = vadd.f32 %v7200_v27, %v7199_v41  ;;  %v7202_v37 = vpop.f32.mrb[162].mxu1 }
 0x62c   : > { %v7203_v25 = vpop.f32.mrb[163].mxu1 }
 0x62d   : > { %v6068_v63 = vmax.f32 %v7578_v56, 0.0  ;;  %v7584_v61 = vadd.f32 %v7583_v50, %v11264_v6  ;;  %v5347_v19 = vadd.f32 %v7201_v10, %v12029_v60  ;;  %v7204_v20 = vadd.f32 %v7203_v25, %v7202_v37 }
 0x62f   : > { %6100 = vst [vmem:[%s11273_s9 + $0xc0] sm:$0xff] %v6068_v63  ;;  %v6069_v3 = vmax.f32 %v7584_v61, 0.0  ;;  %v7573_v21 = vadd.f32 %v11259_v22, %v5347_v19  ;;  %v5350_v32 = vadd.f32 %v7204_v20, %v12030_v12 }
 0x631   : > { %6101 = vst [vmem:[%s11273_s9 + $0xc8] sm:$0xff] %v6069_v3  ;;  %v7574_v11 = vadd.f32 %v7573_v21, %v11232_v43  ;;  %v7579_v29 = vadd.f32 %v11259_v22, %v5350_v32  ;;  %v7205_v2 = vpop.f32.mrb[164].mxu1 }
 0x632   : > { %v7206_v47 = vpop.f32.mrb[165].mxu1 }
 0x633   : > { %v7575_v33 = vadd.f32 %v7574_v11, %v11264_v6  ;;  %v7580_v44 = vadd.f32 %v7579_v29, %v12031_v15  ;;  %v7207_v59 = vadd.f32 %v7206_v47, %v7205_v2  ;;  %v7208_v51 = vpop.f32.mrb[166].mxu1 }
 0x634   : > { %v7209_v57 = vpop.f32.mrb[167].mxu1 }
 0x635   : > { %v6070_v9 = vmax.f32 %v7575_v33, 0.0  ;;  %v7581_v17 = vadd.f32 %v7580_v44, %v11264_v6  ;;  %v5355_v26 = vadd.f32 %v7207_v59, %v12032_v31  ;;  %v7210_v16 = vadd.f32 %v7209_v57, %v7208_v51 }
 0x637   : > { %6102 = vst [vmem:[%s11273_s9 + $0xd0] sm:$0xff] %v6070_v9  ;;  %v6071_v43 = vmax.f32 %v7581_v17, 0.0  ;;  %v7588_v18 = vadd.f32 %v11259_v22, %v5355_v26  ;;  %v5358_v1 = vadd.f32 %v7210_v16, %v12033_v42 }
 0x639   : > { %6103 = vst [vmem:[%s11273_s9 + $0xd8] sm:$0xff] %v6071_v43  ;;  %v7589_v39 = vadd.f32 %v7588_v18, %v11250_v8  ;;  %v7594_v52 = vadd.f32 %v11259_v22, %v5358_v1  ;;  %v7211_v28 = vpop.f32.mrb[168].mxu1 }
 0x63a   : > { %v7212_v45 = vpop.f32.mrb[169].mxu1 }
 0x63b   : > { %v7590_v34 = vadd.f32 %v7589_v39, %v11264_v6  ;;  %v7595_v48 = vadd.f32 %v7594_v52, %v11257_v7  ;;  %v7213_v24 = vadd.f32 %v7212_v45, %v7211_v28  ;;  %v7214_v0 = vpop.f32.mrb[170].mxu1 }
 0x63c   : > { %v7215_v53 = vpop.f32.mrb[171].mxu1 }
 0x63d   : > { %v6072_v38 = vmax.f32 %v7590_v34, 0.0  ;;  %v7596_v40 = vadd.f32 %v7595_v48, %v11264_v6  ;;  %v5363_v49 = vadd.f32 %v7213_v24, %v12034_v23  ;;  %v7216_v8 = vadd.f32 %v7215_v53, %v7214_v0 }
 0x63f   : > { %6104 = vst [vmem:[%s11273_s9 + $0xe0] sm:$0xff] %v6072_v38  ;;  %v6073_v14 = vmax.f32 %v7596_v40, 0.0  ;;  %v7585_v36 = vadd.f32 %v11259_v22, %v5363_v49  ;;  %v5366_v7 = vadd.f32 %v7216_v8, %v12035_v5 }
 0x641   : > { %6105 = vst [vmem:[%s11273_s9 + $0xe8] sm:$0xff] %v6073_v14  ;;  %v7586_v55 = vadd.f32 %v7585_v36, %v12036_v13  ;;  %v7591_v54 = vadd.f32 %v11259_v22, %v5366_v7 }
 0x643   : > { %v7587_v62 = vadd.f32 %v7586_v55, %v11264_v6  ;;  %v7592_v46 = vadd.f32 %v7591_v54, %v12037_v35 }
 0x645   : > { %v6074_v4 = vmax.f32 %v7587_v62, 0.0  ;;  %v7593_v30 = vadd.f32 %v7592_v46, %v11264_v6 }
 0x647   : > { %6106 = vst [vmem:[%s11273_s9 + $0xf0] sm:$0xff] %v6074_v4  ;;  %v6075_v22 = vmax.f32 %v7593_v30, 0.0 }
 0x649   : > { %6107 = vst [vmem:[%s11273_s9 + $0xf8] sm:$0xff] %v6075_v22 }
 0x64a   : > { %8237 = shalt.err (!%p8234_p8)
}
 0x64b   : > { %s8238_s30 = scalar_lea.hbm %s11429_s18, 4096  ;;  %s8242_s8 = scalar_lea.hbm %s12038_s21, 8192 }
 0x64c   : > { %p8239_p3 = scmp.ne.s32.totalorder %s11429_s18, %s8238_s30  ;;  %p8243_p13 = scmp.lt.u32.totalorder %s11429_s18, %s12038_s21 }
 0x64d   : > { %p8244_p1 = scmp.lt.u32.totalorder %s8242_s8, %s8238_s30  ;;  %p8246_p2 = scmp.lt.u32.totalorder %s8238_s30, %s11429_s18 }
 0x64e   : > { %p8240_p12 = pnand %p8239_p3, %p12039_p9 }
 0x64f   : > { %p8245_p4 = por %p8244_p1, %p8243_p13 }
 0x650   : > { %p8241_p6 = pneg %p8240_p12 }
 0x651   : > { %p8247_p10 = por %p8246_p2, %p8245_p4 }
 0x653   : > { %p8248_p11 = pnand %p8247_p10, %p8241_p6 }
 0x655   : > { %8251 = shalt.err (!%p8248_p11)
}
 0x656   : > { %s8335_s22 = smov 128   ;;  %s8336_s23 = smov 8  }
 0x657   : > { %7658 = dma.vmem_to_hbm [thread:$0]  (%p12039_p9), %s11431_s7, 4096, %s11429_s18, %s6109_s12, %s8335_s22, %s8335_s22, %s8336_s23  }
 0x658 PF: > { %s6140_s2 = sand.u32 1, %s8298_s24   ;;  %p12040_p0 = scmp.ne.s32.totalorder %s11642_s14, 0 }
 0x659   : > { %p12041_p7 = scmp.ge.s32.totalorder %s8318_s29, 2  ;;  %s6141_s27 = scalar_lea.sflag [#allocation4], %s6140_s2 }
 0x65b   : > { %p7684_p5 = pnand %p12041_p7, %p12040_p0 }
 0x65d   : > { %8293 = dma.done.wait (!%p7684_p5), %s6141_s27, 4096  }
 0x65e   : > { %8295 = vsyncadd (!%p7684_p5), %s6141_s27, 4294963200  ;;  %s26_s29 = sadd.s32 1, %s8318_s29   ;;  %s12042_s24 = smov %s8302_s25 }
 0x65f   : > { %p23_p8 = scmp.ge.s32.totalorder %s26_s29, 4   ;;  %s12043_s25 = smov %s8306_s26 }
 0x660   : > { %s12044_s26 = smov %s8598_s11  ;;  %s12045_s27 = smov %s8314_s28 }
 0x661   : > { %s12046_s28 = smov %s12048_s19  ;;  %25 = sbr.rel (!%p23_p8) target bundleno = 13 (0xd), region = 118 }
 0x668   :  { %6146 = vsyncpa [#allocation3], 1 }
 0x669   :  { %6148 = vsyncpa [#allocation3 + $0x1], 1 }
 0x66a   :  { %6149 = vsyncpa [#allocation6], 1 }
 0x66b   :  { %6150 = vsyncpa [#allocation9], 1 }
 0x66c   :  { %6151 = vsyncpa [#allocation12], 1 }
 0x66d   :  { %6152 = vsyncpa [#allocation4], 1 }
 0x66e   :  { %6154 = vsyncpa [#allocation4 + $0x1], 1 }

</bundles_post_ra>
